<compile_context>
chip_gen: v5e
topology: v5e:2x2
jax: 0.10.0
libtpu: 0.0.40
codegen_flags: <defaults>
</compile_context>

<pallas_src>
import jax
import jax.numpy as jnp
from jax.experimental import pallas as pl
from jax.experimental.pallas import tpu as pltpu

# Flip to jnp.bfloat16 to feed the MXU bf16 operands (largest relative win on
# v5e; also helps v6e/v7x).  Accumulation stays float32 either way.  Kept
# float32 here to match the PyTorch module's numerics.
MXU_INPUT_DTYPE = jnp.float32

# ---------------------------------------------------------------------------
# Fixed LeNet geometry (32x32x3 input is implied by fc1 = 16*5*5).
# ---------------------------------------------------------------------------
C_IN, H_IN, W_IN = 3, 32, 32
KSIZE = 5
C1, H1O, W1O = 6, 28, 28        # conv1 output
P1H, P1W = 14, 14               # pool1 output spatial
PAD1 = 16                       # per-channel lane block after pool1 (mult of 8)
C2, H2O, W2O = 16, 10, 10       # conv2 output
P2H, P2W = 5, 5                 # pool2 output spatial
PAD2 = 8                        # per-channel lane block after pool2 (mult of 8)
FC_IN = P2H * C2 * PAD2         # 640 padded flatten (torch order folded into fc1)
FC1_OUT, FC2_OUT = 120, 84


# ---------------------------------------------------------------------------
# Fused kernel: whole LeNet forward for ONE image (grid iterates the batch).
# ---------------------------------------------------------------------------
def _lenet_kernel(x_ref, s1_ref, cb1_ref, r1e_ref, r1o_ref, c1e_ref, c1o_ref,
                  s2_ref, cb2_ref, r2e_ref, r2o_ref, c2e_ref, c2o_ref,
                  fw1_ref, fb1_ref, fw2_ref, fb2_ref, fw3_ref, fb3_ref,
                  out_ref, p1_scr, p2_scr):
    def mm(a, b):
        return jnp.dot(a.astype(MXU_INPUT_DTYPE), b.astype(MXU_INPUT_DTYPE),
                       preferred_element_type=jnp.float32)

    def sigmoid(y):
        # exp and (approximate) reciprocal both issue on the EUP slot.
        return pl.reciprocal(1.0 + jnp.exp(-y), approx=True)

    # ---- conv1 (5x5 valid) + bias + sigmoid -------------------------------
    # y1[i, co*28 + j] = sum_{ci,dh,dw} w1[co,ci,dh,dw] * x[ci, i+dh, j+dw]
    y1 = jnp.zeros((H1O, C1 * W1O), jnp.float32)
    for ci in range(C_IN):
        for dh in range(KSIZE):
            xs = x_ref[pl.ds(ci * H_IN + dh, H1O), :]                  # (28, 32)
            s1 = s1_ref[pl.ds((ci * KSIZE + dh) * W_IN, W_IN), :]      # (32, 168)
            y1 = y1 + mm(xs, s1)
    a1 = sigmoid(y1 + cb1_ref[...])                                    # (28, 168)

    # ---- maxpool 2x2 via even/odd selection matmuls ------------------------
    pr1 = jnp.maximum(mm(r1e_ref[...], a1), mm(r1o_ref[...], a1))      # (14, 168)
    p1_scr[...] = jnp.maximum(mm(pr1, c1e_ref[...]),
                              mm(pr1, c1o_ref[...]))                   # (14, 96)

    # ---- conv2 (5x5 valid) + bias + sigmoid --------------------------------
    y2 = jnp.zeros((H2O, C2 * W2O), jnp.float32)
    for dh in range(KSIZE):
        xs = p1_scr[pl.ds(dh, H2O), :]                                 # (10, 96)
        s2 = s2_ref[pl.ds(dh * C1 * PAD1, C1 * PAD1), :]               # (96, 160)
        y2 = y2 + mm(xs, s2)
    a2 = sigmoid(y2 + cb2_ref[...])                                    # (10, 160)

    pr2 = jnp.maximum(mm(r2e_ref[...], a2), mm(r2o_ref[...], a2))      # (5, 160)
    p2_scr[...] = jnp.maximum(mm(pr2, c2e_ref[...]),
                              mm(pr2, c2o_ref[...]))                   # (5, 128)

    # ---- fc1 (torch (c,h,w) flatten folded into fw1 rows) / fc2 / fc3 ------
    y_fc1 = fb1_ref[...]                                               # (1, 120)
    for h in range(P2H):
        y_fc1 = y_fc1 + mm(p2_scr[pl.ds(h, 1), :],
                           fw1_ref[pl.ds(h * C2 * PAD2, C2 * PAD2), :])
    h1 = sigmoid(y_fc1)                                                # (1, 120)
    h2 = sigmoid(mm(h1, fw2_ref[...]) + fb2_ref[...])                  # (1, 84)
    logits = mm(h2, fw3_ref[...]) + fb3_ref[...]                       # (1, nc)
    out_ref[...] = logits.astype(out_ref.dtype)


# ---------------------------------------------------------------------------
# One-time parameter repack (im2col folded into banded weights, flatten
# permutation folded into fc1, all transposes done here -- never per forward).
# ---------------------------------------------------------------------------
def _band(kw, s_len, out_w):
    """T[dw, s, j] = 1.0 iff s == j + dw (im2col-along-width as a matrix)."""
    d = jnp.arange(kw)[:, None, None]
    s = jnp.arange(s_len)[None, :, None]
    j = jnp.arange(out_w)[None, None, :]
    return (s == j + d).astype(jnp.float32)


def _pool_row_selectors(out_h):
    r = jnp.arange(out_h)[:, None]
    c = jnp.arange(2 * out_h)[None, :]
    return ((c == 2 * r).astype(jnp.float32),
            (c == 2 * r + 1).astype(jnp.float32))


def _pool_col_selectors(n_ch, in_w, out_w, pad_w):
    r = jnp.arange(n_ch * in_w)
    c = jnp.arange(n_ch * pad_w)
    ch_r, jj = r // in_w, r % in_w
    ch_c, q = c // pad_w, c % pad_w
    same = (ch_r[:, None] == ch_c[None, :]) & (q[None, :] < out_w)
    even = same & (jj[:, None] == 2 * q[None, :])
    odd = same & (jj[:, None] == 2 * q[None, :] + 1)
    return even.astype(jnp.float32), odd.astype(jnp.float32)


def prepare_lenet_kernel_params(params):
    w1, b1 = params["conv1_w"], params["conv1_b"]          # (6,3,5,5), (6,)
    w2, b2 = params["conv2_w"], params["conv2_b"]          # (16,6,5,5), (16,)

    # conv1: per (ci, dh) banded matrix (W_IN, C1*W1O).
    t1 = _band(KSIZE, W_IN, W1O)                            # (5, 32, 28)
    s1 = jnp.einsum("ochd,dsj->chsoj", w1, t1)              # (3,5,32,6,28)
    s1 = s1.reshape(C_IN * KSIZE * W_IN, C1 * W1O)          # (480, 168)
    cb1 = jnp.repeat(b1, W1O).reshape(1, C1 * W1O)          # (1, 168)

    # conv2: per dh banded matrix over the padded pooled layout.
    t2 = _band(KSIZE, PAD1, W2O)                            # (5, 16, 10)
    s2 = jnp.einsum("ochd,dsj->hcsoj", w2, t2)              # (5,6,16,16,10)
    s2 = s2.reshape(KSIZE * C1 * PAD1, C2 * W2O)            # (480, 160)
    cb2 = jnp.repeat(b2, W2O).reshape(1, C2 * W2O)          # (1, 160)

    # 2x2 max-pool even/odd selectors.
    r1e, r1o = _pool_row_selectors(P1H)                     # (14, 28)
    c1e, c1o = _pool_col_selectors(C1, W1O, P1W, PAD1)      # (168, 96)
    r2e, r2o = _pool_row_selectors(P2H)                     # (5, 10)
    c2e, c2o = _pool_col_selectors(C2, W2O, P2W, PAD2)      # (160, 128)

    # fc1: fold torch's (c, h, w) flatten order + channel padding into weights.
    fw1 = params["fc1_w"].reshape(FC1_OUT, C2, P2H, P2W)    # (120,16,5,5)
    fw1 = jnp.transpose(fw1, (2, 1, 3, 0))                  # (h, c, w, n)
    fw1 = jnp.pad(fw1, ((0, 0), (0, 0), (0, PAD2 - P2W), (0, 0)))
    fw1 = fw1.reshape(FC_IN, FC1_OUT)                       # (640, 120)
    fb1 = params["fc1_b"].reshape(1, FC1_OUT)
    fw2 = params["fc2_w"].T                                 # (120, 84)
    fb2 = params["fc2_b"].reshape(1, FC2_OUT)
    fw3 = params["fc3_w"].T                                 # (84, nc)
    fb3 = params["fc3_b"].reshape(1, -1)

    return (s1, cb1, r1e, r1o, c1e, c1o,
            s2, cb2, r2e, r2o, c2e, c2o,
            fw1, fb1, fw2, fb2, fw3, fb3)


# ---------------------------------------------------------------------------
# Forward wrapper: single fused pallas_call, grid over batch ("parallel").
# ---------------------------------------------------------------------------
def lenet_forward(prepared, x_nchw):
    """x_nchw: (B, 3, 32, 32) float32 -> logits (B, num_classes)."""
    B = x_nchw.shape[0]
    num_classes = prepared[-1].shape[1]
    # NCHW -> (B, 3*32, 32): contiguous (free) reshape, no transpose/copy.
    x3d = x_nchw.astype(jnp.float32).reshape(B, C_IN * H_IN, W_IN)

    in_specs = [pl.BlockSpec((None, C_IN * H_IN, W_IN), lambda i: (i, 0, 0))]
    # Constant index_maps: weights DMA'd once, stay VMEM resident across steps.
    in_specs += [pl.BlockSpec(p.shape, lambda i: (0, 0)) for p in prepared]

    out = pl.pallas_call(
        _lenet_kernel,
        out_shape=jax.ShapeDtypeStruct((B, 1, num_classes), jnp.float32),
        grid=(B,),
        in_specs=in_specs,
        out_specs=pl.BlockSpec((None, 1, num_classes), lambda i: (i, 0, 0)),
        scratch_shapes=[
            pltpu.VMEM((P1H, C1 * PAD1), jnp.float32),   # pooled conv1 (14, 96)
            pltpu.VMEM((P2H, C2 * PAD2), jnp.float32),   # pooled conv2 (5, 128)
        ],
        compiler_params=pltpu.CompilerParams(
            dimension_semantics=("parallel",)),
    )(x3d, *prepared)
    return out.reshape(B, num_classes)


# ---------------------------------------------------------------------------
# Synthetic PyTorch-layout parameters (same init as the original version).
# ---------------------------------------------------------------------------
def init_lenet_params(key, num_classes):
    ks = jax.random.split(key, 10)
    s = 0.05
    return {
        "conv1_w": jax.random.normal(ks[0], (6, 3, 5, 5), jnp.float32) * s,
        "conv1_b": jax.random.normal(ks[1], (6,), jnp.float32) * s,
        "conv2_w": jax.random.normal(ks[2], (16, 6, 5, 5), jnp.float32) * s,
        "conv2_b": jax.random.normal(ks[3], (16,), jnp.float32) * s,
        "fc1_w": jax.random.normal(ks[4], (120, 400), jnp.float32) * s,   # (out,in)
        "fc1_b": jax.random.normal(ks[5], (120,), jnp.float32) * s,
        "fc2_w": jax.random.normal(ks[6], (84, 120), jnp.float32) * s,
        "fc2_b": jax.random.normal(ks[7], (84,), jnp.float32) * s,
        "fc3_w": jax.random.normal(ks[8], (num_classes, 84), jnp.float32) * s,
        "fc3_b": jax.random.normal(ks[9], (num_classes,), jnp.float32) * s,
    }


if __name__ == "__main__":
    num_classes = 10
    key = jax.random.PRNGKey(0)
    k_param, k_x = jax.random.split(key)
    params = init_lenet_params(k_param, num_classes)
    # One-time repack (no per-forward transposes / im2col materialization).
    prepared = prepare_lenet_kernel_params(params)
    # LeNet's fc1 (16*5*5) fixes the spatial size to 32x32; batch kept small.
    x = jax.random.normal(k_x, (2, 3, 32, 32), jnp.float32)

    fwd = jax.jit(lenet_forward)
    logits = fwd(prepared, x)
    jax.block_until_ready(logits)
    assert logits.shape == (2, num_classes)
    assert logits.dtype == jnp.float32
    print("KERNEL_OK")
</pallas_src>

<mosaic_0001>
module attributes {stable_mosaic.version = 11 : i64} {
  func.func @_lenet_kernel(%arg0: i32, %arg1: memref<1x96x32xf32, #tpu.memory_space<vmem>>, %arg2: memref<480x168xf32, #tpu.memory_space<vmem>>, %arg3: memref<1x168xf32, #tpu.memory_space<vmem>>, %arg4: memref<14x28xf32, #tpu.memory_space<vmem>>, %arg5: memref<14x28xf32, #tpu.memory_space<vmem>>, %arg6: memref<168x96xf32, #tpu.memory_space<vmem>>, %arg7: memref<168x96xf32, #tpu.memory_space<vmem>>, %arg8: memref<480x160xf32, #tpu.memory_space<vmem>>, %arg9: memref<1x160xf32, #tpu.memory_space<vmem>>, %arg10: memref<5x10xf32, #tpu.memory_space<vmem>>, %arg11: memref<5x10xf32, #tpu.memory_space<vmem>>, %arg12: memref<160x128xf32, #tpu.memory_space<vmem>>, %arg13: memref<160x128xf32, #tpu.memory_space<vmem>>, %arg14: memref<640x120xf32, #tpu.memory_space<vmem>>, %arg15: memref<1x120xf32, #tpu.memory_space<vmem>>, %arg16: memref<120x84xf32, #tpu.memory_space<vmem>>, %arg17: memref<1x84xf32, #tpu.memory_space<vmem>>, %arg18: memref<84x10xf32, #tpu.memory_space<vmem>>, %arg19: memref<1x10xf32, #tpu.memory_space<vmem>>, %arg20: memref<1x1x10xf32, #tpu.memory_space<vmem>>, %arg21: memref<14x96xf32, #tpu.memory_space<vmem>>, %arg22: memref<5x128xf32, #tpu.memory_space<vmem>>) attributes {dimension_semantics = [#tpu.dimension_semantics<parallel>], iteration_bounds = array<i64: 2>, scalar_prefetch = 0 : i64, scratch_operands = 2 : i64, tpu.core_type = #tpu.core_type<tc>, window_params = [{transform_indices = @transform_0, window_bounds = array<i64: 1, 96, 32>}, {pipeline_mode = #tpu.pipeline_mode<synchronous>, transform_indices = @transform_1, window_bounds = array<i64: 480, 168>}, {pipeline_mode = #tpu.pipeline_mode<synchronous>, transform_indices = @transform_2, window_bounds = array<i64: 1, 168>}, {pipeline_mode = #tpu.pipeline_mode<synchronous>, transform_indices = @transform_3, window_bounds = array<i64: 14, 28>}, {pipeline_mode = #tpu.pipeline_mode<synchronous>, transform_indices = @transform_4, window_bounds = array<i64: 14, 28>}, {pipeline_mode = #tpu.pipeline_mode<synchronous>, transform_indices = @transform_5, window_bounds = array<i64: 168, 96>}, {pipeline_mode = #tpu.pipeline_mode<synchronous>, transform_indices = @transform_6, window_bounds = array<i64: 168, 96>}, {pipeline_mode = #tpu.pipeline_mode<synchronous>, transform_indices = @transform_7, window_bounds = array<i64: 480, 160>}, {pipeline_mode = #tpu.pipeline_mode<synchronous>, transform_indices = @transform_8, window_bounds = array<i64: 1, 160>}, {pipeline_mode = #tpu.pipeline_mode<synchronous>, transform_indices = @transform_9, window_bounds = array<i64: 5, 10>}, {pipeline_mode = #tpu.pipeline_mode<synchronous>, transform_indices = @transform_10, window_bounds = array<i64: 5, 10>}, {pipeline_mode = #tpu.pipeline_mode<synchronous>, transform_indices = @transform_11, window_bounds = array<i64: 160, 128>}, {pipeline_mode = #tpu.pipeline_mode<synchronous>, transform_indices = @transform_12, window_bounds = array<i64: 160, 128>}, {pipeline_mode = #tpu.pipeline_mode<synchronous>, transform_indices = @transform_13, window_bounds = array<i64: 640, 120>}, {pipeline_mode = #tpu.pipeline_mode<synchronous>, transform_indices = @transform_14, window_bounds = array<i64: 1, 120>}, {pipeline_mode = #tpu.pipeline_mode<synchronous>, transform_indices = @transform_15, window_bounds = array<i64: 120, 84>}, {pipeline_mode = #tpu.pipeline_mode<synchronous>, transform_indices = @transform_16, window_bounds = array<i64: 1, 84>}, {pipeline_mode = #tpu.pipeline_mode<synchronous>, transform_indices = @transform_17, window_bounds = array<i64: 84, 10>}, {pipeline_mode = #tpu.pipeline_mode<synchronous>, transform_indices = @transform_18, window_bounds = array<i64: 1, 10>}, {transform_indices = @transform_19, window_bounds = array<i64: 1, 1, 10>}]} {
    %cst = arith.constant 0.000000e+00 : f32
    %0 = vector.broadcast %cst : f32 to vector<28x168xf32>
    %c0 = arith.constant 0 : index
    %c0_0 = arith.constant 0 : index
    %c0_1 = arith.constant 0 : index
    %1 = vector.load %arg1[%c0, %c0_0, %c0_1] : memref<1x96x32xf32, #tpu.memory_space<vmem>>, vector<1x28x32xf32>
    %2 = vector.shape_cast %1 : vector<1x28x32xf32> to vector<28x32xf32>
    %c0_2 = arith.constant 0 : index
    %c0_3 = arith.constant 0 : index
    %3 = vector.load %arg2[%c0_2, %c0_3] : memref<480x168xf32, #tpu.memory_space<vmem>>, vector<32x168xf32>
    %cst_4 = arith.constant dense<0.000000e+00> : vector<28x168xf32>
    %4 = tpu.matmul %2, %3, %cst_4 {dimension_numbers = #tpu.dot_dimension_numbers<[1], [0], [0], [1], [0, 0, 1, 1], [], []>} : vector<28x32xf32>, vector<32x168xf32>, vector<28x168xf32> -> vector<28x168xf32>
    %5 = arith.addf %0, %4 : vector<28x168xf32>
    %c0_5 = arith.constant 0 : index
    %c1 = arith.constant 1 : index
    %c0_6 = arith.constant 0 : index
    %6 = vector.load %arg1[%c0_5, %c1, %c0_6] : memref<1x96x32xf32, #tpu.memory_space<vmem>>, vector<1x28x32xf32>
    %7 = vector.shape_cast %6 : vector<1x28x32xf32> to vector<28x32xf32>
    %c32 = arith.constant 32 : index
    %c0_7 = arith.constant 0 : index
    %8 = vector.load %arg2[%c32, %c0_7] : memref<480x168xf32, #tpu.memory_space<vmem>>, vector<32x168xf32>
    %cst_8 = arith.constant dense<0.000000e+00> : vector<28x168xf32>
    %9 = tpu.matmul %7, %8, %cst_8 {dimension_numbers = #tpu.dot_dimension_numbers<[1], [0], [0], [1], [0, 0, 1, 1], [], []>} : vector<28x32xf32>, vector<32x168xf32>, vector<28x168xf32> -> vector<28x168xf32>
    %10 = arith.addf %5, %9 : vector<28x168xf32>
    %c0_9 = arith.constant 0 : index
    %c2 = arith.constant 2 : index
    %c0_10 = arith.constant 0 : index
    %11 = vector.load %arg1[%c0_9, %c2, %c0_10] : memref<1x96x32xf32, #tpu.memory_space<vmem>>, vector<1x28x32xf32>
    %12 = vector.shape_cast %11 : vector<1x28x32xf32> to vector<28x32xf32>
    %c64 = arith.constant 64 : index
    %c0_11 = arith.constant 0 : index
    %13 = vector.load %arg2[%c64, %c0_11] : memref<480x168xf32, #tpu.memory_space<vmem>>, vector<32x168xf32>
    %cst_12 = arith.constant dense<0.000000e+00> : vector<28x168xf32>
    %14 = tpu.matmul %12, %13, %cst_12 {dimension_numbers = #tpu.dot_dimension_numbers<[1], [0], [0], [1], [0, 0, 1, 1], [], []>} : vector<28x32xf32>, vector<32x168xf32>, vector<28x168xf32> -> vector<28x168xf32>
    %15 = arith.addf %10, %14 : vector<28x168xf32>
    %c0_13 = arith.constant 0 : index
    %c3 = arith.constant 3 : index
    %c0_14 = arith.constant 0 : index
    %16 = vector.load %arg1[%c0_13, %c3, %c0_14] : memref<1x96x32xf32, #tpu.memory_space<vmem>>, vector<1x28x32xf32>
    %17 = vector.shape_cast %16 : vector<1x28x32xf32> to vector<28x32xf32>
    %c96 = arith.constant 96 : index
    %c0_15 = arith.constant 0 : index
    %18 = vector.load %arg2[%c96, %c0_15] : memref<480x168xf32, #tpu.memory_space<vmem>>, vector<32x168xf32>
    %cst_16 = arith.constant dense<0.000000e+00> : vector<28x168xf32>
    %19 = tpu.matmul %17, %18, %cst_16 {dimension_numbers = #tpu.dot_dimension_numbers<[1], [0], [0], [1], [0, 0, 1, 1], [], []>} : vector<28x32xf32>, vector<32x168xf32>, vector<28x168xf32> -> vector<28x168xf32>
    %20 = arith.addf %15, %19 : vector<28x168xf32>
    %c0_17 = arith.constant 0 : index
    %c4 = arith.constant 4 : index
    %c0_18 = arith.constant 0 : index
    %21 = vector.load %arg1[%c0_17, %c4, %c0_18] : memref<1x96x32xf32, #tpu.memory_space<vmem>>, vector<1x28x32xf32>
    %22 = vector.shape_cast %21 : vector<1x28x32xf32> to vector<28x32xf32>
    %c128 = arith.constant 128 : index
    %c0_19 = arith.constant 0 : index
    %23 = vector.load %arg2[%c128, %c0_19] : memref<480x168xf32, #tpu.memory_space<vmem>>, vector<32x168xf32>
    %cst_20 = arith.constant dense<0.000000e+00> : vector<28x168xf32>
    %24 = tpu.matmul %22, %23, %cst_20 {dimension_numbers = #tpu.dot_dimension_numbers<[1], [0], [0], [1], [0, 0, 1, 1], [], []>} : vector<28x32xf32>, vector<32x168xf32>, vector<28x168xf32> -> vector<28x168xf32>
    %25 = arith.addf %20, %24 : vector<28x168xf32>
    %c0_21 = arith.constant 0 : index
    %c32_22 = arith.constant 32 : index
    %c0_23 = arith.constant 0 : index
    %26 = vector.load %arg1[%c0_21, %c32_22, %c0_23] : memref<1x96x32xf32, #tpu.memory_space<vmem>>, vector<1x28x32xf32>
    %27 = vector.shape_cast %26 : vector<1x28x32xf32> to vector<28x32xf32>
    %c160 = arith.constant 160 : index
    %c0_24 = arith.constant 0 : index
    %28 = vector.load %arg2[%c160, %c0_24] : memref<480x168xf32, #tpu.memory_space<vmem>>, vector<32x168xf32>
    %cst_25 = arith.constant dense<0.000000e+00> : vector<28x168xf32>
    %29 = tpu.matmul %27, %28, %cst_25 {dimension_numbers = #tpu.dot_dimension_numbers<[1], [0], [0], [1], [0, 0, 1, 1], [], []>} : vector<28x32xf32>, vector<32x168xf32>, vector<28x168xf32> -> vector<28x168xf32>
    %30 = arith.addf %25, %29 : vector<28x168xf32>
    %c0_26 = arith.constant 0 : index
    %c33 = arith.constant 33 : index
    %c0_27 = arith.constant 0 : index
    %31 = vector.load %arg1[%c0_26, %c33, %c0_27] : memref<1x96x32xf32, #tpu.memory_space<vmem>>, vector<1x28x32xf32>
    %32 = vector.shape_cast %31 : vector<1x28x32xf32> to vector<28x32xf32>
    %c192 = arith.constant 192 : index
    %c0_28 = arith.constant 0 : index
    %33 = vector.load %arg2[%c192, %c0_28] : memref<480x168xf32, #tpu.memory_space<vmem>>, vector<32x168xf32>
    %cst_29 = arith.constant dense<0.000000e+00> : vector<28x168xf32>
    %34 = tpu.matmul %32, %33, %cst_29 {dimension_numbers = #tpu.dot_dimension_numbers<[1], [0], [0], [1], [0, 0, 1, 1], [], []>} : vector<28x32xf32>, vector<32x168xf32>, vector<28x168xf32> -> vector<28x168xf32>
    %35 = arith.addf %30, %34 : vector<28x168xf32>
    %c0_30 = arith.constant 0 : index
    %c34 = arith.constant 34 : index
    %c0_31 = arith.constant 0 : index
    %36 = vector.load %arg1[%c0_30, %c34, %c0_31] : memref<1x96x32xf32, #tpu.memory_space<vmem>>, vector<1x28x32xf32>
    %37 = vector.shape_cast %36 : vector<1x28x32xf32> to vector<28x32xf32>
    %c224 = arith.constant 224 : index
    %c0_32 = arith.constant 0 : index
    %38 = vector.load %arg2[%c224, %c0_32] : memref<480x168xf32, #tpu.memory_space<vmem>>, vector<32x168xf32>
    %cst_33 = arith.constant dense<0.000000e+00> : vector<28x168xf32>
    %39 = tpu.matmul %37, %38, %cst_33 {dimension_numbers = #tpu.dot_dimension_numbers<[1], [0], [0], [1], [0, 0, 1, 1], [], []>} : vector<28x32xf32>, vector<32x168xf32>, vector<28x168xf32> -> vector<28x168xf32>
    %40 = arith.addf %35, %39 : vector<28x168xf32>
    %c0_34 = arith.constant 0 : index
    %c35 = arith.constant 35 : index
    %c0_35 = arith.constant 0 : index
    %41 = vector.load %arg1[%c0_34, %c35, %c0_35] : memref<1x96x32xf32, #tpu.memory_space<vmem>>, vector<1x28x32xf32>
    %42 = vector.shape_cast %41 : vector<1x28x32xf32> to vector<28x32xf32>
    %c256 = arith.constant 256 : index
    %c0_36 = arith.constant 0 : index
    %43 = vector.load %arg2[%c256, %c0_36] : memref<480x168xf32, #tpu.memory_space<vmem>>, vector<32x168xf32>
    %cst_37 = arith.constant dense<0.000000e+00> : vector<28x168xf32>
    %44 = tpu.matmul %42, %43, %cst_37 {dimension_numbers = #tpu.dot_dimension_numbers<[1], [0], [0], [1], [0, 0, 1, 1], [], []>} : vector<28x32xf32>, vector<32x168xf32>, vector<28x168xf32> -> vector<28x168xf32>
    %45 = arith.addf %40, %44 : vector<28x168xf32>
    %c0_38 = arith.constant 0 : index
    %c36 = arith.constant 36 : index
    %c0_39 = arith.constant 0 : index
    %46 = vector.load %arg1[%c0_38, %c36, %c0_39] : memref<1x96x32xf32, #tpu.memory_space<vmem>>, vector<1x28x32xf32>
    %47 = vector.shape_cast %46 : vector<1x28x32xf32> to vector<28x32xf32>
    %c288 = arith.constant 288 : index
    %c0_40 = arith.constant 0 : index
    %48 = vector.load %arg2[%c288, %c0_40] : memref<480x168xf32, #tpu.memory_space<vmem>>, vector<32x168xf32>
    %cst_41 = arith.constant dense<0.000000e+00> : vector<28x168xf32>
    %49 = tpu.matmul %47, %48, %cst_41 {dimension_numbers = #tpu.dot_dimension_numbers<[1], [0], [0], [1], [0, 0, 1, 1], [], []>} : vector<28x32xf32>, vector<32x168xf32>, vector<28x168xf32> -> vector<28x168xf32>
    %50 = arith.addf %45, %49 : vector<28x168xf32>
    %c0_42 = arith.constant 0 : index
    %c64_43 = arith.constant 64 : index
    %c0_44 = arith.constant 0 : index
    %51 = vector.load %arg1[%c0_42, %c64_43, %c0_44] : memref<1x96x32xf32, #tpu.memory_space<vmem>>, vector<1x28x32xf32>
    %52 = vector.shape_cast %51 : vector<1x28x32xf32> to vector<28x32xf32>
    %c320 = arith.constant 320 : index
    %c0_45 = arith.constant 0 : index
    %53 = vector.load %arg2[%c320, %c0_45] : memref<480x168xf32, #tpu.memory_space<vmem>>, vector<32x168xf32>
    %cst_46 = arith.constant dense<0.000000e+00> : vector<28x168xf32>
    %54 = tpu.matmul %52, %53, %cst_46 {dimension_numbers = #tpu.dot_dimension_numbers<[1], [0], [0], [1], [0, 0, 1, 1], [], []>} : vector<28x32xf32>, vector<32x168xf32>, vector<28x168xf32> -> vector<28x168xf32>
    %55 = arith.addf %50, %54 : vector<28x168xf32>
    %c0_47 = arith.constant 0 : index
    %c65 = arith.constant 65 : index
    %c0_48 = arith.constant 0 : index
    %56 = vector.load %arg1[%c0_47, %c65, %c0_48] : memref<1x96x32xf32, #tpu.memory_space<vmem>>, vector<1x28x32xf32>
    %57 = vector.shape_cast %56 : vector<1x28x32xf32> to vector<28x32xf32>
    %c352 = arith.constant 352 : index
    %c0_49 = arith.constant 0 : index
    %58 = vector.load %arg2[%c352, %c0_49] : memref<480x168xf32, #tpu.memory_space<vmem>>, vector<32x168xf32>
    %cst_50 = arith.constant dense<0.000000e+00> : vector<28x168xf32>
    %59 = tpu.matmul %57, %58, %cst_50 {dimension_numbers = #tpu.dot_dimension_numbers<[1], [0], [0], [1], [0, 0, 1, 1], [], []>} : vector<28x32xf32>, vector<32x168xf32>, vector<28x168xf32> -> vector<28x168xf32>
    %60 = arith.addf %55, %59 : vector<28x168xf32>
    %c0_51 = arith.constant 0 : index
    %c66 = arith.constant 66 : index
    %c0_52 = arith.constant 0 : index
    %61 = vector.load %arg1[%c0_51, %c66, %c0_52] : memref<1x96x32xf32, #tpu.memory_space<vmem>>, vector<1x28x32xf32>
    %62 = vector.shape_cast %61 : vector<1x28x32xf32> to vector<28x32xf32>
    %c384 = arith.constant 384 : index
    %c0_53 = arith.constant 0 : index
    %63 = vector.load %arg2[%c384, %c0_53] : memref<480x168xf32, #tpu.memory_space<vmem>>, vector<32x168xf32>
    %cst_54 = arith.constant dense<0.000000e+00> : vector<28x168xf32>
    %64 = tpu.matmul %62, %63, %cst_54 {dimension_numbers = #tpu.dot_dimension_numbers<[1], [0], [0], [1], [0, 0, 1, 1], [], []>} : vector<28x32xf32>, vector<32x168xf32>, vector<28x168xf32> -> vector<28x168xf32>
    %65 = arith.addf %60, %64 : vector<28x168xf32>
    %c0_55 = arith.constant 0 : index
    %c67 = arith.constant 67 : index
    %c0_56 = arith.constant 0 : index
    %66 = vector.load %arg1[%c0_55, %c67, %c0_56] : memref<1x96x32xf32, #tpu.memory_space<vmem>>, vector<1x28x32xf32>
    %67 = vector.shape_cast %66 : vector<1x28x32xf32> to vector<28x32xf32>
    %c416 = arith.constant 416 : index
    %c0_57 = arith.constant 0 : index
    %68 = vector.load %arg2[%c416, %c0_57] : memref<480x168xf32, #tpu.memory_space<vmem>>, vector<32x168xf32>
    %cst_58 = arith.constant dense<0.000000e+00> : vector<28x168xf32>
    %69 = tpu.matmul %67, %68, %cst_58 {dimension_numbers = #tpu.dot_dimension_numbers<[1], [0], [0], [1], [0, 0, 1, 1], [], []>} : vector<28x32xf32>, vector<32x168xf32>, vector<28x168xf32> -> vector<28x168xf32>
    %70 = arith.addf %65, %69 : vector<28x168xf32>
    %c0_59 = arith.constant 0 : index
    %c68 = arith.constant 68 : index
    %c0_60 = arith.constant 0 : index
    %71 = vector.load %arg1[%c0_59, %c68, %c0_60] : memref<1x96x32xf32, #tpu.memory_space<vmem>>, vector<1x28x32xf32>
    %72 = vector.shape_cast %71 : vector<1x28x32xf32> to vector<28x32xf32>
    %c448 = arith.constant 448 : index
    %c0_61 = arith.constant 0 : index
    %73 = vector.load %arg2[%c448, %c0_61] : memref<480x168xf32, #tpu.memory_space<vmem>>, vector<32x168xf32>
    %cst_62 = arith.constant dense<0.000000e+00> : vector<28x168xf32>
    %74 = tpu.matmul %72, %73, %cst_62 {dimension_numbers = #tpu.dot_dimension_numbers<[1], [0], [0], [1], [0, 0, 1, 1], [], []>} : vector<28x32xf32>, vector<32x168xf32>, vector<28x168xf32> -> vector<28x168xf32>
    %75 = arith.addf %70, %74 : vector<28x168xf32>
    %c0_63 = arith.constant 0 : index
    %c0_64 = arith.constant 0 : index
    %76 = vector.load %arg3[%c0_63, %c0_64] : memref<1x168xf32, #tpu.memory_space<vmem>>, vector<1x168xf32>
    %77 = vector.broadcast %76 : vector<1x168xf32> to vector<28x168xf32>
    %78 = arith.addf %75, %77 : vector<28x168xf32>
    %cst_65 = arith.constant 0.000000e+00 : f32
    %79 = vector.broadcast %cst_65 : f32 to vector<28x168xf32>
    %80 = arith.subf %79, %78 : vector<28x168xf32>
    %81 = math.exp %80 : vector<28x168xf32>
    %cst_66 = arith.constant 1.000000e+00 : f32
    %82 = vector.broadcast %cst_66 : f32 to vector<28x168xf32>
    %83 = arith.addf %82, %81 : vector<28x168xf32>
    %84 = tpu.reciprocal %83 {approx = true} : vector<28x168xf32> -> vector<28x168xf32>
    %c0_67 = arith.constant 0 : index
    %c0_68 = arith.constant 0 : index
    %85 = vector.load %arg4[%c0_67, %c0_68] : memref<14x28xf32, #tpu.memory_space<vmem>>, vector<14x28xf32>
    %cst_69 = arith.constant dense<0.000000e+00> : vector<14x168xf32>
    %86 = tpu.matmul %85, %84, %cst_69 {dimension_numbers = #tpu.dot_dimension_numbers<[1], [0], [0], [1], [0, 0, 1, 1], [], []>} : vector<14x28xf32>, vector<28x168xf32>, vector<14x168xf32> -> vector<14x168xf32>
    %c0_70 = arith.constant 0 : index
    %c0_71 = arith.constant 0 : index
    %87 = vector.load %arg5[%c0_70, %c0_71] : memref<14x28xf32, #tpu.memory_space<vmem>>, vector<14x28xf32>
    %cst_72 = arith.constant dense<0.000000e+00> : vector<14x168xf32>
    %88 = tpu.matmul %87, %84, %cst_72 {dimension_numbers = #tpu.dot_dimension_numbers<[1], [0], [0], [1], [0, 0, 1, 1], [], []>} : vector<14x28xf32>, vector<28x168xf32>, vector<14x168xf32> -> vector<14x168xf32>
    %89 = arith.maximumf %86, %88 : vector<14x168xf32>
    %c0_73 = arith.constant 0 : index
    %c0_74 = arith.constant 0 : index
    %90 = vector.load %arg6[%c0_73, %c0_74] : memref<168x96xf32, #tpu.memory_space<vmem>>, vector<168x96xf32>
    %cst_75 = arith.constant dense<0.000000e+00> : vector<14x96xf32>
    %91 = tpu.matmul %89, %90, %cst_75 {dimension_numbers = #tpu.dot_dimension_numbers<[1], [0], [0], [1], [0, 0, 1, 1], [], []>} : vector<14x168xf32>, vector<168x96xf32>, vector<14x96xf32> -> vector<14x96xf32>
    %c0_76 = arith.constant 0 : index
    %c0_77 = arith.constant 0 : index
    %92 = vector.load %arg7[%c0_76, %c0_77] : memref<168x96xf32, #tpu.memory_space<vmem>>, vector<168x96xf32>
    %cst_78 = arith.constant dense<0.000000e+00> : vector<14x96xf32>
    %93 = tpu.matmul %89, %92, %cst_78 {dimension_numbers = #tpu.dot_dimension_numbers<[1], [0], [0], [1], [0, 0, 1, 1], [], []>} : vector<14x168xf32>, vector<168x96xf32>, vector<14x96xf32> -> vector<14x96xf32>
    %94 = arith.maximumf %91, %93 : vector<14x96xf32>
    %c0_79 = arith.constant 0 : index
    %c0_80 = arith.constant 0 : index
    %95 = vector.load %arg21[%c0_79, %c0_80] : memref<14x96xf32, #tpu.memory_space<vmem>>, vector<14x96xf32>
    tpu.vector_store %arg21[%c0_79, %c0_80], %94 {strides = array<i32>} : memref<14x96xf32, #tpu.memory_space<vmem>>, vector<14x96xf32>,
    %cst_81 = arith.constant 0.000000e+00 : f32
    %96 = vector.broadcast %cst_81 : f32 to vector<10x160xf32>
    %c0_82 = arith.constant 0 : index
    %c0_83 = arith.constant 0 : index
    %97 = vector.load %arg21[%c0_82, %c0_83] : memref<14x96xf32, #tpu.memory_space<vmem>>, vector<10x96xf32>
    %c0_84 = arith.constant 0 : index
    %c0_85 = arith.constant 0 : index
    %98 = vector.load %arg8[%c0_84, %c0_85] : memref<480x160xf32, #tpu.memory_space<vmem>>, vector<96x160xf32>
    %cst_86 = arith.constant dense<0.000000e+00> : vector<10x160xf32>
    %99 = tpu.matmul %97, %98, %cst_86 {dimension_numbers = #tpu.dot_dimension_numbers<[1], [0], [0], [1], [0, 0, 1, 1], [], []>} : vector<10x96xf32>, vector<96x160xf32>, vector<10x160xf32> -> vector<10x160xf32>
    %100 = arith.addf %96, %99 : vector<10x160xf32>
    %c1_87 = arith.constant 1 : index
    %c0_88 = arith.constant 0 : index
    %101 = vector.load %arg21[%c1_87, %c0_88] : memref<14x96xf32, #tpu.memory_space<vmem>>, vector<10x96xf32>
    %c96_89 = arith.constant 96 : index
    %c0_90 = arith.constant 0 : index
    %102 = vector.load %arg8[%c96_89, %c0_90] : memref<480x160xf32, #tpu.memory_space<vmem>>, vector<96x160xf32>
    %cst_91 = arith.constant dense<0.000000e+00> : vector<10x160xf32>
    %103 = tpu.matmul %101, %102, %cst_91 {dimension_numbers = #tpu.dot_dimension_numbers<[1], [0], [0], [1], [0, 0, 1, 1], [], []>} : vector<10x96xf32>, vector<96x160xf32>, vector<10x160xf32> -> vector<10x160xf32>
    %104 = arith.addf %100, %103 : vector<10x160xf32>
    %c2_92 = arith.constant 2 : index
    %c0_93 = arith.constant 0 : index
    %105 = vector.load %arg21[%c2_92, %c0_93] : memref<14x96xf32, #tpu.memory_space<vmem>>, vector<10x96xf32>
    %c192_94 = arith.constant 192 : index
    %c0_95 = arith.constant 0 : index
    %106 = vector.load %arg8[%c192_94, %c0_95] : memref<480x160xf32, #tpu.memory_space<vmem>>, vector<96x160xf32>
    %cst_96 = arith.constant dense<0.000000e+00> : vector<10x160xf32>
    %107 = tpu.matmul %105, %106, %cst_96 {dimension_numbers = #tpu.dot_dimension_numbers<[1], [0], [0], [1], [0, 0, 1, 1], [], []>} : vector<10x96xf32>, vector<96x160xf32>, vector<10x160xf32> -> vector<10x160xf32>
    %108 = arith.addf %104, %107 : vector<10x160xf32>
    %c3_97 = arith.constant 3 : index
    %c0_98 = arith.constant 0 : index
    %109 = vector.load %arg21[%c3_97, %c0_98] : memref<14x96xf32, #tpu.memory_space<vmem>>, vector<10x96xf32>
    %c288_99 = arith.constant 288 : index
    %c0_100 = arith.constant 0 : index
    %110 = vector.load %arg8[%c288_99, %c0_100] : memref<480x160xf32, #tpu.memory_space<vmem>>, vector<96x160xf32>
    %cst_101 = arith.constant dense<0.000000e+00> : vector<10x160xf32>
    %111 = tpu.matmul %109, %110, %cst_101 {dimension_numbers = #tpu.dot_dimension_numbers<[1], [0], [0], [1], [0, 0, 1, 1], [], []>} : vector<10x96xf32>, vector<96x160xf32>, vector<10x160xf32> -> vector<10x160xf32>
    %112 = arith.addf %108, %111 : vector<10x160xf32>
    %c4_102 = arith.constant 4 : index
    %c0_103 = arith.constant 0 : index
    %113 = vector.load %arg21[%c4_102, %c0_103] : memref<14x96xf32, #tpu.memory_space<vmem>>, vector<10x96xf32>
    %c384_104 = arith.constant 384 : index
    %c0_105 = arith.constant 0 : index
    %114 = vector.load %arg8[%c384_104, %c0_105] : memref<480x160xf32, #tpu.memory_space<vmem>>, vector<96x160xf32>
    %cst_106 = arith.constant dense<0.000000e+00> : vector<10x160xf32>
    %115 = tpu.matmul %113, %114, %cst_106 {dimension_numbers = #tpu.dot_dimension_numbers<[1], [0], [0], [1], [0, 0, 1, 1], [], []>} : vector<10x96xf32>, vector<96x160xf32>, vector<10x160xf32> -> vector<10x160xf32>
    %116 = arith.addf %112, %115 : vector<10x160xf32>
    %c0_107 = arith.constant 0 : index
    %c0_108 = arith.constant 0 : index
    %117 = vector.load %arg9[%c0_107, %c0_108] : memref<1x160xf32, #tpu.memory_space<vmem>>, vector<1x160xf32>
    %118 = vector.broadcast %117 : vector<1x160xf32> to vector<10x160xf32>
    %119 = arith.addf %116, %118 : vector<10x160xf32>
    %cst_109 = arith.constant 0.000000e+00 : f32
    %120 = vector.broadcast %cst_109 : f32 to vector<10x160xf32>
    %121 = arith.subf %120, %119 : vector<10x160xf32>
    %122 = math.exp %121 : vector<10x160xf32>
    %cst_110 = arith.constant 1.000000e+00 : f32
    %123 = vector.broadcast %cst_110 : f32 to vector<10x160xf32>
    %124 = arith.addf %123, %122 : vector<10x160xf32>
    %125 = tpu.reciprocal %124 {approx = true} : vector<10x160xf32> -> vector<10x160xf32>
    %c0_111 = arith.constant 0 : index
    %c0_112 = arith.constant 0 : index
    %126 = vector.load %arg10[%c0_111, %c0_112] : memref<5x10xf32, #tpu.memory_space<vmem>>, vector<5x10xf32>
    %cst_113 = arith.constant dense<0.000000e+00> : vector<5x160xf32>
    %127 = tpu.matmul %126, %125, %cst_113 {dimension_numbers = #tpu.dot_dimension_numbers<[1], [0], [0], [1], [0, 0, 1, 1], [], []>} : vector<5x10xf32>, vector<10x160xf32>, vector<5x160xf32> -> vector<5x160xf32>
    %c0_114 = arith.constant 0 : index
    %c0_115 = arith.constant 0 : index
    %128 = vector.load %arg11[%c0_114, %c0_115] : memref<5x10xf32, #tpu.memory_space<vmem>>, vector<5x10xf32>
    %cst_116 = arith.constant dense<0.000000e+00> : vector<5x160xf32>
    %129 = tpu.matmul %128, %125, %cst_116 {dimension_numbers = #tpu.dot_dimension_numbers<[1], [0], [0], [1], [0, 0, 1, 1], [], []>} : vector<5x10xf32>, vector<10x160xf32>, vector<5x160xf32> -> vector<5x160xf32>
    %130 = arith.maximumf %127, %129 : vector<5x160xf32>
    %c0_117 = arith.constant 0 : index
    %c0_118 = arith.constant 0 : index
    %131 = vector.load %arg12[%c0_117, %c0_118] : memref<160x128xf32, #tpu.memory_space<vmem>>, vector<160x128xf32>
    %cst_119 = arith.constant dense<0.000000e+00> : vector<5x128xf32>
    %132 = tpu.matmul %130, %131, %cst_119 {dimension_numbers = #tpu.dot_dimension_numbers<[1], [0], [0], [1], [0, 0, 1, 1], [], []>} : vector<5x160xf32>, vector<160x128xf32>, vector<5x128xf32> -> vector<5x128xf32>
    %c0_120 = arith.constant 0 : index
    %c0_121 = arith.constant 0 : index
    %133 = vector.load %arg13[%c0_120, %c0_121] : memref<160x128xf32, #tpu.memory_space<vmem>>, vector<160x128xf32>
    %cst_122 = arith.constant dense<0.000000e+00> : vector<5x128xf32>
    %134 = tpu.matmul %130, %133, %cst_122 {dimension_numbers = #tpu.dot_dimension_numbers<[1], [0], [0], [1], [0, 0, 1, 1], [], []>} : vector<5x160xf32>, vector<160x128xf32>, vector<5x128xf32> -> vector<5x128xf32>
    %135 = arith.maximumf %132, %134 : vector<5x128xf32>
    %c0_123 = arith.constant 0 : index
    %c0_124 = arith.constant 0 : index
    %136 = vector.load %arg22[%c0_123, %c0_124] : memref<5x128xf32, #tpu.memory_space<vmem>>, vector<5x128xf32>
    tpu.vector_store %arg22[%c0_123, %c0_124], %135 {strides = array<i32>} : memref<5x128xf32, #tpu.memory_space<vmem>>, vector<5x128xf32>,
    %c0_125 = arith.constant 0 : index
    %c0_126 = arith.constant 0 : index
    %137 = vector.load %arg15[%c0_125, %c0_126] : memref<1x120xf32, #tpu.memory_space<vmem>>, vector<1x120xf32>
    %c0_127 = arith.constant 0 : index
    %c0_128 = arith.constant 0 : index
    %138 = vector.load %arg22[%c0_127, %c0_128] : memref<5x128xf32, #tpu.memory_space<vmem>>, vector<1x128xf32>
    %c0_129 = arith.constant 0 : index
    %c0_130 = arith.constant 0 : index
    %139 = vector.load %arg14[%c0_129, %c0_130] : memref<640x120xf32, #tpu.memory_space<vmem>>, vector<128x120xf32>
    %cst_131 = arith.constant dense<0.000000e+00> : vector<1x120xf32>
    %140 = tpu.matmul %138, %139, %cst_131 {dimension_numbers = #tpu.dot_dimension_numbers<[1], [0], [0], [1], [0, 0, 1, 1], [], []>} : vector<1x128xf32>, vector<128x120xf32>, vector<1x120xf32> -> vector<1x120xf32>
    %141 = arith.addf %137, %140 : vector<1x120xf32>
    %c1_132 = arith.constant 1 : index
    %c0_133 = arith.constant 0 : index
    %142 = vector.load %arg22[%c1_132, %c0_133] : memref<5x128xf32, #tpu.memory_space<vmem>>, vector<1x128xf32>
    %c128_134 = arith.constant 128 : index
    %c0_135 = arith.constant 0 : index
    %143 = vector.load %arg14[%c128_134, %c0_135] : memref<640x120xf32, #tpu.memory_space<vmem>>, vector<128x120xf32>
    %cst_136 = arith.constant dense<0.000000e+00> : vector<1x120xf32>
    %144 = tpu.matmul %142, %143, %cst_136 {dimension_numbers = #tpu.dot_dimension_numbers<[1], [0], [0], [1], [0, 0, 1, 1], [], []>} : vector<1x128xf32>, vector<128x120xf32>, vector<1x120xf32> -> vector<1x120xf32>
    %145 = arith.addf %141, %144 : vector<1x120xf32>
    %c2_137 = arith.constant 2 : index
    %c0_138 = arith.constant 0 : index
    %146 = vector.load %arg22[%c2_137, %c0_138] : memref<5x128xf32, #tpu.memory_space<vmem>>, vector<1x128xf32>
    %c256_139 = arith.constant 256 : index
    %c0_140 = arith.constant 0 : index
    %147 = vector.load %arg14[%c256_139, %c0_140] : memref<640x120xf32, #tpu.memory_space<vmem>>, vector<128x120xf32>
    %cst_141 = arith.constant dense<0.000000e+00> : vector<1x120xf32>
    %148 = tpu.matmul %146, %147, %cst_141 {dimension_numbers = #tpu.dot_dimension_numbers<[1], [0], [0], [1], [0, 0, 1, 1], [], []>} : vector<1x128xf32>, vector<128x120xf32>, vector<1x120xf32> -> vector<1x120xf32>
    %149 = arith.addf %145, %148 : vector<1x120xf32>
    %c3_142 = arith.constant 3 : index
    %c0_143 = arith.constant 0 : index
    %150 = vector.load %arg22[%c3_142, %c0_143] : memref<5x128xf32, #tpu.memory_space<vmem>>, vector<1x128xf32>
    %c384_144 = arith.constant 384 : index
    %c0_145 = arith.constant 0 : index
    %151 = vector.load %arg14[%c384_144, %c0_145] : memref<640x120xf32, #tpu.memory_space<vmem>>, vector<128x120xf32>
    %cst_146 = arith.constant dense<0.000000e+00> : vector<1x120xf32>
    %152 = tpu.matmul %150, %151, %cst_146 {dimension_numbers = #tpu.dot_dimension_numbers<[1], [0], [0], [1], [0, 0, 1, 1], [], []>} : vector<1x128xf32>, vector<128x120xf32>, vector<1x120xf32> -> vector<1x120xf32>
    %153 = arith.addf %149, %152 : vector<1x120xf32>
    %c4_147 = arith.constant 4 : index
    %c0_148 = arith.constant 0 : index
    %154 = vector.load %arg22[%c4_147, %c0_148] : memref<5x128xf32, #tpu.memory_space<vmem>>, vector<1x128xf32>
    %c512 = arith.constant 512 : index
    %c0_149 = arith.constant 0 : index
    %155 = vector.load %arg14[%c512, %c0_149] : memref<640x120xf32, #tpu.memory_space<vmem>>, vector<128x120xf32>
    %cst_150 = arith.constant dense<0.000000e+00> : vector<1x120xf32>
    %156 = tpu.matmul %154, %155, %cst_150 {dimension_numbers = #tpu.dot_dimension_numbers<[1], [0], [0], [1], [0, 0, 1, 1], [], []>} : vector<1x128xf32>, vector<128x120xf32>, vector<1x120xf32> -> vector<1x120xf32>
    %157 = arith.addf %153, %156 : vector<1x120xf32>
    %cst_151 = arith.constant 0.000000e+00 : f32
    %158 = vector.broadcast %cst_151 : f32 to vector<1x120xf32>
    %159 = arith.subf %158, %157 : vector<1x120xf32>
    %160 = math.exp %159 : vector<1x120xf32>
    %cst_152 = arith.constant 1.000000e+00 : f32
    %161 = vector.broadcast %cst_152 : f32 to vector<1x120xf32>
    %162 = arith.addf %161, %160 : vector<1x120xf32>
    %163 = tpu.reciprocal %162 {approx = true} : vector<1x120xf32> -> vector<1x120xf32>
    %c0_153 = arith.constant 0 : index
    %c0_154 = arith.constant 0 : index
    %164 = vector.load %arg16[%c0_153, %c0_154] : memref<120x84xf32, #tpu.memory_space<vmem>>, vector<120x84xf32>
    %cst_155 = arith.constant dense<0.000000e+00> : vector<1x84xf32>
    %165 = tpu.matmul %163, %164, %cst_155 {dimension_numbers = #tpu.dot_dimension_numbers<[1], [0], [0], [1], [0, 0, 1, 1], [], []>} : vector<1x120xf32>, vector<120x84xf32>, vector<1x84xf32> -> vector<1x84xf32>
    %c0_156 = arith.constant 0 : index
    %c0_157 = arith.constant 0 : index
    %166 = vector.load %arg17[%c0_156, %c0_157] : memref<1x84xf32, #tpu.memory_space<vmem>>, vector<1x84xf32>
    %167 = arith.addf %165, %166 : vector<1x84xf32>
    %cst_158 = arith.constant 0.000000e+00 : f32
    %168 = vector.broadcast %cst_158 : f32 to vector<1x84xf32>
    %169 = arith.subf %168, %167 : vector<1x84xf32>
    %170 = math.exp %169 : vector<1x84xf32>
    %cst_159 = arith.constant 1.000000e+00 : f32
    %171 = vector.broadcast %cst_159 : f32 to vector<1x84xf32>
    %172 = arith.addf %171, %170 : vector<1x84xf32>
    %173 = tpu.reciprocal %172 {approx = true} : vector<1x84xf32> -> vector<1x84xf32>
    %c0_160 = arith.constant 0 : index
    %c0_161 = arith.constant 0 : index
    %174 = vector.load %arg18[%c0_160, %c0_161] : memref<84x10xf32, #tpu.memory_space<vmem>>, vector<84x10xf32>
    %cst_162 = arith.constant dense<0.000000e+00> : vector<1x10xf32>
    %175 = tpu.matmul %173, %174, %cst_162 {dimension_numbers = #tpu.dot_dimension_numbers<[1], [0], [0], [1], [0, 0, 1, 1], [], []>} : vector<1x84xf32>, vector<84x10xf32>, vector<1x10xf32> -> vector<1x10xf32>
    %c0_163 = arith.constant 0 : index
    %c0_164 = arith.constant 0 : index
    %176 = vector.load %arg19[%c0_163, %c0_164] : memref<1x10xf32, #tpu.memory_space<vmem>>, vector<1x10xf32>
    %177 = arith.addf %175, %176 : vector<1x10xf32>
    %c0_165 = arith.constant 0 : index
    %c0_166 = arith.constant 0 : index
    %c0_167 = arith.constant 0 : index
    %178 = vector.load %arg20[%c0_165, %c0_166, %c0_167] : memref<1x1x10xf32, #tpu.memory_space<vmem>>, vector<1x1x10xf32>
    %179 = vector.shape_cast %178 : vector<1x1x10xf32> to vector<1x10xf32>
    %180 = vector.shape_cast %177 : vector<1x10xf32> to vector<1x1x10xf32>
    tpu.vector_store %arg20[%c0_165, %c0_166, %c0_167], %180 {strides = array<i32>} : memref<1x1x10xf32, #tpu.memory_space<vmem>>, vector<1x1x10xf32>,
    return
  }
  func.func @transform_0(%arg0: i32) -> (i32, i32, i32) {
    %c0_i32 = arith.constant 0 : i32
    %c0_i32_0 = arith.constant 0 : i32
    %c0_i32_1 = arith.constant 0 : i32
    return %arg0, %c0_i32, %c0_i32_0 : i32, i32, i32
  }
  func.func @transform_1(%arg0: i32) -> (i32, i32) {
    %c0_i32 = arith.constant 0 : i32
    %c0_i32_0 = arith.constant 0 : i32
    %c0_i32_1 = arith.constant 0 : i32
    return %c0_i32, %c0_i32_0 : i32, i32
  }
  func.func @transform_2(%arg0: i32) -> (i32, i32) {
    %c0_i32 = arith.constant 0 : i32
    %c0_i32_0 = arith.constant 0 : i32
    %c0_i32_1 = arith.constant 0 : i32
    return %c0_i32, %c0_i32_0 : i32, i32
  }
  func.func @transform_3(%arg0: i32) -> (i32, i32) {
    %c0_i32 = arith.constant 0 : i32
    %c0_i32_0 = arith.constant 0 : i32
    %c0_i32_1 = arith.constant 0 : i32
    return %c0_i32, %c0_i32_0 : i32, i32
  }
  func.func @transform_4(%arg0: i32) -> (i32, i32) {
    %c0_i32 = arith.constant 0 : i32
    %c0_i32_0 = arith.constant 0 : i32
    %c0_i32_1 = arith.constant 0 : i32
    return %c0_i32, %c0_i32_0 : i32, i32
  }
  func.func @transform_5(%arg0: i32) -> (i32, i32) {
    %c0_i32 = arith.constant 0 : i32
    %c0_i32_0 = arith.constant 0 : i32
    %c0_i32_1 = arith.constant 0 : i32
    return %c0_i32, %c0_i32_0 : i32, i32
  }
  func.func @transform_6(%arg0: i32) -> (i32, i32) {
    %c0_i32 = arith.constant 0 : i32
    %c0_i32_0 = arith.constant 0 : i32
    %c0_i32_1 = arith.constant 0 : i32
    return %c0_i32, %c0_i32_0 : i32, i32
  }
  func.func @transform_7(%arg0: i32) -> (i32, i32) {
    %c0_i32 = arith.constant 0 : i32
    %c0_i32_0 = arith.constant 0 : i32
    %c0_i32_1 = arith.constant 0 : i32
    return %c0_i32, %c0_i32_0 : i32, i32
  }
  func.func @transform_8(%arg0: i32) -> (i32, i32) {
    %c0_i32 = arith.constant 0 : i32
    %c0_i32_0 = arith.constant 0 : i32
    %c0_i32_1 = arith.constant 0 : i32
    return %c0_i32, %c0_i32_0 : i32, i32
  }
  func.func @transform_9(%arg0: i32) -> (i32, i32) {
    %c0_i32 = arith.constant 0 : i32
    %c0_i32_0 = arith.constant 0 : i32
    %c0_i32_1 = arith.constant 0 : i32
    return %c0_i32, %c0_i32_0 : i32, i32
  }
  func.func @transform_10(%arg0: i32) -> (i32, i32) {
    %c0_i32 = arith.constant 0 : i32
    %c0_i32_0 = arith.constant 0 : i32
    %c0_i32_1 = arith.constant 0 : i32
    return %c0_i32, %c0_i32_0 : i32, i32
  }
  func.func @transform_11(%arg0: i32) -> (i32, i32) {
    %c0_i32 = arith.constant 0 : i32
    %c0_i32_0 = arith.constant 0 : i32
    %c0_i32_1 = arith.constant 0 : i32
    return %c0_i32, %c0_i32_0 : i32, i32
  }
  func.func @transform_12(%arg0: i32) -> (i32, i32) {
    %c0_i32 = arith.constant 0 : i32
    %c0_i32_0 = arith.constant 0 : i32
    %c0_i32_1 = arith.constant 0 : i32
    return %c0_i32, %c0_i32_0 : i32, i32
  }
  func.func @transform_13(%arg0: i32) -> (i32, i32) {
    %c0_i32 = arith.constant 0 : i32
    %c0_i32_0 = arith.constant 0 : i32
    %c0_i32_1 = arith.constant 0 : i32
    return %c0_i32, %c0_i32_0 : i32, i32
  }
  func.func @transform_14(%arg0: i32) -> (i32, i32) {
    %c0_i32 = arith.constant 0 : i32
    %c0_i32_0 = arith.constant 0 : i32
    %c0_i32_1 = arith.constant 0 : i32
    return %c0_i32, %c0_i32_0 : i32, i32
  }
  func.func @transform_15(%arg0: i32) -> (i32, i32) {
    %c0_i32 = arith.constant 0 : i32
    %c0_i32_0 = arith.constant 0 : i32
    %c0_i32_1 = arith.constant 0 : i32
    return %c0_i32, %c0_i32_0 : i32, i32
  }
  func.func @transform_16(%arg0: i32) -> (i32, i32) {
    %c0_i32 = arith.constant 0 : i32
    %c0_i32_0 = arith.constant 0 : i32
    %c0_i32_1 = arith.constant 0 : i32
    return %c0_i32, %c0_i32_0 : i32, i32
  }
  func.func @transform_17(%arg0: i32) -> (i32, i32) {
    %c0_i32 = arith.constant 0 : i32
    %c0_i32_0 = arith.constant 0 : i32
    %c0_i32_1 = arith.constant 0 : i32
    return %c0_i32, %c0_i32_0 : i32, i32
  }
  func.func @transform_18(%arg0: i32) -> (i32, i32) {
    %c0_i32 = arith.constant 0 : i32
    %c0_i32_0 = arith.constant 0 : i32
    %c0_i32_1 = arith.constant 0 : i32
    return %c0_i32, %c0_i32_0 : i32, i32
  }
  func.func @transform_19(%arg0: i32) -> (i32, i32, i32) {
    %c0_i32 = arith.constant 0 : i32
    %c0_i32_0 = arith.constant 0 : i32
    %c0_i32_1 = arith.constant 0 : i32
    return %arg0, %c0_i32, %c0_i32_0 : i32, i32, i32
  }
}

</mosaic_0001>

<bundles_post_ra>
// kernel: lenet_forward.1
= control target key start
LH: loop header
LB: loop body
LE: loop exit
PB: predicated region body
PF: predicated region fallthrough
CT: control target
= control target key end

     0   :  { %s5472_s0 = inlined_call_operand.vmem [shape: f32[2,96,32], index: 0, kind: input, shape index: {}]   ;;  %s5473_s1 = inlined_call_operand.vmem [shape: f32[480,168], index: 1, kind: input, shape index: {}]   ;;  %s5474_s2 = inlined_call_operand.vmem [shape: f32[1,168], index: 2, kind: input, shape index: {}]   ;;  %s5475_s3 = inlined_call_operand.vmem [shape: f32[14,28], index: 3, kind: input, shape index: {}]   ;;  %s5476_s4 = inlined_call_operand.vmem [shape: f32[14,28], index: 4, kind: input, shape index: {}]   ;;  %s5477_s5 = inlined_call_operand.vmem [shape: f32[168,96], index: 5, kind: input, shape index: {}]   ;;  %s5478_s6 = inlined_call_operand.vmem [shape: f32[168,96], index: 6, kind: input, shape index: {}]   ;;  %s5479_s7 = inlined_call_operand.vmem [shape: f32[480,160], index: 7, kind: input, shape index: {}]   ;;  %s5480_s8 = inlined_call_operand.vmem [shape: f32[1,160], index: 8, kind: input, shape index: {}]   ;;  %s5481_s9 = inlined_call_operand.vmem [shape: f32[5,10], index: 9, kind: input, shape index: {}]   ;;  %s5482_s10 = inlined_call_operand.vmem [shape: f32[5,10], index: 10, kind: input, shape index: {}]   ;;  %s5483_s11 = inlined_call_operand.vmem [shape: f32[160,128], index: 11, kind: input, shape index: {}]   ;;  %s5484_s12 = inlined_call_operand.vmem [shape: f32[160,128], index: 12, kind: input, shape index: {}]   ;;  %s5485_s13 = inlined_call_operand.vmem [shape: f32[640,120], index: 13, kind: input, shape index: {}]   ;;  %s5486_s14 = inlined_call_operand.vmem [shape: f32[1,120], index: 14, kind: input, shape index: {}]   ;;  %s5487_s15 = inlined_call_operand.vmem [shape: f32[120,84], index: 15, kind: input, shape index: {}]   ;;  %s5488_s16 = inlined_call_operand.vmem [shape: f32[1,84], index: 16, kind: input, shape index: {}]   ;;  %s5489_s17 = inlined_call_operand.vmem [shape: f32[84,10], index: 17, kind: input, shape index: {}]   ;;  %s5490_s18 = inlined_call_operand.vmem [shape: f32[1,10], index: 18, kind: input, shape index: {}]   ;;  %s5491_s19 = inlined_call_operand.hbm [shape: f32[2,1,10], index: 19, kind: output, shape index: {}]  }
   0x1   :  { %5502 = sst [smem:[#allocation21_spill]] %s5472_s0 }
   0x2   :  { %5503 = sst [smem:[#allocation22_spill]] %s5473_s1 }
   0x3   :  { %5504 = sst [smem:[#allocation23_spill]] %s5474_s2 }
   0x4   :  { %5505 = sst [smem:[#allocation24_spill]] %s5475_s3 }
   0x5   :  { %5506 = sst [smem:[#allocation25_spill]] %s5476_s4 }
   0x6   :  { %5507 = sst [smem:[#allocation26_spill]] %s5477_s5 }
   0x7   :  { %5508 = sst [smem:[#allocation27_spill]] %s5478_s6 }
   0x8   :  { %24 = vsyncpa [#allocation5], 0 }
   0x9   :  { %26 = vsyncpa [#allocation5 + $0x1], 0  ;;  %s3697_s0 = smov 0   ;;  %s3699_s30 = smov 0  }
   0xa   :  { %s3701_s20 = smov 0   ;;  %s3703_s21 = smov 0  }
   0xb LB: > { %5509 = sst [smem:[#allocation7_spill]] %s3583_s0  ;;  %s3718_s1 = sadd.s32 4294967295, %s3595_s21   ;;  %s3595_s21 = sphi %s3703_s21, %s5543_s21   ;;  %s3591_s20 = sphi %s3701_s20, %s5545_s20   ;;  %s3587_s30 = sphi %s3699_s30, %s5547_s30   ;;  %s3583_s0 = sphi %s3697_s0, %s5546_s0  }
   0xc   : > { %5510 = sst [smem:[#allocation8_spill]] %s3591_s20  ;;  %s3261_s22 = sadd.s32 4294967294, %s3595_s21  }
   0xd   : > { %5511 = sst [smem:[#allocation9_spill]] %s3595_s21  ;;  %s3722_s2 = sadd.s32 1, %s3595_s21  }
   0xe   : > { %5512 = sst [smem:[#allocation10_spill]] %s3722_s2  ;;  %s443_s23 = sadd.s32 1, %s3591_s20 }
   0xf   : > { %s440_s24 = ssub.s32 %s3595_s21, %s3722_s2  ;;  %p453_p0 = scmp.ne.s32.totalorder %s3591_s20, %s3587_s30 }
  0x10   : > { %p441_p1 = scmp.eq.s32.totalorder %s440_s24, 0  ;;  %p454_p2 = scmp.eq.s32.totalorder %s3718_s1, 1 }
  0x11   : > { %p459_p3 = scmp.ne.s32.totalorder %s3587_s30, %s3583_s0  ;;  %p460_p4 = scmp.eq.s32.totalorder %s3261_s22, 1 }
  0x12   : > { %s3733_s25 = scalar_select %p441_p1, %s3591_s20, %s443_s23  }
  0x13   : > { %p3735_p5 = por %p454_p2, %p453_p0  ;;  %p3739_p6 = por %p460_p4, %p459_p3 }
  0x14   : > { %5513 = sst [smem:[#allocation11_spill]] %s3733_s25  ;;  %p3264_p7 = scmp.ge.s32.totalorder %s3595_s21, 1 }
  0x15   : > { %s5514_s3 = scalar_select %p3735_p5, 1, 0 }
  0x16   : > { %s5516_s26 = scalar_select %p3739_p6, 1, 0 }
  0x17   : > { %5515 = sst [smem:[#allocation12_spill]] %s5514_s3  ;;  %p540_p8 = scmp.lt.s32.totalorder %s3595_s21, 3 }
  0x18   : > { %5517 = sst [smem:[#allocation13_spill]] %s5516_s26 }
  0x19   : > { %p541_p9 = pnand %p3264_p7, %p540_p8 }
  0x1b   : > { %544 = sbr.rel (%p541_p9) target bundleno = 1688 (0x698), region = 96 }
  0x20   : > { %s5518_s29 = sld [smem:[#allocation22_spill]]  ;;  %p595_p10 = scmp.lt.s32.totalorder %s3718_s1, 1  ;;  %vm624_vm0 = vcmask 261120   ;;  %vm1998_vm1 = vcmask 1043456   ;;  %vm1991_vm2 = vcmask 228352   ;;  %vm2130_vm3 = vcmask 326656  }
  0x21   : > { %s5519_s24 = sld [smem:[#allocation21_spill]]  ;;  %vm2252_vm4 = vcmask 785408   ;;  %vm2254_vm5 = vcmask 783360   ;;  %vm2693_vm6 = vcmask 1041408   ;;  %vm2689_vm7 = vcmask 80896   ;;  %s593_s23 = sand.u32 1, %s3587_s30  }
  0x22   : > { %s596_s26 = scalar_select %p595_p10, %s3718_s1, 1  ;;  %vm3123_vm8 = vcmask 982016   ;;  %vm3164_vm9 = vcmask 687104   ;;  %vm3191_vm10 = vcmask 73728  }
  0x23   : > { %s5535_s5 = sld [smem:[#allocation26_spill]]  ;;  %s3194_s25 = scalar_lea.sflag [#allocation5], %s593_s23 }
  0x24   : > { %s3437_s27 = smul.u32 96, %s596_s26  ;;  %s5534_s26 = sld [smem:[#allocation23_spill]] }
  0x25   : > { %s5536_s22 = sld [smem:[#allocation24_spill]] }
  0x26   : > { %v622_v0 = vld [vmem:[%s5518_s29 + $0x70] sm:$0xff]  ;;  %v623_v1 = vld [vmem:[%s5518_s29 + $0x78] sm:$0xff]  ;;  %v620_v4 = vld [vmem:[%s5518_s29 + $0x60] sm:$0xff]  ;;  %s5537_s6 = sld [smem:[#allocation27_spill]] }
  0x27   : > { %v610_v2 = vld [vmem:[%s5518_s29 + $0x30] sm:$0xff]  ;;  %649 = vmatpush.msra.mxu0 %v622_v0  ;;  %678 = vmatpush.msra.mxu1 %v623_v1  ;;  %v611_v3 = vld [vmem:[%s5518_s29 + $0x38] sm:$0xff]  ;;  %v621_v5 = vld [vmem:[%s5518_s29 + $0x68] sm:$0xff]  ;;  %s3798_s3 = scalar_lea.vmem %s5519_s24, %s3437_s27  ;;  %s5538_s4 = sld [smem:[#allocation25_spill]] }
  0x28   : > { %719 = vmatpush.msra.mxu2 %v610_v2  ;;  %748 = vmatpush.msra.mxu3 %v611_v3  ;;  %v608_v6 = vld [vmem:[%s5518_s29 + $0x20] sm:$0xff]  ;;  %v609_v7 = vld [vmem:[%s5518_s29 + $0x28] sm:$0xff]  ;;  %v618_v8 = vld [vmem:[%s5518_s29 + $0x50] sm:$0xff]  ;;  %s594_s27 = scalar_lea.vmem [#allocation4], %s593_s23  ;;  %s3553_s24 = scalar_lea.hbm %s5491_s19, 2 }
  0x29   : > { %650 = vmatpush.msra.mxu0 %v620_v4  ;;  %679 = vmatpush.msra.mxu1 %v621_v5  ;;  %v619_v9 = vld [vmem:[%s5518_s29 + $0x58] sm:$0xff]  ;;  %v606_v10 = vld [vmem:[%s5518_s29 + $0x10] sm:$0xff]  ;;  %v616_v12 = vld [vmem:[%s5518_s29 + $0x40] sm:$0xff]  ;;  %s3204_s21 = sshll.u32 %s594_s27, 4  ;;  %s3205_s21 = int_to_ptr.vmem [resolvable:$true] %s3204_s21 }
  0x2a   : > { %v607_v11 = vld [vmem:[%s5518_s29 + $0x18] sm:$0xff]  ;;  %720 = vmatpush.msra.mxu2 %v608_v6  ;;  %749 = vmatpush.msra.mxu3 %v609_v7  ;;  %v617_v13 = vld [vmem:[%s5518_s29 + $0x48] sm:$0xff]  ;;  %v604_v14 = vld [vmem:[%s5518_s29] sm:$0xff] }
  0x2b   : > { %651 = vmatpush.msra.mxu0 %v618_v8  ;;  %680 = vmatpush.msra.mxu1 %v619_v9  ;;  %v605_v15 = vld [vmem:[%s5518_s29 + $0x8] sm:$0xff]  ;;  %v600_v17 = vld [vmem:[%s3798_s3] sm:$0xff]  ;;  %v775_v18 = vld [vmem:[%s5518_s29 + $0xb0] sm:$0xff] }
  0x2c   : > { %721 = vmatpush.msra.mxu2 %v606_v10  ;;  %750 = vmatpush.msra.mxu3 %v607_v11  ;;  %v612_v16 = vld [vmem:[%s3798_s3 + $0x1] sm:$0xff]  ;;  %v776_v19 = vld [vmem:[%s5518_s29 + $0xb8] sm:$0xff]  ;;  %v865_v20 = vld [vmem:[%s5518_s29 + $0xf0] sm:$0xff] }
  0x2d   : > { %652 = vmatpush.msra.mxu0 %v616_v12  ;;  %681 = vmatpush.msra.mxu1 %v617_v13  ;;  %v866_v21 = vld [vmem:[%s5518_s29 + $0xf8] sm:$0xff]  ;;  %v773_v22 = vld [vmem:[%s5518_s29 + $0xa0] sm:$0xff]  ;;  %v774_v23 = vld [vmem:[%s5518_s29 + $0xa8] sm:$0xff] }
  0x2e   : > { %722 = vmatpush.msra.mxu2 %v604_v14  ;;  %751 = vmatpush.msra.mxu3 %v605_v15  ;;  %v863_v24 = vld [vmem:[%s5518_s29 + $0xe0] sm:$0xff]  ;;  %v864_v25 = vld [vmem:[%s5518_s29 + $0xe8] sm:$0xff]  ;;  %v771_v26 = vld [vmem:[%s5518_s29 + $0x90] sm:$0xff] }
  0x2f   : > { %3266 = vmatmul.msk.f32.vlgmr.msra.gmra.mxu0 %vm624_vm0, %v612_v16  ;;  %3270 = vmatmul.msk.f32.vlgmr.msra.gmra.mxu1 %vm624_vm0, %v612_v16  ;;  %v772_v27 = vld [vmem:[%s5518_s29 + $0x98] sm:$0xff]  ;;  %v861_v28 = vld [vmem:[%s5518_s29 + $0xd0] sm:$0xff]  ;;  %v601_v31 = vld [vmem:[%s3798_s3 + $0x8] sm:$0xff] }
  0x30   : > { %3274 = vmatmul.msk.f32.vlgmr.msra.gmra.mxu2 %vm624_vm0, %v600_v17  ;;  %3278 = vmatmul.msk.f32.vlgmr.msra.gmra.mxu3 %vm624_vm0, %v600_v17  ;;  %v862_v29 = vld [vmem:[%s5518_s29 + $0xd8] sm:$0xff]  ;;  %v613_v30 = vld [vmem:[%s3798_s3 + $0x9] sm:$0xff]  ;;  %v769_v32 = vld [vmem:[%s5518_s29 + $0x80] sm:$0xff] }
  0x31   : > { %801 = vmatpush.msrb.mxu0 %v775_v18  ;;  %830 = vmatpush.msrb.mxu1 %v776_v19  ;;  %v770_v33 = vld [vmem:[%s5518_s29 + $0x88] sm:$0xff]  ;;  %v859_v34 = vld [vmem:[%s5518_s29 + $0xc0] sm:$0xff]  ;;  %v614_v36 = vld [vmem:[%s3798_s3 + $0x11] sm:$0xff] }
  0x32   : > { %891 = vmatpush.msrb.mxu2 %v865_v20  ;;  %920 = vmatpush.msrb.mxu3 %v866_v21  ;;  %v860_v35 = vld [vmem:[%s5518_s29 + $0xc8] sm:$0xff]  ;;  %v602_v37 = vld [vmem:[%s3798_s3 + $0x10] sm:$0xff]  ;;  %v615_v38 = vld [vmem:[%s3798_s3 + $0x19] sm:$0xf] }
  0x33   : > { %802 = vmatpush.msrb.mxu0 %v773_v22  ;;  %831 = vmatpush.msrb.mxu1 %v774_v23  ;;  %v603_v39 = vld [vmem:[%s3798_s3 + $0x18] sm:$0xf]  ;;  %v955_v40 = vld [vmem:[%s5518_s29 + $0x130] sm:$0xff]  ;;  %v953_v44 = vld [vmem:[%s5518_s29 + $0x120] sm:$0xff] }
  0x34   : > { %892 = vmatpush.msrb.mxu2 %v863_v24  ;;  %921 = vmatpush.msrb.mxu3 %v864_v25  ;;  %v956_v41 = vld [vmem:[%s5518_s29 + $0x138] sm:$0xff]  ;;  %v1045_v42 = vld [vmem:[%s5518_s29 + $0x170] sm:$0xff]  ;;  %v954_v45 = vld [vmem:[%s5518_s29 + $0x128] sm:$0xff] }
  0x35   : > { %803 = vmatpush.msrb.mxu0 %v771_v26  ;;  %832 = vmatpush.msrb.mxu1 %v772_v27  ;;  %v1046_v43 = vld [vmem:[%s5518_s29 + $0x178] sm:$0xff]  ;;  %v1043_v46 = vld [vmem:[%s5518_s29 + $0x160] sm:$0xff]  ;;  %v1044_v47 = vld [vmem:[%s5518_s29 + $0x168] sm:$0xff] }
  0x36   : > { %893 = vmatpush.msrb.mxu2 %v861_v28  ;;  %922 = vmatpush.msrb.mxu3 %v862_v29  ;;  %v951_v48 = vld [vmem:[%s5518_s29 + $0x110] sm:$0xff]  ;;  %v952_v49 = vld [vmem:[%s5518_s29 + $0x118] sm:$0xff]  ;;  %v765_v52 = vld [vmem:[%s3798_s3 + $0x2] sm:$0xff] }
  0x37   : > { %3267 = vmatmul.msk.f32.gmra.mxu0 %vm624_vm0, %v613_v30  ;;  %3271 = vmatmul.msk.f32.gmra.mxu1 %vm624_vm0, %v613_v30  ;;  %v1041_v50 = vld [vmem:[%s5518_s29 + $0x150] sm:$0xff]  ;;  %v1042_v51 = vld [vmem:[%s5518_s29 + $0x158] sm:$0xff]  ;;  %v855_v53 = vld [vmem:[%s3798_s3 + $0x3] sm:$0xff] }
  0x38   : > { %3275 = vmatmul.msk.f32.gmra.mxu2 %vm624_vm0, %v601_v31  ;;  %3279 = vmatmul.msk.f32.gmra.mxu3 %vm624_vm0, %v601_v31  ;;  %v949_v54 = vld [vmem:[%s5518_s29 + $0x100] sm:$0xff]  ;;  %v950_v55 = vld [vmem:[%s5518_s29 + $0x108] sm:$0xff]  ;;  %v767_v60 = vld [vmem:[%s3798_s3 + $0x12] sm:$0xff] }
  0x39   : > { %804 = vmatpush.msrb.mxu0 %v769_v32  ;;  %833 = vmatpush.msrb.mxu1 %v770_v33  ;;  %v1039_v56 = vld [vmem:[%s5518_s29 + $0x140] sm:$0xff]  ;;  %v1040_v57 = vld [vmem:[%s5518_s29 + $0x148] sm:$0xff]  ;;  %v857_v61 = vld [vmem:[%s3798_s3 + $0x13] sm:$0xff] }
  0x3a   : > { %894 = vmatpush.msrb.mxu2 %v859_v34  ;;  %923 = vmatpush.msrb.mxu3 %v860_v35  ;;  %v766_v58 = vld [vmem:[%s3798_s3 + $0xa] sm:$0xff]  ;;  %v768_v62 = vld [vmem:[%s3798_s3 + $0x1a] sm:$0xf]  ;;  %v1133_v4 = vld [vmem:[%s5518_s29 + $0x1a0] sm:$0xff] }
  0x3b   : > { %981 = vmatpush.msra.mxu0 %v955_v40  ;;  %1010 = vmatpush.msra.mxu1 %v956_v41  ;;  %v856_v59 = vld [vmem:[%s3798_s3 + $0xb] sm:$0xff]  ;;  %v858_v63 = vld [vmem:[%s3798_s3 + $0x1b] sm:$0xf]  ;;  %v1223_v6 = vld [vmem:[%s5518_s29 + $0x1e0] sm:$0xff] }
  0x3c   : > { %1071 = vmatpush.msra.mxu2 %v1045_v42  ;;  %1100 = vmatpush.msra.mxu3 %v1046_v43  ;;  %v1135_v0 = vld [vmem:[%s5518_s29 + $0x1b0] sm:$0xff]  ;;  %v1136_v1 = vld [vmem:[%s5518_s29 + $0x1b8] sm:$0xff]  ;;  %v1134_v5 = vld [vmem:[%s5518_s29 + $0x1a8] sm:$0xff] }
  0x3d   : > { %982 = vmatpush.msra.mxu0 %v953_v44  ;;  %1011 = vmatpush.msra.mxu1 %v954_v45  ;;  %v1225_v2 = vld [vmem:[%s5518_s29 + $0x1f0] sm:$0xff]  ;;  %v1226_v3 = vld [vmem:[%s5518_s29 + $0x1f8] sm:$0xff]  ;;  %v1224_v7 = vld [vmem:[%s5518_s29 + $0x1e8] sm:$0xff] }
  0x3e   : > { %1072 = vmatpush.msra.mxu2 %v1043_v46  ;;  %1101 = vmatpush.msra.mxu3 %v1044_v47  ;;  %v1131_v8 = vld [vmem:[%s5518_s29 + $0x190] sm:$0xff]  ;;  %v1132_v9 = vld [vmem:[%s5518_s29 + $0x198] sm:$0xff]  ;;  %v945_v12 = vld [vmem:[%s3798_s3 + $0x4] sm:$0xff] }
  0x3f   : > { %3268 = vmatmul.msk.f32.gmra.mxu0 %vm624_vm0, %v614_v36  ;;  %3272 = vmatmul.msk.f32.gmra.mxu1 %vm624_vm0, %v614_v36  ;;  %v1221_v10 = vld [vmem:[%s5518_s29 + $0x1d0] sm:$0xff]  ;;  %v1222_v11 = vld [vmem:[%s5518_s29 + $0x1d8] sm:$0xff]  ;;  %v1035_v13 = vld [vmem:[%s3798_s3 + $0x20] sm:$0xff] }
  0x40   : > { %3276 = vmatmul.msk.f32.gmra.mxu2 %vm624_vm0, %v602_v37  ;;  %3280 = vmatmul.msk.f32.gmra.mxu3 %vm624_vm0, %v602_v37  ;;  %v1129_v14 = vld [vmem:[%s5518_s29 + $0x180] sm:$0xff]  ;;  %v1130_v15 = vld [vmem:[%s5518_s29 + $0x188] sm:$0xff]  ;;  %v947_v20 = vld [vmem:[%s3798_s3 + $0x14] sm:$0xff] }
  0x41   : > { %983 = vmatpush.msra.mxu0 %v951_v48  ;;  %1012 = vmatpush.msra.mxu1 %v952_v49  ;;  %v1219_v16 = vld [vmem:[%s5518_s29 + $0x1c0] sm:$0xff]  ;;  %v1220_v17 = vld [vmem:[%s5518_s29 + $0x1c8] sm:$0xff]  ;;  %v1037_v21 = vld [vmem:[%s3798_s3 + $0x30] sm:$0xff] }
  0x42   : > { %1073 = vmatpush.msra.mxu2 %v1041_v50  ;;  %1102 = vmatpush.msra.mxu3 %v1042_v51  ;;  %v946_v18 = vld [vmem:[%s3798_s3 + $0xc] sm:$0xff]  ;;  %v948_v22 = vld [vmem:[%s3798_s3 + $0x1c] sm:$0xf]  ;;  %v1038_v23 = vld [vmem:[%s3798_s3 + $0x38] sm:$0xf] }
  0x43   : > { %984 = vmatpush.msra.mxu0 %v949_v54  ;;  %1013 = vmatpush.msra.mxu1 %v950_v55  ;;  %v1036_v19 = vld [vmem:[%s3798_s3 + $0x28] sm:$0xff]  ;;  %v1315_v24 = vld [vmem:[%s5518_s29 + $0x230] sm:$0xff]  ;;  %v1316_v25 = vld [vmem:[%s5518_s29 + $0x238] sm:$0xff] }
  0x44   : > { %1074 = vmatpush.msra.mxu2 %v1039_v56  ;;  %1103 = vmatpush.msra.mxu3 %v1040_v57  ;;  %v1405_v26 = vld [vmem:[%s5518_s29 + $0x270] sm:$0xff]  ;;  %v1406_v27 = vld [vmem:[%s5518_s29 + $0x278] sm:$0xff]  ;;  %v1313_v28 = vld [vmem:[%s5518_s29 + $0x220] sm:$0xff] }
  0x45   : > { %v1314_v29 = vld [vmem:[%s5518_s29 + $0x228] sm:$0xff]  ;;  %v1403_v30 = vld [vmem:[%s5518_s29 + $0x260] sm:$0xff]  ;;  %v1311_v33 = vld [vmem:[%s5518_s29 + $0x210] sm:$0xff] }
  0x46   : > { %v1404_v31 = vld [vmem:[%s5518_s29 + $0x268] sm:$0xff]  ;;  %v1312_v34 = vld [vmem:[%s5518_s29 + $0x218] sm:$0xff]  ;;  %v1401_v35 = vld [vmem:[%s5518_s29 + $0x250] sm:$0xff] }
  0x47   : > { %3269 = vmatmul.msk.f32.gmra.mxu0 %vm624_vm0, %v615_v38  ;;  %3273 = vmatmul.msk.f32.gmra.mxu1 %vm624_vm0, %v615_v38  ;;  %v1125_v32 = vld [vmem:[%s3798_s3 + $0x21] sm:$0xff]  ;;  %v1402_v37 = vld [vmem:[%s5518_s29 + $0x258] sm:$0xff]  ;;  %v1126_v42 = vld [vmem:[%s3798_s3 + $0x29] sm:$0xff] }
  0x48   : > { %3277 = vmatmul.msk.f32.gmra.mxu2 %vm624_vm0, %v603_v39  ;;  %3281 = vmatmul.msk.f32.gmra.mxu3 %vm624_vm0, %v603_v39  ;;  %v1215_v36 = vld [vmem:[%s3798_s3 + $0x22] sm:$0xff]  ;;  %v1216_v43 = vld [vmem:[%s3798_s3 + $0x2a] sm:$0xff]  ;;  %v1217_v45 = vld [vmem:[%s3798_s3 + $0x32] sm:$0xff] }
  0x49   : > { %v1309_v38 = vld [vmem:[%s5518_s29 + $0x200] sm:$0xff]  ;;  %v1310_v39 = vld [vmem:[%s5518_s29 + $0x208] sm:$0xff]  ;;  %v1127_v44 = vld [vmem:[%s3798_s3 + $0x31] sm:$0xff] }
  0x4a   : > { %v1399_v40 = vld [vmem:[%s5518_s29 + $0x240] sm:$0xff]  ;;  %v1400_v41 = vld [vmem:[%s5518_s29 + $0x248] sm:$0xff]  ;;  %v1128_v46 = vld [vmem:[%s3798_s3 + $0x39] sm:$0xf] }
  0x4b   : > { %v1218_v47 = vld [vmem:[%s3798_s3 + $0x3a] sm:$0xf]  ;;  %v1495_v48 = vld [vmem:[%s5518_s29 + $0x2b0] sm:$0xff]  ;;  %v1583_v54 = vld [vmem:[%s5518_s29 + $0x2e0] sm:$0xff] }
  0x4c   : > { %v1496_v49 = vld [vmem:[%s5518_s29 + $0x2b8] sm:$0xff]  ;;  %v1585_v50 = vld [vmem:[%s5518_s29 + $0x2f0] sm:$0xff]  ;;  %v1305_v55 = vld [vmem:[%s3798_s3 + $0x23] sm:$0xff] }
  0x4d   : > { %v1586_v51 = vld [vmem:[%s5518_s29 + $0x2f8] sm:$0xff]  ;;  %v1584_v56 = vld [vmem:[%s5518_s29 + $0x2e8] sm:$0xff] }
  0x4f   : > { %3282 = vmatmul.msk.f32.vlgmr.msrb.gmra.mxu0 %vm624_vm0, %v765_v52  ;;  %3286 = vmatmul.msk.f32.vlgmr.msrb.gmra.mxu1 %vm624_vm0, %v765_v52  ;;  %v1493_v52 = vld [vmem:[%s5518_s29 + $0x2a0] sm:$0xff] }
  0x50   : > { %3290 = vmatmul.msk.f32.vlgmr.msrb.gmra.mxu2 %vm624_vm0, %v855_v53  ;;  %3294 = vmatmul.msk.f32.vlgmr.msrb.gmra.mxu3 %vm624_vm0, %v855_v53  ;;  %v1494_v53 = vld [vmem:[%s5518_s29 + $0x2a8] sm:$0xff] }
  0x51   : > { %1161 = vmatpush.msrb.mxu0 %v1135_v0  ;;  %1190 = vmatpush.msrb.mxu1 %v1136_v1  ;;  %v1489_v0 = vld [vmem:[%s5518_s29 + $0x280] sm:$0xff]  ;;  %v1490_v1 = vld [vmem:[%s5518_s29 + $0x288] sm:$0xff] }
  0x52   : > { %1251 = vmatpush.msrb.mxu2 %v1225_v2  ;;  %1280 = vmatpush.msrb.mxu3 %v1226_v3  ;;  %v1579_v2 = vld [vmem:[%s5518_s29 + $0x2c0] sm:$0xff]  ;;  %v1580_v3 = vld [vmem:[%s5518_s29 + $0x2c8] sm:$0xff] }
  0x53   : > { %1162 = vmatpush.msrb.mxu0 %v1133_v4  ;;  %1191 = vmatpush.msrb.mxu1 %v1134_v5 }
  0x54   : > { %1252 = vmatpush.msrb.mxu2 %v1223_v6  ;;  %1281 = vmatpush.msrb.mxu3 %v1224_v7 }
  0x55   : > { %1163 = vmatpush.msrb.mxu0 %v1131_v8  ;;  %1192 = vmatpush.msrb.mxu1 %v1132_v9 }
  0x56   : > { %1253 = vmatpush.msrb.mxu2 %v1221_v10  ;;  %1282 = vmatpush.msrb.mxu3 %v1222_v11  ;;  %v1306_v10 = vld [vmem:[%s3798_s3 + $0x2b] sm:$0xff] }
  0x57   : > { %3283 = vmatmul.msk.f32.gmra.mxu0 %vm624_vm0, %v766_v58  ;;  %3287 = vmatmul.msk.f32.gmra.mxu1 %vm624_vm0, %v766_v58  ;;  %v1396_v11 = vld [vmem:[%s3798_s3 + $0x2c] sm:$0xff] }
  0x58   : > { %3291 = vmatmul.msk.f32.gmra.mxu2 %vm624_vm0, %v856_v59  ;;  %3295 = vmatmul.msk.f32.gmra.mxu3 %vm624_vm0, %v856_v59  ;;  %v1491_v59 = vld [vmem:[%s5518_s29 + $0x290] sm:$0xff] }
  0x59   : > { %1164 = vmatpush.msrb.mxu0 %v1129_v14  ;;  %1193 = vmatpush.msrb.mxu1 %v1130_v15 }
  0x5a   : > { %1254 = vmatpush.msrb.mxu2 %v1219_v16  ;;  %1283 = vmatpush.msrb.mxu3 %v1220_v17 }
  0x5f   : > { %3284 = vmatmul.msk.f32.gmra.mxu0 %vm624_vm0, %v767_v60  ;;  %3288 = vmatmul.msk.f32.gmra.mxu1 %vm624_vm0, %v767_v60  ;;  %v1492_v60 = vld [vmem:[%s5518_s29 + $0x298] sm:$0xff] }
  0x60   : > { %3292 = vmatmul.msk.f32.gmra.mxu2 %vm624_vm0, %v857_v61  ;;  %3296 = vmatmul.msk.f32.gmra.mxu3 %vm624_vm0, %v857_v61  ;;  %v1581_v61 = vld [vmem:[%s5518_s29 + $0x2d0] sm:$0xff] }
  0x67   : > { %3285 = vmatmul.msk.f32.gmra.mxu0 %vm624_vm0, %v768_v62  ;;  %3289 = vmatmul.msk.f32.gmra.mxu1 %vm624_vm0, %v768_v62  ;;  %v1395_v62 = vld [vmem:[%s3798_s3 + $0x24] sm:$0xff] }
  0x68   : > { %3293 = vmatmul.msk.f32.gmra.mxu2 %vm624_vm0, %v858_v63  ;;  %3297 = vmatmul.msk.f32.gmra.mxu3 %vm624_vm0, %v858_v63  ;;  %v1582_v63 = vld [vmem:[%s5518_s29 + $0x2d8] sm:$0xff] }
  0x6f   : > { %3298 = vmatmul.msk.f32.vlgmr.msra.gmra.mxu0 %vm624_vm0, %v945_v12  ;;  %3302 = vmatmul.msk.f32.vlgmr.msra.gmra.mxu1 %vm624_vm0, %v945_v12 }
  0x70   : > { %3306 = vmatmul.msk.f32.vlgmr.msra.gmra.mxu2 %vm624_vm0, %v1035_v13  ;;  %3310 = vmatmul.msk.f32.vlgmr.msra.gmra.mxu3 %vm624_vm0, %v1035_v13 }
  0x71   : > { %1341 = vmatpush.msra.mxu0 %v1315_v24  ;;  %1370 = vmatpush.msra.mxu1 %v1316_v25 }
  0x72   : > { %1431 = vmatpush.msra.mxu2 %v1405_v26  ;;  %1460 = vmatpush.msra.mxu3 %v1406_v27  ;;  %v1308_v26 = vld [vmem:[%s3798_s3 + $0x3b] sm:$0xf] }
  0x73   : > { %1342 = vmatpush.msra.mxu0 %v1313_v28  ;;  %1371 = vmatpush.msra.mxu1 %v1314_v29  ;;  %v1398_v27 = vld [vmem:[%s3798_s3 + $0x3c] sm:$0xf]  ;;  %v1675_v28 = vld [vmem:[%s5518_s29 + $0x330] sm:$0xff] }
  0x74   : > { %1432 = vmatpush.msra.mxu2 %v1403_v30  ;;  %1461 = vmatpush.msra.mxu3 %v1404_v31  ;;  %v1676_v29 = vld [vmem:[%s5518_s29 + $0x338] sm:$0xff]  ;;  %v1765_v30 = vld [vmem:[%s5518_s29 + $0x370] sm:$0xff] }
  0x75   : > { %1343 = vmatpush.msra.mxu0 %v1311_v33  ;;  %1372 = vmatpush.msra.mxu1 %v1312_v34  ;;  %v1766_v31 = vld [vmem:[%s5518_s29 + $0x378] sm:$0xff]  ;;  %v1674_v33 = vld [vmem:[%s5518_s29 + $0x328] sm:$0xff]  ;;  %v1763_v34 = vld [vmem:[%s5518_s29 + $0x360] sm:$0xff] }
  0x76   : > { %1433 = vmatpush.msra.mxu2 %v1401_v35  ;;  %1462 = vmatpush.msra.mxu3 %v1402_v37  ;;  %v1485_v37 = vld [vmem:[%s3798_s3 + $0x40] sm:$0xff] }
  0x77   : > { %3299 = vmatmul.msk.f32.gmra.mxu0 %vm624_vm0, %v946_v18  ;;  %3303 = vmatmul.msk.f32.gmra.mxu1 %vm624_vm0, %v946_v18  ;;  %v1307_v18 = vld [vmem:[%s3798_s3 + $0x33] sm:$0xff] }
  0x78   : > { %3307 = vmatmul.msk.f32.gmra.mxu2 %vm624_vm0, %v1036_v19  ;;  %3311 = vmatmul.msk.f32.gmra.mxu3 %vm624_vm0, %v1036_v19  ;;  %v1397_v19 = vld [vmem:[%s3798_s3 + $0x34] sm:$0xff] }
  0x79   : > { %1344 = vmatpush.msra.mxu0 %v1309_v38  ;;  %1373 = vmatpush.msra.mxu1 %v1310_v39  ;;  %v1764_v38 = vld [vmem:[%s5518_s29 + $0x368] sm:$0xff] }
  0x7a   : > { %1434 = vmatpush.msra.mxu2 %v1399_v40  ;;  %1463 = vmatpush.msra.mxu3 %v1400_v41 }
  0x7f   : > { %3300 = vmatmul.msk.f32.gmra.mxu0 %vm624_vm0, %v947_v20  ;;  %3304 = vmatmul.msk.f32.gmra.mxu1 %vm624_vm0, %v947_v20 }
  0x80   : > { %3308 = vmatmul.msk.f32.gmra.mxu2 %vm624_vm0, %v1037_v21  ;;  %3312 = vmatmul.msk.f32.gmra.mxu3 %vm624_vm0, %v1037_v21 }
  0x87   : > { %3301 = vmatmul.msk.f32.gmra.mxu0 %vm624_vm0, %v948_v22  ;;  %3305 = vmatmul.msk.f32.gmra.mxu1 %vm624_vm0, %v948_v22 }
  0x88   : > { %3309 = vmatmul.msk.f32.gmra.mxu2 %vm624_vm0, %v1038_v23  ;;  %3313 = vmatmul.msk.f32.gmra.mxu3 %vm624_vm0, %v1038_v23 }
  0x8f   : > { %3314 = vmatmul.msk.f32.vlgmr.msrb.gmra.mxu0 %vm624_vm0, %v1125_v32  ;;  %3318 = vmatmul.msk.f32.vlgmr.msrb.gmra.mxu1 %vm624_vm0, %v1125_v32  ;;  %v1673_v32 = vld [vmem:[%s5518_s29 + $0x320] sm:$0xff] }
  0x90   : > { %3322 = vmatmul.msk.f32.vlgmr.msrb.gmra.mxu2 %vm624_vm0, %v1215_v36  ;;  %3326 = vmatmul.msk.f32.vlgmr.msrb.gmra.mxu3 %vm624_vm0, %v1215_v36 }
  0x91   : > { %1521 = vmatpush.msrb.mxu0 %v1495_v48  ;;  %1550 = vmatpush.msrb.mxu1 %v1496_v49  ;;  %v1669_v48 = vld [vmem:[%s5518_s29 + $0x300] sm:$0xff]  ;;  %v1670_v49 = vld [vmem:[%s5518_s29 + $0x308] sm:$0xff] }
  0x92   : > { %1611 = vmatpush.msrb.mxu2 %v1585_v50  ;;  %1640 = vmatpush.msrb.mxu3 %v1586_v51  ;;  %v1759_v50 = vld [vmem:[%s5518_s29 + $0x340] sm:$0xff]  ;;  %v1760_v51 = vld [vmem:[%s5518_s29 + $0x348] sm:$0xff] }
  0x93   : > { %1522 = vmatpush.msrb.mxu0 %v1493_v52  ;;  %1551 = vmatpush.msrb.mxu1 %v1494_v53 }
  0x94   : > { %1612 = vmatpush.msrb.mxu2 %v1583_v54  ;;  %1641 = vmatpush.msrb.mxu3 %v1584_v56  ;;  %v1486_v56 = vld [vmem:[%s3798_s3 + $0x48] sm:$0xff] }
  0x95   : > { %1523 = vmatpush.msrb.mxu0 %v1491_v59  ;;  %1552 = vmatpush.msrb.mxu1 %v1492_v60 }
  0x96   : > { %1613 = vmatpush.msrb.mxu2 %v1581_v61  ;;  %1642 = vmatpush.msrb.mxu3 %v1582_v63  ;;  %v1577_v63 = vld [vmem:[%s3798_s3 + $0x51] sm:$0xff] }
  0x97   : > { %3315 = vmatmul.msk.f32.gmra.mxu0 %vm624_vm0, %v1126_v42  ;;  %3319 = vmatmul.msk.f32.gmra.mxu1 %vm624_vm0, %v1126_v42 }
  0x98   : > { %3323 = vmatmul.msk.f32.gmra.mxu2 %vm624_vm0, %v1216_v43  ;;  %3327 = vmatmul.msk.f32.gmra.mxu3 %vm624_vm0, %v1216_v43  ;;  %v1671_v43 = vld [vmem:[%s5518_s29 + $0x310] sm:$0xff] }
  0x99   : > { %1524 = vmatpush.msrb.mxu0 %v1489_v0  ;;  %1553 = vmatpush.msrb.mxu1 %v1490_v1 }
  0x9a   : > { %1614 = vmatpush.msrb.mxu2 %v1579_v2  ;;  %1643 = vmatpush.msrb.mxu3 %v1580_v3 }
  0x9f   : > { %3316 = vmatmul.msk.f32.gmra.mxu0 %vm624_vm0, %v1127_v44  ;;  %3320 = vmatmul.msk.f32.gmra.mxu1 %vm624_vm0, %v1127_v44  ;;  %v1672_v44 = vld [vmem:[%s5518_s29 + $0x318] sm:$0xff] }
  0xa0   : > { %3324 = vmatmul.msk.f32.gmra.mxu2 %vm624_vm0, %v1217_v45  ;;  %3328 = vmatmul.msk.f32.gmra.mxu3 %vm624_vm0, %v1217_v45  ;;  %v1761_v45 = vld [vmem:[%s5518_s29 + $0x350] sm:$0xff] }
  0xa7   : > { %3317 = vmatmul.msk.f32.gmra.mxu0 %vm624_vm0, %v1128_v46  ;;  %3321 = vmatmul.msk.f32.gmra.mxu1 %vm624_vm0, %v1128_v46  ;;  %v1575_v46 = vld [vmem:[%s3798_s3 + $0x41] sm:$0xff] }
  0xa8   : > { %3325 = vmatmul.msk.f32.gmra.mxu2 %vm624_vm0, %v1218_v47  ;;  %3329 = vmatmul.msk.f32.gmra.mxu3 %vm624_vm0, %v1218_v47  ;;  %v1762_v47 = vld [vmem:[%s5518_s29 + $0x358] sm:$0xff] }
  0xac   : > { %v654_v57 = vpop.f32.mrf.mxu0  ;;  %v683_v58 = vpop.f32.mrf.mxu1 }
  0xaf   : > { %3330 = vmatmul.msk.f32.vlgmr.msra.gmra.mxu0 %vm624_vm0, %v1305_v55  ;;  %3334 = vmatmul.msk.f32.vlgmr.msra.gmra.mxu1 %vm624_vm0, %v1305_v55 }
  0xb0   : > { %3338 = vmatmul.msk.f32.vlgmr.msra.gmra.mxu2 %vm624_vm0, %v1395_v62  ;;  %3342 = vmatmul.msk.f32.vlgmr.msra.gmra.mxu3 %vm624_vm0, %v1395_v62  ;;  %v1487_v62 = vld [vmem:[%s3798_s3 + $0x50] sm:$0xff] }
  0xb1   : > { %1701 = vmatpush.msra.mxu0 %v1675_v28  ;;  %1730 = vmatpush.msra.mxu1 %v1676_v29 }
  0xb2   : > { %1791 = vmatpush.msra.mxu2 %v1765_v30  ;;  %1820 = vmatpush.msra.mxu3 %v1766_v31  ;;  %v1666_v30 = vld [vmem:[%s3798_s3 + $0x4a] sm:$0xff] }
  0xb3   : > { %v724_v4 = vpop.f32.mrf.mxu2  ;;  %v753_v5 = vpop.f32.mrf.mxu3  ;;  %1702 = vmatpush.msra.mxu0 %v1673_v32  ;;  %1731 = vmatpush.msra.mxu1 %v1674_v33  ;;  %v1756_v31 = vld [vmem:[%s3798_s3 + $0x4b] sm:$0xff] }
  0xb4   : > { %v4142_v6 = vadd.f32 %v724_v4, %v654_v57  ;;  %v4144_v7 = vadd.f32 %v753_v5, %v683_v58  ;;  %v657_v8 = vpop.f32.mrf.mxu0  ;;  %v686_v9 = vpop.f32.mrf.mxu1  ;;  %1792 = vmatpush.msra.mxu2 %v1763_v34  ;;  %1821 = vmatpush.msra.mxu3 %v1764_v38  ;;  %v1576_v57 = vld [vmem:[%s3798_s3 + $0x49] sm:$0xff]  ;;  %v1488_v4 = vld [vmem:[%s3798_s3 + $0x58] sm:$0xf] }
  0xb5   : > { %1703 = vmatpush.msra.mxu0 %v1671_v43  ;;  %1732 = vmatpush.msra.mxu1 %v1672_v44  ;;  %v1578_v5 = vld [vmem:[%s3798_s3 + $0x59] sm:$0xf] }
  0xb6   : > { %1793 = vmatpush.msra.mxu2 %v1761_v45  ;;  %1822 = vmatpush.msra.mxu3 %v1762_v47  ;;  %v1758_v47 = vld [vmem:[%s3798_s3 + $0x5b] sm:$0xf] }
  0xb7   : > { %3331 = vmatmul.msk.f32.gmra.mxu0 %vm624_vm0, %v1306_v10  ;;  %3335 = vmatmul.msk.f32.gmra.mxu1 %vm624_vm0, %v1306_v10  ;;  %v1853_v10 = vld [vmem:[%s5518_s29 + $0x3a0] sm:$0xff] }
  0xb8   : > { %3339 = vmatmul.msk.f32.gmra.mxu2 %vm624_vm0, %v1396_v11  ;;  %3343 = vmatmul.msk.f32.gmra.mxu3 %vm624_vm0, %v1396_v11  ;;  %v1854_v11 = vld [vmem:[%s5518_s29 + $0x3a8] sm:$0xff] }
  0xb9   : > { %1704 = vmatpush.msra.mxu0 %v1669_v48  ;;  %1733 = vmatpush.msra.mxu1 %v1670_v49 }
  0xba   : > { %1794 = vmatpush.msra.mxu2 %v1759_v50  ;;  %1823 = vmatpush.msra.mxu3 %v1760_v51 }
  0xbb   : > { %v727_v12 = vpop.f32.mrf.mxu2  ;;  %v756_v13 = vpop.f32.mrf.mxu3 }
  0xbc   : > { %v4152_v14 = vadd.f32 %v727_v12, %v657_v8  ;;  %v4154_v15 = vadd.f32 %v756_v13, %v686_v9  ;;  %v660_v16 = vpop.f32.mrf.mxu0  ;;  %v689_v17 = vpop.f32.mrf.mxu1  ;;  %v1855_v8 = vld [vmem:[%s5518_s29 + $0x3b0] sm:$0xff]  ;;  %v1856_v9 = vld [vmem:[%s5518_s29 + $0x3b8] sm:$0xff] }
  0xbf   : > { %3332 = vmatmul.msk.f32.gmra.mxu0 %vm624_vm0, %v1307_v18  ;;  %3336 = vmatmul.msk.f32.gmra.mxu1 %vm624_vm0, %v1307_v18  ;;  %v1665_v18 = vld [vmem:[%s3798_s3 + $0x42] sm:$0xff] }
  0xc0   : > { %3340 = vmatmul.msk.f32.gmra.mxu2 %vm624_vm0, %v1397_v19  ;;  %3344 = vmatmul.msk.f32.gmra.mxu3 %vm624_vm0, %v1397_v19  ;;  %v1851_v19 = vld [vmem:[%s5518_s29 + $0x390] sm:$0xff] }
  0xc3   : > { %v730_v20 = vpop.f32.mrf.mxu2  ;;  %v759_v21 = vpop.f32.mrf.mxu3 }
  0xc4   : > { %v4162_v22 = vadd.f32 %v730_v20, %v660_v16  ;;  %v4164_v23 = vadd.f32 %v759_v21, %v689_v17  ;;  %v663_v24 = vpop.f32.mrf.mxu0  ;;  %v692_v25 = vpop.f32.mrf.mxu1  ;;  %v1852_v20 = vld [vmem:[%s5518_s29 + $0x398] sm:$0xff]  ;;  %v1755_v21 = vld [vmem:[%s3798_s3 + $0x43] sm:$0xff] }
  0xc7   : > { %3333 = vmatmul.msk.f32.gmra.mxu0 %vm624_vm0, %v1308_v26  ;;  %3337 = vmatmul.msk.f32.gmra.mxu1 %vm624_vm0, %v1308_v26 }
  0xc8   : > { %3341 = vmatmul.msk.f32.gmra.mxu2 %vm624_vm0, %v1398_v27  ;;  %3345 = vmatmul.msk.f32.gmra.mxu3 %vm624_vm0, %v1398_v27 }
  0xcb   : > { %v733_v35 = vpop.f32.mrf.mxu2  ;;  %v762_v36 = vpop.f32.mrf.mxu3 }
  0xcc   : > { %v4197_v39 = vadd.f32 %v733_v35, %v663_v24  ;;  %v4199_v40 = vadd.f32 %v762_v36, %v692_v25  ;;  %v4201_v41 = vpop.f32.mrf.mxu0  ;;  %v4203_v42 = vpop.f32.mrf.mxu1  ;;  %v1849_v24 = vld [vmem:[%s5518_s29 + $0x380] sm:$0xff]  ;;  %v1850_v25 = vld [vmem:[%s5518_s29 + $0x388] sm:$0xff]  ;;  %v1667_v36 = vld [vmem:[%s3798_s3 + $0x52] sm:$0xff] }
  0xcf   : > { %3346 = vmatmul.msk.f32.vlgmr.msrb.gmra.mxu0 %vm624_vm0, %v1485_v37  ;;  %3350 = vmatmul.msk.f32.vlgmr.msrb.gmra.mxu1 %vm624_vm0, %v1485_v37  ;;  %v1757_v37 = vld [vmem:[%s3798_s3 + $0x53] sm:$0xff] }
  0xd0   : > { %3354 = vmatmul.msk.f32.vlgmr.msrb.gmra.mxu2 %vm624_vm0, %v1575_v46  ;;  %3358 = vmatmul.msk.f32.vlgmr.msrb.gmra.mxu3 %vm624_vm0, %v1575_v46  ;;  %v1668_v46 = vld [vmem:[%s3798_s3 + $0x5a] sm:$0xf] }
  0xd1   : > { %1881 = vmatpush.msrb.mxu0 %v1855_v8  ;;  %1910 = vmatpush.msrb.mxu1 %v1856_v9 }
  0xd3   : > { %v4234_v52 = vpop.f32.mrf.mxu2  ;;  %v4236_v53 = vpop.f32.mrf.mxu3  ;;  %1882 = vmatpush.msrb.mxu0 %v1853_v10  ;;  %1911 = vmatpush.msrb.mxu1 %v1854_v11 }
  0xd4   : > { %v4238_v54 = vpop.f32.mrf.mxu0  ;;  %v4240_v55 = vpop.f32.mrf.mxu1 }
  0xd5   : > { %1883 = vmatpush.msrb.mxu0 %v1851_v19  ;;  %1912 = vmatpush.msrb.mxu1 %v1852_v20 }
  0xd7   : > { %3347 = vmatmul.msk.f32.gmra.mxu0 %vm624_vm0, %v1486_v56  ;;  %3351 = vmatmul.msk.f32.gmra.mxu1 %vm624_vm0, %v1486_v56  ;;  %v1845_v56 = vld [vmem:[%s3798_s3 + $0x44] sm:$0xff] }
  0xd8   : > { %3355 = vmatmul.msk.f32.gmra.mxu2 %vm624_vm0, %v1576_v57  ;;  %3359 = vmatmul.msk.f32.gmra.mxu3 %vm624_vm0, %v1576_v57 }
  0xd9   : > { %1884 = vmatpush.msrb.mxu0 %v1849_v24  ;;  %1913 = vmatpush.msrb.mxu1 %v1850_v25  ;;  %v1848_v25 = vld [vmem:[%s3798_s3 + $0x5c] sm:$0xf] }
  0xdb   : > { %v4248_v58 = vpop.f32.mrf.mxu2  ;;  %v4250_v59 = vpop.f32.mrf.mxu3 }
  0xdc   : > { %v4252_v60 = vpop.f32.mrf.mxu0  ;;  %v4254_v61 = vpop.f32.mrf.mxu1 }
  0xdf   : > { %3348 = vmatmul.msk.f32.gmra.mxu0 %vm624_vm0, %v1487_v62  ;;  %3352 = vmatmul.msk.f32.gmra.mxu1 %vm624_vm0, %v1487_v62 }
  0xe0   : > { %3356 = vmatmul.msk.f32.gmra.mxu2 %vm624_vm0, %v1577_v63  ;;  %3360 = vmatmul.msk.f32.gmra.mxu3 %vm624_vm0, %v1577_v63 }
  0xe3   : > { %v4262_v0 = vpop.f32.mrf.mxu2  ;;  %v4264_v1 = vpop.f32.mrf.mxu3 }
  0xe4   : > { %5520 = vst [vmem:[#allocation14_spill] sm:$0xff] %v4264_v1  ;;  %v4266_v2 = vpop.f32.mrf.mxu0  ;;  %v4268_v3 = vpop.f32.mrf.mxu1 }
  0xe7   : > { %3349 = vmatmul.msk.f32.gmra.mxu0 %vm624_vm0, %v1488_v4  ;;  %3353 = vmatmul.msk.f32.gmra.mxu1 %vm624_vm0, %v1488_v4 }
  0xe8   : > { %3357 = vmatmul.msk.f32.gmra.mxu2 %vm624_vm0, %v1578_v5  ;;  %3361 = vmatmul.msk.f32.gmra.mxu3 %vm624_vm0, %v1578_v5  ;;  %v1846_v5 = vld [vmem:[%s3798_s3 + $0x4c] sm:$0xff] }
  0xeb   : > { %v4288_v12 = vpop.f32.mrf.mxu2  ;;  %v4290_v13 = vpop.f32.mrf.mxu3 }
  0xec   : > { %v4292_v16 = vpop.f32.mrf.mxu0  ;;  %v4294_v17 = vpop.f32.mrf.mxu1 }
  0xef   : > { %3362 = vmatmul.msk.f32.vlgmr.msra.gmra.mxu0 %vm624_vm0, %v1665_v18  ;;  %3366 = vmatmul.msk.f32.vlgmr.msra.gmra.mxu1 %vm624_vm0, %v1665_v18  ;;  %v1847_v18 = vld [vmem:[%s3798_s3 + $0x54] sm:$0xff] }
  0xf0   : > { %3370 = vmatmul.msk.f32.vlgmr.msra.gmra.mxu2 %vm624_vm0, %v1755_v21  ;;  %3374 = vmatmul.msk.f32.vlgmr.msra.gmra.mxu3 %vm624_vm0, %v1755_v21 }
  0xf3   : > { %v4314_v26 = vpop.f32.mrf.mxu2  ;;  %v4316_v27 = vpop.f32.mrf.mxu3 }
  0xf4   : > { %v989_v28 = vpop.f32.mrf.mxu0  ;;  %v4318_v29 = vpop.f32.mrf.mxu1 }
  0xf7   : > { %3363 = vmatmul.msk.f32.gmra.mxu0 %vm624_vm0, %v1666_v30  ;;  %3367 = vmatmul.msk.f32.gmra.mxu1 %vm624_vm0, %v1666_v30 }
  0xf8   : > { %3371 = vmatmul.msk.f32.gmra.mxu2 %vm624_vm0, %v1756_v31  ;;  %3375 = vmatmul.msk.f32.gmra.mxu3 %vm624_vm0, %v1756_v31 }
  0xfb   : > { %v1079_v32 = vpop.f32.mrf.mxu2  ;;  %v4326_v33 = vpop.f32.mrf.mxu3 }
  0xfc   : > { %v4328_v34 = vpop.f32.mrf.mxu0  ;;  %v4330_v35 = vpop.f32.mrf.mxu1 }
  0xfd   : > { %5521 = vst [vmem:[#allocation15_spill] sm:$0xff] %v4330_v35  ;;  %v851_v35 = vadd.f32 %v4252_v60, %v4162_v22 }
  0xff   : > { %3364 = vmatmul.msk.f32.gmra.mxu0 %vm624_vm0, %v1667_v36  ;;  %3368 = vmatmul.msk.f32.gmra.mxu1 %vm624_vm0, %v1667_v36 }
 0x100   : > { %3372 = vmatmul.msk.f32.gmra.mxu2 %vm624_vm0, %v1757_v37  ;;  %3376 = vmatmul.msk.f32.gmra.mxu3 %vm624_vm0, %v1757_v37 }
 0x103   : > { %v1082_v38 = vpop.f32.mrf.mxu2  ;;  %v4338_v43 = vpop.f32.mrf.mxu3 }
 0x104   : > { %5522 = vst [vmem:[#allocation16_spill] sm:$0xff] %v4338_v43  ;;  %v4340_v44 = vpop.f32.mrf.mxu0  ;;  %v4342_v45 = vpop.f32.mrf.mxu1 }
 0x107   : > { %3365 = vmatmul.msk.f32.gmra.mxu0 %vm624_vm0, %v1668_v46  ;;  %3369 = vmatmul.msk.f32.gmra.mxu1 %vm624_vm0, %v1668_v46  ;;  %v849_v46 = vadd.f32 %v4238_v54, %v4152_v14  ;;  %v854_v14 = vadd.f32 %v4268_v3, %v4199_v40 }
 0x108   : > { %3373 = vmatmul.msk.f32.gmra.mxu2 %vm624_vm0, %v1758_v47  ;;  %3377 = vmatmul.msk.f32.gmra.mxu3 %vm624_vm0, %v1758_v47 }
 0x109   : > { %v939_v47 = vadd.f32 %v4248_v58, %v849_v46 }
 0x10b   : > { %v4350_v48 = vpop.f32.mrf.mxu2  ;;  %v4352_v49 = vpop.f32.mrf.mxu3 }
 0x10c   : > { %v4354_v50 = vpop.f32.mrf.mxu0  ;;  %v4356_v51 = vpop.f32.mrf.mxu1 }
 0x10f   : > { %3378 = vmatmul.msk.f32.vlgmr.msrb.gmra.mxu0 %vm624_vm0, %v1845_v56  ;;  %3382 = vmatmul.msk.f32.vlgmr.msrb.gmra.mxu1 %vm624_vm0, %v1845_v56  ;;  %v1029_v56 = vadd.f32 %v989_v28, %v939_v47 }
 0x113   : > { %v4361_v57 = vpop.f32.mrf.mxu2  ;;  %v4363_v62 = vpop.f32.mrf.mxu3 }
 0x114   : > { %v1169_v63 = vpop.f32.mrf.mxu0  ;;  %v4365_v4 = vpop.f32.mrf.mxu1 }
 0x115   : > { %5523 = vst [vmem:[#allocation17_spill] sm:$0xff] %v4365_v4  ;;  %v853_v4 = vadd.f32 %v4266_v2, %v4197_v39  ;;  %v848_v39 = vadd.f32 %v4203_v42, %v4144_v7 }
 0x117   : > { %3379 = vmatmul.msk.f32.gmra.mxu0 %vm624_vm0, %v1846_v5  ;;  %3383 = vmatmul.msk.f32.gmra.mxu1 %vm624_vm0, %v1846_v5  ;;  %v943_v28 = vadd.f32 %v4288_v12, %v853_v4  ;;  %v938_v12 = vadd.f32 %v4236_v53, %v848_v39  ;;  %v850_v53 = vadd.f32 %v4240_v55, %v4154_v15 }
 0x119   : > { %v1033_v40 = vadd.f32 %v4340_v44, %v943_v28 }
 0x11b   : > { %v1259_v8 = vpop.f32.mrf.mxu2  ;;  %v4370_v9 = vpop.f32.mrf.mxu3 }
 0x11c   : > { %5524 = vst [vmem:[#allocation18_spill] sm:$0xff] %v4370_v9  ;;  %v1172_v10 = vpop.f32.mrf.mxu0  ;;  %v4372_v11 = vpop.f32.mrf.mxu1  ;;  %v941_v9 = vadd.f32 %v4262_v0, %v851_v35  ;;  %v847_v35 = vadd.f32 %v4201_v41, %v4142_v6  ;;  %v1028_v6 = vadd.f32 %v4294_v17, %v938_v12 }
 0x11d   : > { %5525 = vst [vmem:[#allocation19_spill] sm:$0xff] %v4372_v11 }
 0x11e   : > { %v1031_v54 = vadd.f32 %v4328_v34, %v941_v9  ;;  %v937_v3 = vadd.f32 %v4234_v52, %v847_v35 }
 0x11f   : > { %3380 = vmatmul.msk.f32.gmra.mxu0 %vm624_vm0, %v1847_v18  ;;  %3384 = vmatmul.msk.f32.gmra.mxu1 %vm624_vm0, %v1847_v18 }
 0x120   : > { %v1121_v22 = vadd.f32 %v1082_v38, %v1031_v54  ;;  %v1027_v4 = vadd.f32 %v4292_v16, %v937_v3 }
 0x122   : > { %v1211_v2 = vadd.f32 %v1172_v10, %v1121_v22  ;;  %v1117_v44 = vadd.f32 %v4314_v26, %v1027_v4  ;;  %v940_v26 = vadd.f32 %v4250_v59, %v850_v53 }
 0x123   : > { %v1262_v19 = vpop.f32.mrf.mxu2  ;;  %v4377_v20 = vpop.f32.mrf.mxu3  ;;  %v5529_v28 = vld [vmem:[#allocation18_spill] sm:$0xff] }
 0x124   : > { %5526 = vst [vmem:[#allocation20_spill] sm:$0xff] %v4377_v20  ;;  %v1175_v21 = vpop.f32.mrf.mxu0  ;;  %v1204_v24 = vpop.f32.mrf.mxu1  ;;  %v1119_v20 = vadd.f32 %v1079_v32, %v1029_v56  ;;  %v944_v32 = vadd.f32 %v4290_v13, %v854_v14  ;;  %v1123_v13 = vadd.f32 %v4350_v48, %v1033_v40  ;;  %v1301_v38 = vadd.f32 %v1262_v19, %v1211_v2  ;;  %v5527_v14 = vld [vmem:[#allocation17_spill] sm:$0xff] }
 0x125   : > { %v1207_v16 = vadd.f32 %v4354_v50, %v1117_v44  ;;  %v1030_v15 = vadd.f32 %v4318_v29, %v940_v26 }
 0x126   : > { %v1213_v41 = vadd.f32 %v1175_v21, %v1123_v13 }
 0x127   : > { %3381 = vmatmul.msk.f32.gmra.mxu0 %vm624_vm0, %v1848_v25  ;;  %3385 = vmatmul.msk.f32.gmra.mxu1 %vm624_vm0, %v1848_v25  ;;  %v1209_v25 = vadd.f32 %v1169_v63, %v1119_v20 }
 0x129   : > { %v1299_v1 = vadd.f32 %v1259_v8, %v1209_v25  ;;  %v852_v25 = vadd.f32 %v4254_v61, %v4164_v23  ;;  %v5532_v61 = vld [vmem:[#allocation19_spill] sm:$0xff] }
 0x12b   : > { %v1265_v30 = vpop.f32.mrf.mxu2  ;;  %v1294_v31 = vpop.f32.mrf.mxu3 }
 0x12c   : > { %v1346_v36 = vpop.f32.mrf.mxu0  ;;  %v1375_v37 = vpop.f32.mrf.mxu1  ;;  %v1303_v8 = vadd.f32 %v1265_v30, %v1213_v41  ;;  %v1120_v30 = vadd.f32 %v4326_v33, %v1030_v15 }
 0x12e   : > { %v1210_v54 = vadd.f32 %v5527_v14, %v1120_v30 }
 0x130   : > { %v1300_v29 = vadd.f32 %v5529_v28, %v1210_v54 }
 0x133   : > { %v1436_v5 = vpop.f32.mrf.mxu2  ;;  %v1465_v18 = vpop.f32.mrf.mxu3 }
 0x134   : > { %v1349_v11 = vpop.f32.mrf.mxu0  ;;  %v4385_v43 = vpop.f32.mrf.mxu1 }
 0x135   : > { %v1389_v58 = vadd.f32 %v1349_v11, %v1299_v1  ;;  %v1034_v1 = vadd.f32 %v4342_v45, %v944_v32  ;;  %v1118_v45 = vadd.f32 %v4316_v27, %v1028_v6  ;;  %v1297_v27 = vadd.f32 %v4361_v57, %v1207_v16  ;;  %v5528_v57 = vld [vmem:[#allocation14_spill] sm:$0xff]  ;;  %v5530_v32 = vld [vmem:[#allocation15_spill] sm:$0xff] }
 0x137   : > { %v1124_v34 = vadd.f32 %v4352_v49, %v1034_v1  ;;  %v1208_v17 = vadd.f32 %v4356_v51, %v1118_v45  ;;  %v1387_v55 = vadd.f32 %v1346_v36, %v1297_v27  ;;  %v5533_v1 = vld [vmem:[#allocation20_spill] sm:$0xff] }
 0x139   : > { %v1214_v7 = vadd.f32 %v1204_v24, %v1124_v34  ;;  %v1298_v21 = vadd.f32 %v4363_v62, %v1208_v17  ;;  %v1477_v50 = vadd.f32 %v1436_v5, %v1387_v55  ;;  %v942_v62 = vadd.f32 %v5528_v57, %v852_v25 }
 0x13a   : > { %v1390_v5 = vadd.f32 %v4385_v43, %v1300_v29 }
 0x13b   : > { %v1439_v46 = vpop.f32.mrf.mxu2  ;;  %v1468_v47 = vpop.f32.mrf.mxu3  ;;  %v1304_v52 = vadd.f32 %v1294_v31, %v1214_v7  ;;  %v1388_v24 = vadd.f32 %v1375_v37, %v1298_v21  ;;  %v1032_v33 = vadd.f32 %v5530_v32, %v942_v62 }
 0x13c   : > { %v1479_v60 = vadd.f32 %v1439_v46, %v1389_v58  ;;  %v1352_v63 = vpop.f32.mrf.mxu0  ;;  %v1381_v0 = vpop.f32.mrf.mxu1  ;;  %v1480_v22 = vadd.f32 %v1468_v47, %v1390_v5 }
 0x13d   : > { %v1391_v42 = vadd.f32 %v1352_v63, %v1301_v38  ;;  %v1478_v31 = vadd.f32 %v1465_v18, %v1388_v24  ;;  %v5531_v18 = vld [vmem:[#allocation16_spill] sm:$0xff] }
 0x13e   : > { %v1122_v46 = vadd.f32 %v5531_v18, %v1032_v33 }
 0x140   : > { %v1212_v35 = vadd.f32 %v5532_v61, %v1122_v46 }
 0x142   : > { %v1302_v2 = vadd.f32 %v5533_v1, %v1212_v35 }
 0x143   : > { %v1442_v9 = vpop.f32.mrf.mxu2  ;;  %v1471_v11 = vpop.f32.mrf.mxu3 }
 0x144   : > { %v1481_v48 = vadd.f32 %v1442_v9, %v1391_v42  ;;  %v1355_v49 = vpop.f32.mrf.mxu0  ;;  %v1384_v10 = vpop.f32.mrf.mxu1  ;;  %v1392_v3 = vadd.f32 %v1381_v0, %v1302_v2 }
 0x145   : > { %v4415_v19 = vadd.f32 %v1355_v49, %v1303_v8  ;;  %v4417_v20 = vadd.f32 %v1384_v10, %v1304_v52 }
 0x146   : > { %v1482_v34 = vadd.f32 %v1471_v11, %v1392_v3 }
 0x14b   : > { %v1445_v36 = vpop.f32.mrf.mxu2  ;;  %v1474_v37 = vpop.f32.mrf.mxu3 }
 0x14c   : > { %v1526_v51 = vpop.f32.mrf.mxu0  ;;  %v1555_v56 = vpop.f32.mrf.mxu1  ;;  %v1483_v18 = vadd.f32 %v1445_v36, %v4415_v19  ;;  %v1484_v46 = vadd.f32 %v1474_v37, %v4417_v20 }
 0x14d   : > { %v1567_v59 = vadd.f32 %v1526_v51, %v1477_v50  ;;  %v4427_v58 = vadd.f32 %v1555_v56, %v1478_v31  ;;  %v1935_v51 = vld [vmem:[%s5534_s26] sm:$0x3]  ;;  %s3202_s26 = scalar_lea.hbm %s5491_s19, %s3718_s1 }
 0x14e   : > { %v1937_v29 = vperm.slane %v1935_v51, 0  ;;  %s3206_s28 = sshll.u32 %s3202_s26, 4  ;;  %s3207_s28 = int_to_ptr.hbm [resolvable:$true] %s3206_s28 }
 0x153   : > { %v1616_v12 = vpop.f32.mrf.mxu2  ;;  %v1645_v13 = vpop.f32.mrf.mxu3 }
 0x154   : > { %v1529_v63 = vpop.f32.mrf.mxu0  ;;  %v1558_v23 = vpop.f32.mrf.mxu1  ;;  %v1657_v55 = vadd.f32 %v1616_v12, %v1567_v59 }
 0x155   : > { %v1569_v39 = vadd.f32 %v1529_v63, %v1479_v60  ;;  %v1570_v40 = vadd.f32 %v1558_v23, %v1480_v22  ;;  %v1658_v63 = vadd.f32 %v1645_v13, %v4427_v58 }
 0x15b   : > { %v1619_v43 = vpop.f32.mrf.mxu2  ;;  %v1648_v7 = vpop.f32.mrf.mxu3 }
 0x15c   : > { %v1532_v38 = vpop.f32.mrf.mxu0  ;;  %v1561_v4 = vpop.f32.mrf.mxu1  ;;  %v1659_v50 = vadd.f32 %v1619_v43, %v1569_v39  ;;  %v1660_v28 = vadd.f32 %v1648_v7, %v1570_v40 }
 0x15d   : > { %v1571_v6 = vadd.f32 %v1532_v38, %v1481_v48  ;;  %v1572_v41 = vadd.f32 %v1561_v4, %v1482_v34 }
 0x163   : > { %v1622_v8 = vpop.f32.mrf.mxu2  ;;  %v1651_v52 = vpop.f32.mrf.mxu3 }
 0x164   : > { %v1535_v42 = vpop.f32.mrf.mxu0  ;;  %v1564_v47 = vpop.f32.mrf.mxu1  ;;  %v1661_v14 = vadd.f32 %v1622_v8, %v1571_v6  ;;  %v1662_v54 = vadd.f32 %v1651_v52, %v1572_v41  ;;  %v1938_v41 = vperm.slane %v1935_v51, 1 }
 0x165   : > { %v1573_v39 = vadd.f32 %v1535_v42, %v1483_v18  ;;  %v1574_v1 = vadd.f32 %v1564_v47, %v1484_v46 }
 0x16b   : > { %v1625_v53 = vpop.f32.mrf.mxu2  ;;  %v1654_v49 = vpop.f32.mrf.mxu3 }
 0x16c   : > { %v1706_v44 = vpop.f32.mrf.mxu0  ;;  %v1735_v45 = vpop.f32.mrf.mxu1  ;;  %v1663_v6 = vadd.f32 %v1625_v53, %v1573_v39  ;;  %v1664_v36 = vadd.f32 %v1654_v49, %v1574_v1 }
 0x16d   : > { %v1747_v31 = vadd.f32 %v1706_v44, %v1657_v55  ;;  %v1748_v12 = vadd.f32 %v1735_v45, %v1658_v63 }
 0x173   : > { %v1796_v16 = vpop.f32.mrf.mxu2  ;;  %v1825_v17 = vpop.f32.mrf.mxu3 }
 0x174   : > { %v1709_v60 = vpop.f32.mrf.mxu0  ;;  %v1738_v9 = vpop.f32.mrf.mxu1  ;;  %v1837_v57 = vadd.f32 %v1796_v16, %v1747_v31  ;;  %v1838_v20 = vadd.f32 %v1825_v17, %v1748_v12  ;;  %v2123_v12 = vld [vmem:[%s5535_s5 + $0x70] sm:$0xff] }
 0x175   : > { %v1749_v62 = vadd.f32 %v1709_v60, %v1659_v50  ;;  %v1750_v22 = vadd.f32 %v1738_v9, %v1660_v28 }
 0x17b   : > { %v1799_v48 = vpop.f32.mrf.mxu2  ;;  %v1828_v27 = vpop.f32.mrf.mxu3 }
 0x17c   : > { %v1712_v0 = vpop.f32.mrf.mxu0  ;;  %v1741_v10 = vpop.f32.mrf.mxu1  ;;  %v1839_v32 = vadd.f32 %v1799_v48, %v1749_v62  ;;  %v1840_v2 = vadd.f32 %v1828_v27, %v1750_v22 }
 0x17d   : > { %v1751_v33 = vadd.f32 %v1712_v0, %v1661_v14  ;;  %v1752_v5 = vadd.f32 %v1741_v10, %v1662_v54 }
 0x183   : > { %v1802_v56 = vpop.f32.mrf.mxu2  ;;  %v1831_v25 = vpop.f32.mrf.mxu3 }
 0x184   : > { %v1715_v11 = vpop.f32.mrf.mxu0  ;;  %v1744_v26 = vpop.f32.mrf.mxu1  ;;  %v1841_v23 = vadd.f32 %v1802_v56, %v1751_v33  ;;  %v1842_v61 = vadd.f32 %v1831_v25, %v1752_v5 }
 0x185   : > { %v1753_v44 = vadd.f32 %v1715_v11, %v1663_v6  ;;  %v1754_v42 = vadd.f32 %v1744_v26, %v1664_v36  ;;  %v2122_v6 = vld [vmem:[%s5535_s5 + $0x68] sm:$0xff] }
 0x18b   : > { %v1805_v58 = vpop.f32.mrf.mxu2  ;;  %v1834_v13 = vpop.f32.mrf.mxu3 }
 0x18c   : > { %v1886_v21 = vpop.f32.mrf.mxu0  ;;  %v1915_v15 = vpop.f32.mrf.mxu1  ;;  %v1843_v45 = vadd.f32 %v1805_v58, %v1753_v44  ;;  %v1844_v9 = vadd.f32 %v1834_v13, %v1754_v42  ;;  %v2198_v58 = vld [vmem:[%s5537_s6 + $0x78] sm:$0xff]  ;;  %v2197_v13 = vld [vmem:[%s5537_s6 + $0x70] sm:$0xff]  ;;  %v2195_v44 = vld [vmem:[%s5537_s6 + $0x60] sm:$0xff] }
 0x18d   : > { %v1927_v59 = vadd.f32 %v1886_v21, %v1837_v57  ;;  %v1928_v8 = vadd.f32 %v1915_v15, %v1838_v20  ;;  %v2120_v20 = vld [vmem:[%s5535_s5 + $0x58] sm:$0xff]  ;;  %v2051_v42 = vld [vmem:[%s5538_s4] sm:$0xff] }
 0x18f   : > { %v1941_v34 = vadd.f32 %v1937_v29, %v1927_v59  ;;  %v1942_v49 = vadd.f32 %v1938_v41, %v1928_v8  ;;  %v2193_v8 = vld [vmem:[%s5537_s6 + $0x50] sm:$0xff] }
 0x191   : > { %v1949_v47 = vsub.f32 0.0, %v1941_v34  ;;  %v1950_v15 = vsub.f32 0.0, %v1942_v49  ;;  %v2114_v49 = vld [vmem:[%s5535_s5 + $0x28] sm:$0xff] }
 0x193   : > { %v1957_v48 = vmul.f32 1.442695, %v1949_v47  ;;  %v1959_v14 = vmul.f32 1.442695, %v1950_v15  ;;  %v2194_v47 = vld [vmem:[%s5537_s6 + $0x58] sm:$0xff] }
 0x194   : > { %v1889_v24 = vpop.f32.mrf.mxu0  ;;  %v1918_v30 = vpop.f32.mrf.mxu1  ;;  %v2202_v15 = vld [vmem:[%s5537_s6 + $0x98] sm:$0xff] }
 0x195   : > { %v1929_v35 = vadd.f32 %v1889_v24, %v1839_v32  ;;  %v1930_v19 = vadd.f32 %v1918_v30, %v1840_v2  ;;  %3477 = vpow2.f32 %v1957_v48  ;;  %v2189_v48 = vld [vmem:[%s5537_s6 + $0x30] sm:$0xff] }
 0x197   : > { %v1943_v37 = vadd.f32 %v1937_v29, %v1929_v35  ;;  %v1944_v52 = vadd.f32 %v1938_v41, %v1930_v19  ;;  %v2121_v19 = vld [vmem:[%s5535_s5 + $0x60] sm:$0xff] }
 0x199   : > { %v1951_v0 = vsub.f32 0.0, %v1943_v37  ;;  %v1952_v21 = vsub.f32 0.0, %v1944_v52  ;;  %v2119_v37 = vld [vmem:[%s5535_s5 + $0x50] sm:$0xff]  ;;  %v2052_v52 = vld [vmem:[%s5538_s4 + $0x8] sm:$0x3f]  ;;  %s3547_s4 = sshra.s32 %s3207_s28, 4  ;;  %s3548_s4 = int_to_ptr.hbm [resolvable:$true] %s3547_s4 }
 0x19a   : > { %p3554_p0 = scmp.lt.s32.totalorder %s3548_s4, %s5491_s19 }
 0x19b   : > { %v1961_v24 = vmul.f32 1.442695, %v1951_v0  ;;  %v1963_v51 = vmul.f32 1.442695, %v1952_v21  ;;  %v3478_v54 = vpop.eup %3477  ;;  %v2191_v0 = vld [vmem:[%s5537_s6 + $0x40] sm:$0xff] }
 0x19c   : > { %v1892_v3 = vpop.f32.mrf.mxu0  ;;  %v1921_v40 = vpop.f32.mrf.mxu1  ;;  %v2129_v21 = vld [vmem:[%s5535_s5 + $0xa0] sm:$0xff] }
 0x19d   : > { %v1931_v38 = vadd.f32 %v1892_v3, %v1841_v23  ;;  %v1932_v4 = vadd.f32 %v1921_v40, %v1842_v61  ;;  %v1973_v23 = vadd.f32 1.0, %v3478_v54  ;;  %v2124_v3 = vld [vmem:[%s5535_s5 + $0x78] sm:$0xff]  ;;  %2171 = vmatpush.msra.mxu1 %v2129_v21  ;;  %v2184_v54 = vld [vmem:[%s5537_s6 + $0x8] sm:$0xff] }
 0x19e   : > { %2137 = vmatpush.msra.mxu0 %v2124_v3  ;;  %v2274_v3 = vld [vmem:[%s5479_s7 + $0x80] sm:$0xff]  ;;  %v2265_v21 = vld [vmem:[%s5479_s7 + $0x38] sm:$0xff] }
 0x19f   : > { %v1945_v43 = vadd.f32 %v1937_v29, %v1931_v38  ;;  %v1946_v7 = vadd.f32 %v1938_v41, %v1932_v4  ;;  %v1989_v4 = vld [vmem:[%s5536_s22] sm:$0xff] }
 0x1a0   : > { %2138 = vmatpush.msra.mxu0 %v2123_v12 }
 0x1a1   : > { %v1953_v60 = vsub.f32 0.0, %v1945_v43  ;;  %v1954_v10 = vsub.f32 0.0, %v1946_v7  ;;  %v1990_v43 = vld [vmem:[%s5536_s22 + $0x8] sm:$0x3f] }
 0x1a2   : > { %2139 = vmatpush.msra.mxu0 %v2122_v6  ;;  %v2196_v7 = vld [vmem:[%s5537_s6 + $0x68] sm:$0xff]  ;;  %v2273_v6 = vld [vmem:[%s5479_s7 + $0x78] sm:$0xff] }
 0x1a3   : > { %v1965_v55 = vmul.f32 1.442695, %v1953_v60  ;;  %v1967_v26 = vmul.f32 1.442695, %v1954_v10  ;;  %v2118_v60 = vld [vmem:[%s5535_s5 + $0x48] sm:$0xff]  ;;  %v2116_v10 = vld [vmem:[%s5535_s5 + $0x38] sm:$0xff] }
 0x1a4   : > { %v1895_v53 = vpop.f32.mrf.mxu0  ;;  %v1924_v16 = vpop.f32.mrf.mxu1  ;;  %2140 = vmatpush.msra.mxu0 %v2121_v19  ;;  %v2299_v19 = vld [vmem:[%s5479_s7 + $0x138] sm:$0xff] }
 0x1a5   : > { %v1933_v17 = vadd.f32 %v1895_v53, %v1843_v45  ;;  %v1934_v27 = vadd.f32 %v1924_v16, %v1844_v9  ;;  %3479 = vpow2.f32 %v1965_v55  ;;  %v2192_v45 = vld [vmem:[%s5537_s6 + $0x48] sm:$0xff]  ;;  %v2117_v9 = vld [vmem:[%s5535_s5 + $0x40] sm:$0xff]  ;;  %v2190_v53 = vld [vmem:[%s5537_s6 + $0x38] sm:$0xff] }
 0x1a6   : > { %3481 = vpow2.f32 %v1961_v24  ;;  %2141 = vmatpush.msra.mxu0 %v2120_v20  ;;  %v2115_v16 = vld [vmem:[%s5535_s5 + $0x30] sm:$0xff]  ;;  %v2187_v55 = vld [vmem:[%s5537_s6 + $0x20] sm:$0xff]  ;;  %v2271_v20 = vld [vmem:[%s5479_s7 + $0x68] sm:$0xff] }
 0x1a7   : > { %v1947_v30 = vadd.f32 %v1937_v29, %v1933_v17  ;;  %v1948_v11 = vadd.f32 %v1938_v41, %v1934_v27  ;;  %3483 = vpow2.f32 %v1967_v26  ;;  %v2188_v17 = vld [vmem:[%s5537_s6 + $0x28] sm:$0xff]  ;;  %v2113_v27 = vld [vmem:[%s5535_s5 + $0x20] sm:$0xff]  ;;  %v2186_v26 = vld [vmem:[%s5537_s6 + $0x18] sm:$0xff] }
 0x1a8   : > { %2142 = vmatpush.msra.mxu0 %v2119_v37  ;;  %v2203_v24 = vld [vmem:[%s5537_s6 + $0xa0] sm:$0xff] }
 0x1a9   : > { %v1955_v50 = vsub.f32 0.0, %v1947_v30  ;;  %v1956_v31 = vsub.f32 0.0, %v1948_v11  ;;  %v2112_v30 = vld [vmem:[%s5535_s5 + $0x18] sm:$0xff] }
 0x1aa   : > { %2143 = vmatpush.msra.mxu0 %v2118_v60  ;;  %v2128_v11 = vld [vmem:[%s5535_s5 + $0x98] sm:$0xff]  ;;  %v2296_v60 = vld [vmem:[%s5479_s7 + $0x120] sm:$0xff] }
 0x1ab   : > { %v1969_v56 = vmul.f32 1.442695, %v1955_v50  ;;  %v1971_v25 = vmul.f32 1.442695, %v1956_v31  ;;  %v3480_v57 = vpop.eup %3479  ;;  %v2127_v50 = vld [vmem:[%s5535_s5 + $0x90] sm:$0xff]  ;;  %2172 = vmatpush.msra.mxu1 %v2128_v11  ;;  %v2263_v11 = vld [vmem:[%s5479_s7 + $0x28] sm:$0xff] }
 0x1ac   : > { %v3482_v62 = vpop.eup %3481  ;;  %v1977_v32 = vadd.f32 1.0, %v3480_v57  ;;  %2144 = vmatpush.msra.mxu0 %v2117_v9  ;;  %v2111_v31 = vld [vmem:[%s5535_s5 + $0x10] sm:$0xff]  ;;  %v2200_v57 = vld [vmem:[%s5537_s6 + $0x88] sm:$0xff] }
 0x1ad   : > { %3485 = vpow2.f32 %v1969_v56  ;;  %v3484_v28 = vpop.eup %3483  ;;  %v1975_v18 = vadd.f32 1.0, %v3482_v62  ;;  %v2201_v56 = vld [vmem:[%s5537_s6 + $0x90] sm:$0xff]  ;;  %2173 = vmatpush.msra.mxu1 %v2127_v50  ;;  %v2109_v62 = vld [vmem:[%s5535_s5] sm:$0xff] }
 0x1ae   : > { %3487 = vpow2.f32 %v1963_v51  ;;  %v1978_v46 = vadd.f32 1.0, %v3484_v28  ;;  %2145 = vmatpush.msra.mxu0 %v2116_v10  ;;  %v2185_v51 = vld [vmem:[%s5537_s6 + $0x10] sm:$0xff]  ;;  %v2125_v28 = vld [vmem:[%s5535_s5 + $0x80] sm:$0xff] }
 0x1af   : > { %3489 = vpow2.f32 %v1971_v25  ;;  %v2110_v25 = vld [vmem:[%s5535_s5 + $0x8] sm:$0xff]  ;;  %v2268_v9 = vld [vmem:[%s5479_s7 + $0x50] sm:$0xff] }
 0x1b0   : > { %3491 = vpow2.f32 %v1959_v14  ;;  %2146 = vmatpush.msra.mxu0 %v2115_v16  ;;  %v2126_v14 = vld [vmem:[%s5535_s5 + $0x88] sm:$0xff]  ;;  %v2294_v10 = vld [vmem:[%s5479_s7 + $0x110] sm:$0xff]  ;;  %v2266_v16 = vld [vmem:[%s5479_s7 + $0x40] sm:$0xff]  ;;  %s3549_s5 = scalar_lea.hbm %s3548_s4, 1 }
 0x1b1   : > { %2174 = vmatpush.msra.mxu1 %v2126_v14  ;;  %v2260_v50 = vld [vmem:[%s5479_s7 + $0x10] sm:$0xff]  ;;  %v2259_v14 = vld [vmem:[%s5479_s7 + $0x8] sm:$0xff]  ;;  %p3550_p11 = scmp.ne.s32.totalorder %s3548_s4, %s3549_s5  ;;  %p3555_p1 = scmp.lt.s32.totalorder %s3553_s24, %s3549_s5 }
 0x1b2   : > { %2147 = vmatpush.msra.mxu0 %v2114_v49  ;;  %v2292_v49 = vld [vmem:[%s5479_s7 + $0x100] sm:$0xff] }
 0x1b3   : > { %v3486_v29 = vpop.eup %3485  ;;  %2175 = vmatpush.msra.mxu1 %v2125_v28  ;;  %v2519_v28 = vld [vmem:[%s5479_s7 + $0x2f8] sm:$0xff]  ;;  %p3551_p12 = pnand %p3550_p11, %p3735_p5  ;;  %p3556_p2 = por %p3555_p1, %p3554_p0 }
 0x1b4   : > { %v3488_v33 = vpop.eup %3487  ;;  %v1979_v5 = vadd.f32 1.0, %v3486_v29  ;;  %2148 = vmatpush.msra.mxu0 %v2113_v27  ;;  %v2183_v29 = vld [vmem:[%s5537_s6] sm:$0xff]  ;;  %v2264_v27 = vld [vmem:[%s5479_s7 + $0x30] sm:$0xff] }
 0x1b5   : > { %v3490_v59 = vpop.eup %3489  ;;  %v1976_v61 = vadd.f32 1.0, %v3488_v33  ;;  %v2280_v33 = vld [vmem:[%s5479_s7 + $0xb0] sm:$0xff]  ;;  %p3552_p13 = pneg %p3551_p12 }
 0x1b6   : > { %3493 = vrcp.f32 %v1979_v5  ;;  %v1980_v22 = vadd.f32 1.0, %v3490_v59  ;;  %v3492_v63 = vpop.eup %3491  ;;  %2149 = vmatpush.msra.mxu0 %v2112_v30  ;;  %v2281_v5 = vld [vmem:[%s5479_s7 + $0xb8] sm:$0xff]  ;;  %v2306_v59 = vld [vmem:[%s5479_s7 + $0x170] sm:$0xff]  ;;  %v2262_v30 = vld [vmem:[%s5479_s7 + $0x20] sm:$0xff] }
 0x1b7   : > { %3495 = vrcp.f32 %v1977_v32  ;;  %v1974_v35 = vadd.f32 1.0, %v3492_v63  ;;  %v2199_v32 = vld [vmem:[%s5537_s6 + $0x80] sm:$0xff]  ;;  %p3557_p3 = pnand %p3556_p2, %p3552_p13 }
 0x1b8   : > { %3497 = vrcp.f32 %v1980_v22  ;;  %2150 = vmatpush.msra.mxu0 %v2111_v31  ;;  %v2279_v22 = vld [vmem:[%s5479_s7 + $0xa8] sm:$0xff]  ;;  %v2304_v63 = vld [vmem:[%s5479_s7 + $0x160] sm:$0xff]  ;;  %v2261_v31 = vld [vmem:[%s5479_s7 + $0x18] sm:$0xff] }
 0x1b9   : > { %3499 = vrcp.f32 %v1975_v18  ;;  %v2307_v18 = vld [vmem:[%s5479_s7 + $0x178] sm:$0xff] }
 0x1ba   : > { %3501 = vrcp.f32 %v1978_v46  ;;  %2151 = vmatpush.msra.mxu0 %v2110_v25  ;;  %v2278_v46 = vld [vmem:[%s5479_s7 + $0xa0] sm:$0xff]  ;;  %2341 = vmatpush.msrb.mxu1 %v2307_v18  ;;  %v2435_v18 = vld [vmem:[%s5479_s7 + $0x228] sm:$0xff] }
 0x1bb   : > { %3503 = vrcp.f32 %v1973_v23  ;;  %v2305_v23 = vld [vmem:[%s5479_s7 + $0x168] sm:$0xff]  ;;  %v2258_v25 = vld [vmem:[%s5479_s7] sm:$0xff] }
 0x1bc   : > { %v3494_v39 = vpop.eup %3493  ;;  %3505 = vrcp.f32 %v1976_v61  ;;  %2152 = vmatpush.msra.mxu0 %v2109_v62  ;;  %v2276_v61 = vld [vmem:[%s5479_s7 + $0x90] sm:$0xff]  ;;  %2342 = vmatpush.msrb.mxu1 %v2305_v23  ;;  %v2433_v23 = vld [vmem:[%s5479_s7 + $0x218] sm:$0xff] }
 0x1bd   : > { %v3496_v1 = vpop.eup %3495  ;;  %3386 = vmatpush.msk.msrb.mxu2 %vm1998_vm1, %v3494_v39  ;;  %3507 = vrcp.f32 %v1974_v35  ;;  %v2518_v62 = vld [vmem:[%s5479_s7 + $0x2f0] sm:$0xff] }
 0x1be   : > { %v3498_v2 = vpop.eup %3497  ;;  %2318 = vmatpush.msrb.mxu0 %v2306_v59  ;;  %v2434_v59 = vld [vmem:[%s5479_s7 + $0x220] sm:$0xff] }
 0x1bf   : > { %v3500_v40 = vpop.eup %3499  ;;  %3389 = vmatpush.msk.msrb.mxu3 %vm1998_vm1, %v3498_v2  ;;  %2018 = vmatpush.msrb.mxu2 %v3496_v1 }
 0x1c0   : > { %v3502_v34 = vpop.eup %3501  ;;  %2319 = vmatpush.msrb.mxu0 %v2304_v63  ;;  %v2432_v63 = vld [vmem:[%s5479_s7 + $0x210] sm:$0xff] }
 0x1c1   : > { %v3504_v38 = vpop.eup %3503  ;;  %2041 = vmatpush.msrb.mxu3 %v3502_v34  ;;  %2019 = vmatpush.msrb.mxu2 %v3500_v40 }
 0x1c2   : > { %v3506_v41 = vpop.eup %3505 }
 0x1c3   : > { %2042 = vmatpush.msrb.mxu3 %v3506_v41  ;;  %2020 = vmatpush.msrb.mxu2 %v3504_v38  ;;  %v3508_v36 = vpop.eup %3507 }
 0x1c4   : > { %3387 = vmatmul.msk.f32.vlgmr.msrb.gmra.mxu2 %vm1991_vm2, %v1989_v4 }
 0x1c5   : > { %2043 = vmatpush.msrb.mxu3 %v3508_v36  ;;  %3392 = vmatpush.msk.msra.mxu2 %vm1998_vm1, %v3494_v39  ;;  %v2277_v39 = vld [vmem:[%s5479_s7 + $0x98] sm:$0xff] }
 0x1c6   : > { %3390 = vmatmul.msk.f32.vlgmr.msrb.gmra.mxu3 %vm1991_vm2, %v1989_v4  ;;  %v2272_v4 = vld [vmem:[%s5479_s7 + $0x70] sm:$0xff] }
 0x1c7   : > { %3395 = vmatpush.msk.msra.mxu3 %vm1998_vm1, %v3498_v2  ;;  %2072 = vmatpush.msra.mxu2 %v3496_v1  ;;  %v2302_v1 = vld [vmem:[%s5479_s7 + $0x150] sm:$0xff]  ;;  %v2303_v2 = vld [vmem:[%s5479_s7 + $0x158] sm:$0xff] }
 0x1c8   : > { %2320 = vmatpush.msrb.mxu0 %v2302_v1  ;;  %2343 = vmatpush.msrb.mxu1 %v2303_v2  ;;  %v2431_v1 = vld [vmem:[%s5479_s7 + $0x208] sm:$0xff]  ;;  %v2510_v2 = vld [vmem:[%s5479_s7 + $0x2b0] sm:$0xff] }
 0x1c9   : > { %2095 = vmatpush.msra.mxu3 %v3502_v34  ;;  %2073 = vmatpush.msra.mxu2 %v3500_v40  ;;  %v2275_v40 = vld [vmem:[%s5479_s7 + $0x88] sm:$0xff]  ;;  %v2300_v34 = vld [vmem:[%s5479_s7 + $0x140] sm:$0xff] }
 0x1ca   : > { %2321 = vmatpush.msrb.mxu0 %v2300_v34  ;;  %v2508_v34 = vld [vmem:[%s5479_s7 + $0x2a0] sm:$0xff] }
 0x1cb   : > { %2096 = vmatpush.msra.mxu3 %v3506_v41  ;;  %2074 = vmatpush.msra.mxu2 %v3504_v38  ;;  %v2301_v38 = vld [vmem:[%s5479_s7 + $0x148] sm:$0xff]  ;;  %v2298_v41 = vld [vmem:[%s5479_s7 + $0x130] sm:$0xff] }
 0x1cc   : > { %3388 = vmatmul.msk.f32.gmra.mxu2 %vm1991_vm2, %v1990_v43  ;;  %2344 = vmatpush.msrb.mxu1 %v2301_v38  ;;  %v2509_v38 = vld [vmem:[%s5479_s7 + $0x2a8] sm:$0xff] }
 0x1cd   : > { %2097 = vmatpush.msra.mxu3 %v3508_v36  ;;  %2204 = vmatpush.msrb.mxu2 %v2198_v58  ;;  %v2270_v36 = vld [vmem:[%s5479_s7 + $0x60] sm:$0xff] }
 0x1ce   : > { %3391 = vmatmul.msk.f32.gmra.mxu3 %vm1991_vm2, %v1990_v43  ;;  %2322 = vmatpush.msrb.mxu0 %v2298_v41  ;;  %v2506_v41 = vld [vmem:[%s5479_s7 + $0x290] sm:$0xff] }
 0x1cf   : > { %2205 = vmatpush.msrb.mxu2 %v2197_v13  ;;  %2238 = vmatpush.msrb.mxu3 %v2203_v24  ;;  %v2291_v24 = vld [vmem:[%s5479_s7 + $0xf8] sm:$0xff] }
 0x1d0   : > { %2345 = vmatpush.msrb.mxu1 %v2299_v19  ;;  %2323 = vmatpush.msrb.mxu0 %v2296_v60  ;;  %v2507_v19 = vld [vmem:[%s5479_s7 + $0x298] sm:$0xff]  ;;  %v2418_v60 = vld [vmem:[%s5479_s7 + $0x1a0] sm:$0xff] }
 0x1d1   : > { %2206 = vmatpush.msrb.mxu2 %v2196_v7  ;;  %2239 = vmatpush.msrb.mxu3 %v2202_v15  ;;  %v2289_v15 = vld [vmem:[%s5479_s7 + $0xe8] sm:$0xff] }
 0x1d2   : > { %2324 = vmatpush.msrb.mxu0 %v2294_v10  ;;  %v2416_v10 = vld [vmem:[%s5479_s7 + $0x190] sm:$0xff] }
 0x1d3   : > { %2207 = vmatpush.msrb.mxu2 %v2195_v44  ;;  %2240 = vmatpush.msrb.mxu3 %v2201_v56  ;;  %v2287_v56 = vld [vmem:[%s5479_s7 + $0xd8] sm:$0xff] }
 0x1d4   : > { %3393 = vmatmul.msk.f32.vlgmr.msra.gmra.mxu2 %vm1991_vm2, %v2051_v42  ;;  %2325 = vmatpush.msrb.mxu0 %v2292_v49  ;;  %v2497_v49 = vld [vmem:[%s5479_s7 + $0x248] sm:$0xff] }
 0x1d5   : > { %2208 = vmatpush.msrb.mxu2 %v2194_v47  ;;  %2241 = vmatpush.msrb.mxu3 %v2200_v57  ;;  %v2285_v57 = vld [vmem:[%s5479_s7 + $0xc8] sm:$0xff] }
 0x1d6   : > { %3396 = vmatmul.msk.f32.vlgmr.msra.gmra.mxu3 %vm1991_vm2, %v2051_v42 }
 0x1d7   : > { %2209 = vmatpush.msrb.mxu2 %v2193_v8  ;;  %2242 = vmatpush.msrb.mxu3 %v2199_v32  ;;  %v2437_v32 = vld [vmem:[%s5479_s7 + $0x238] sm:$0xff] }
 0x1d9   : > { %2210 = vmatpush.msrb.mxu2 %v2192_v45  ;;  %2370 = vmatpush.msra.mxu3 %v2280_v33  ;;  %v2297_v45 = vld [vmem:[%s5479_s7 + $0x128] sm:$0xff]  ;;  %v2516_v33 = vld [vmem:[%s5479_s7 + $0x2e0] sm:$0xff] }
 0x1da   : > { %2346 = vmatpush.msrb.mxu1 %v2297_v45  ;;  %v2419_v45 = vld [vmem:[%s5479_s7 + $0x1a8] sm:$0xff] }
 0x1db   : > { %2211 = vmatpush.msrb.mxu2 %v2191_v0  ;;  %2371 = vmatpush.msra.mxu3 %v2278_v46  ;;  %v2269_v0 = vld [vmem:[%s5479_s7 + $0x58] sm:$0xff]  ;;  %v2514_v46 = vld [vmem:[%s5479_s7 + $0x2d0] sm:$0xff] }
 0x1dc   : > { %3394 = vmatmul.msk.f32.gmra.mxu2 %vm1991_vm2, %v2052_v52 }
 0x1dd   : > { %2212 = vmatpush.msrb.mxu2 %v2190_v53  ;;  %2372 = vmatpush.msra.mxu3 %v2276_v61  ;;  %v2295_v53 = vld [vmem:[%s5479_s7 + $0x118] sm:$0xff]  ;;  %v2512_v61 = vld [vmem:[%s5479_s7 + $0x2c0] sm:$0xff] }
 0x1de   : > { %3397 = vmatmul.msk.f32.gmra.mxu3 %vm1991_vm2, %v2052_v52  ;;  %2347 = vmatpush.msrb.mxu1 %v2295_v53  ;;  %v2417_v53 = vld [vmem:[%s5479_s7 + $0x198] sm:$0xff] }
 0x1df   : > { %2213 = vmatpush.msrb.mxu2 %v2189_v48  ;;  %2373 = vmatpush.msra.mxu3 %v2274_v3  ;;  %v2267_v48 = vld [vmem:[%s5479_s7 + $0x48] sm:$0xff]  ;;  %v2511_v3 = vld [vmem:[%s5479_s7 + $0x2b8] sm:$0xff] }
 0x1e1   : > { %2214 = vmatpush.msrb.mxu2 %v2188_v17  ;;  %2374 = vmatpush.msra.mxu3 %v2272_v4  ;;  %v2293_v17 = vld [vmem:[%s5479_s7 + $0x108] sm:$0xff]  ;;  %v2426_v4 = vld [vmem:[%s5479_s7 + $0x1e0] sm:$0xff] }
 0x1e2   : > { %2348 = vmatpush.msrb.mxu1 %v2293_v17 }
 0x1e3   : > { %2215 = vmatpush.msrb.mxu2 %v2187_v55  ;;  %2375 = vmatpush.msra.mxu3 %v2270_v36  ;;  %v2290_v55 = vld [vmem:[%s5479_s7 + $0xf0] sm:$0xff] }
 0x1e4   : > { %2326 = vmatpush.msrb.mxu0 %v2290_v55  ;;  %2349 = vmatpush.msrb.mxu1 %v2291_v24  ;;  %v2424_v36 = vld [vmem:[%s5479_s7 + $0x1d0] sm:$0xff] }
 0x1e5   : > { %2216 = vmatpush.msrb.mxu2 %v2186_v26  ;;  %2376 = vmatpush.msra.mxu3 %v2268_v9  ;;  %v2288_v26 = vld [vmem:[%s5479_s7 + $0xe0] sm:$0xff]  ;;  %v2498_v9 = vld [vmem:[%s5479_s7 + $0x250] sm:$0xff] }
 0x1e6   : > { %2327 = vmatpush.msrb.mxu0 %v2288_v26  ;;  %2350 = vmatpush.msrb.mxu1 %v2289_v15 }
 0x1e7   : > { %2217 = vmatpush.msrb.mxu2 %v2185_v51  ;;  %2377 = vmatpush.msra.mxu3 %v2266_v16  ;;  %v2286_v51 = vld [vmem:[%s5479_s7 + $0xd0] sm:$0xff] }
 0x1e8   : > { %2328 = vmatpush.msrb.mxu0 %v2286_v51  ;;  %2351 = vmatpush.msrb.mxu1 %v2287_v56 }
 0x1e9   : > { %2218 = vmatpush.msrb.mxu2 %v2184_v54  ;;  %2378 = vmatpush.msra.mxu3 %v2264_v27  ;;  %v2284_v54 = vld [vmem:[%s5479_s7 + $0xc0] sm:$0xff] }
 0x1ea   : > { %2329 = vmatpush.msrb.mxu0 %v2284_v54  ;;  %2352 = vmatpush.msrb.mxu1 %v2285_v57  ;;  %v2414_v27 = vld [vmem:[%s5479_s7 + $0x180] sm:$0xff]  ;;  %v2600_v57 = vld [vmem:[%s5479_s7 + $0x3b0] sm:$0xff] }
 0x1eb   : > { %2219 = vmatpush.msrb.mxu2 %v2183_v29  ;;  %2379 = vmatpush.msra.mxu3 %v2262_v30  ;;  %v2436_v29 = vld [vmem:[%s5479_s7 + $0x230] sm:$0xff] }
 0x1ed   : > { %2393 = vmatpush.msra.mxu2 %v2281_v5  ;;  %2380 = vmatpush.msra.mxu3 %v2260_v50  ;;  %v2517_v5 = vld [vmem:[%s5479_s7 + $0x2e8] sm:$0xff] }
 0x1ef   : > { %2394 = vmatpush.msra.mxu2 %v2279_v22  ;;  %2381 = vmatpush.msra.mxu3 %v2258_v25  ;;  %v2515_v22 = vld [vmem:[%s5479_s7 + $0x2d8] sm:$0xff] }
 0x1f1   : > { %2395 = vmatpush.msra.mxu2 %v2277_v39  ;;  %v2430_v39 = vld [vmem:[%s5479_s7 + $0x200] sm:$0xff] }
 0x1f3   : > { %2396 = vmatpush.msra.mxu2 %v2275_v40  ;;  %v2428_v40 = vld [vmem:[%s5479_s7 + $0x1f0] sm:$0xff] }
 0x1f5   : > { %2397 = vmatpush.msra.mxu2 %v2273_v6  ;;  %v2427_v6 = vld [vmem:[%s5479_s7 + $0x1e8] sm:$0xff] }
 0x1f7   : > { %2398 = vmatpush.msra.mxu2 %v2271_v20  ;;  %v2425_v20 = vld [vmem:[%s5479_s7 + $0x1d8] sm:$0xff] }
 0x1f9   : > { %2399 = vmatpush.msra.mxu2 %v2269_v0  ;;  %v2499_v0 = vld [vmem:[%s5479_s7 + $0x258] sm:$0xff] }
 0x1fb   : > { %2400 = vmatpush.msra.mxu2 %v2267_v48  ;;  %v2496_v48 = vld [vmem:[%s5479_s7 + $0x240] sm:$0xff] }
 0x1fd   : > { %2401 = vmatpush.msra.mxu2 %v2265_v21  ;;  %v2415_v21 = vld [vmem:[%s5479_s7 + $0x188] sm:$0xff] }
 0x1ff   : > { %2402 = vmatpush.msra.mxu2 %v2263_v11 }
 0x201   : > { %2403 = vmatpush.msra.mxu2 %v2261_v31 }
 0x203   : > { %2404 = vmatpush.msra.mxu2 %v2259_v14 }
 0x247   : > { %v2022_v35 = vpop.f32.mrf.mxu2 }
 0x249   : > { %v2045_v12 = vpop.f32.mrf.mxu3 }
 0x24f   : > { %v2025_v37 = vpop.f32.mrf.mxu2 }
 0x251   : > { %v2048_v43 = vpop.f32.mrf.mxu3 }
 0x257   : > { %v2076_v58 = vpop.f32.mrf.mxu2 }
 0x258   : > { %v2105_v13 = vmax.f32 %v2022_v35, %v2076_v58  ;;  %v2513_v35 = vld [vmem:[%s5479_s7 + $0x2c8] sm:$0xff]  ;;  %v2422_v58 = vld [vmem:[%s5479_s7 + $0x1c0] sm:$0xff] }
 0x259   : > { %v2099_v7 = vpop.f32.mrf.mxu3 }
 0x25a   : > { %v2106_v44 = vmax.f32 %v2045_v12, %v2099_v7  ;;  %2153 = vmatmul.f32.vlgmr.msra.gmra.mxu0 %v2105_v13  ;;  %2220 = vmatmul.f32.vlgmr.msrb.gmra.mxu2 %v2105_v13  ;;  %v2429_v12 = vld [vmem:[%s5479_s7 + $0x1f8] sm:$0xff]  ;;  %v2423_v13 = vld [vmem:[%s5479_s7 + $0x1c8] sm:$0xff]  ;;  %v2502_v7 = vld [vmem:[%s5479_s7 + $0x270] sm:$0xff] }
 0x25b   : > { %2553 = vmatpush.msrb.mxu2 %v2519_v28  ;;  %2448 = vmatpush.msra.mxu0 %v2436_v29  ;;  %v2601_v29 = vld [vmem:[%s5479_s7 + $0x3b8] sm:$0xff] }
 0x25c   : > { %3398 = vmatmul.msk.f32.vlgmr.msra.gmra.mxu1 %vm2130_vm3, %v2106_v44  ;;  %3400 = vmatmul.msk.f32.vlgmr.msrb.gmra.mxu3 %vm2130_vm3, %v2106_v44  ;;  %v2503_v44 = vld [vmem:[%s5479_s7 + $0x278] sm:$0xff] }
 0x25d   : > { %2530 = vmatpush.msrb.mxu3 %v2518_v62  ;;  %2471 = vmatpush.msra.mxu1 %v2437_v32  ;;  %v2598_v32 = vld [vmem:[%s5479_s7 + $0x3a0] sm:$0xff] }
 0x25e   : > { %2554 = vmatpush.msrb.mxu2 %v2517_v5  ;;  %2449 = vmatpush.msra.mxu0 %v2434_v59  ;;  %v2596_v5 = vld [vmem:[%s5479_s7 + $0x390] sm:$0xff]  ;;  %v2597_v59 = vld [vmem:[%s5479_s7 + $0x398] sm:$0xff] }
 0x25f   : > { %v2079_v42 = vpop.f32.mrf.mxu2  ;;  %2531 = vmatpush.msrb.mxu3 %v2516_v33  ;;  %2472 = vmatpush.msra.mxu1 %v2435_v18  ;;  %v2599_v33 = vld [vmem:[%s5479_s7 + $0x3a8] sm:$0xff] }
 0x260   : > { %v2107_v47 = vmax.f32 %v2025_v37, %v2079_v42  ;;  %2555 = vmatpush.msrb.mxu2 %v2515_v22  ;;  %2450 = vmatpush.msra.mxu0 %v2432_v63  ;;  %v2504_v37 = vld [vmem:[%s5479_s7 + $0x280] sm:$0xff]  ;;  %v2420_v42 = vld [vmem:[%s5479_s7 + $0x1b0] sm:$0xff]  ;;  %v2595_v22 = vld [vmem:[%s5479_s7 + $0x388] sm:$0xff] }
 0x261   : > { %v2102_v8 = vpop.f32.mrf.mxu3  ;;  %2532 = vmatpush.msrb.mxu3 %v2514_v46  ;;  %2473 = vmatpush.msra.mxu1 %v2433_v23  ;;  %v2594_v46 = vld [vmem:[%s5479_s7 + $0x380] sm:$0xff]  ;;  %v2592_v23 = vld [vmem:[%s5479_s7 + $0x370] sm:$0xff] }
 0x262   : > { %v2108_v52 = vmax.f32 %v2048_v43, %v2102_v8  ;;  %2156 = vmatmul.f32.gmra.mxu0 %v2107_v47  ;;  %2223 = vmatmul.f32.gmra.mxu2 %v2107_v47  ;;  %v2505_v43 = vld [vmem:[%s5479_s7 + $0x288] sm:$0xff]  ;;  %v2421_v47 = vld [vmem:[%s5479_s7 + $0x1b8] sm:$0xff]  ;;  %v2500_v8 = vld [vmem:[%s5479_s7 + $0x260] sm:$0xff] }
 0x263   : > { %2533 = vmatpush.msrb.mxu3 %v2512_v61  ;;  %2556 = vmatpush.msrb.mxu2 %v2513_v35  ;;  %v2593_v61 = vld [vmem:[%s5479_s7 + $0x378] sm:$0xff]  ;;  %v2590_v35 = vld [vmem:[%s5479_s7 + $0x360] sm:$0xff] }
 0x264   : > { %3399 = vmatmul.msk.f32.gmra.mxu1 %vm2130_vm3, %v2108_v52  ;;  %3401 = vmatmul.msk.f32.gmra.mxu3 %vm2130_vm3, %v2108_v52  ;;  %v2501_v52 = vld [vmem:[%s5479_s7 + $0x268] sm:$0xff] }
 0x265   : > { %2451 = vmatpush.msra.mxu0 %v2430_v39  ;;  %2474 = vmatpush.msra.mxu1 %v2431_v1  ;;  %v2591_v39 = vld [vmem:[%s5479_s7 + $0x368] sm:$0xff] }
 0x266   : > { %2534 = vmatpush.msrb.mxu3 %v2510_v2  ;;  %2557 = vmatpush.msrb.mxu2 %v2511_v3  ;;  %v2588_v2 = vld [vmem:[%s5479_s7 + $0x350] sm:$0xff]  ;;  %v2589_v3 = vld [vmem:[%s5479_s7 + $0x358] sm:$0xff] }
 0x267   : > { %2452 = vmatpush.msra.mxu0 %v2428_v40  ;;  %2475 = vmatpush.msra.mxu1 %v2429_v12  ;;  %v2586_v12 = vld [vmem:[%s5479_s7 + $0x340] sm:$0xff] }
 0x268   : > { %2535 = vmatpush.msrb.mxu3 %v2508_v34  ;;  %2558 = vmatpush.msrb.mxu2 %v2509_v38  ;;  %v2587_v34 = vld [vmem:[%s5479_s7 + $0x348] sm:$0xff]  ;;  %v2584_v38 = vld [vmem:[%s5479_s7 + $0x330] sm:$0xff] }
 0x269   : > { %2453 = vmatpush.msra.mxu0 %v2426_v4  ;;  %2476 = vmatpush.msra.mxu1 %v2427_v6  ;;  %v2585_v4 = vld [vmem:[%s5479_s7 + $0x338] sm:$0xff]  ;;  %v2582_v6 = vld [vmem:[%s5479_s7 + $0x320] sm:$0xff] }
 0x26a   : > { %2536 = vmatpush.msrb.mxu3 %v2506_v41  ;;  %2559 = vmatpush.msrb.mxu2 %v2507_v19  ;;  %v2583_v41 = vld [vmem:[%s5479_s7 + $0x328] sm:$0xff] }
 0x26b   : > { %2454 = vmatpush.msra.mxu0 %v2424_v36  ;;  %2477 = vmatpush.msra.mxu1 %v2425_v20  ;;  %v2580_v36 = vld [vmem:[%s5479_s7 + $0x310] sm:$0xff]  ;;  %v2581_v20 = vld [vmem:[%s5479_s7 + $0x318] sm:$0xff] }
 0x26c   : > { %2537 = vmatpush.msrb.mxu3 %v2504_v37  ;;  %2560 = vmatpush.msrb.mxu2 %v2505_v43  ;;  %v2578_v37 = vld [vmem:[%s5479_s7 + $0x300] sm:$0xff]  ;;  %v2579_v43 = vld [vmem:[%s5479_s7 + $0x308] sm:$0xff] }
 0x26d   : > { %2455 = vmatpush.msra.mxu0 %v2422_v58  ;;  %2478 = vmatpush.msra.mxu1 %v2423_v13 }
 0x26e   : > { %2538 = vmatpush.msrb.mxu3 %v2502_v7  ;;  %2561 = vmatpush.msrb.mxu2 %v2503_v44 }
 0x26f   : > { %2456 = vmatpush.msra.mxu0 %v2420_v42  ;;  %2479 = vmatpush.msra.mxu1 %v2421_v47 }
 0x270   : > { %2539 = vmatpush.msrb.mxu3 %v2500_v8  ;;  %2562 = vmatpush.msrb.mxu2 %v2501_v52 }
 0x271   : > { %2457 = vmatpush.msra.mxu0 %v2418_v60  ;;  %2480 = vmatpush.msra.mxu1 %v2419_v45 }
 0x272   : > { %2540 = vmatpush.msrb.mxu3 %v2498_v9  ;;  %2563 = vmatpush.msrb.mxu2 %v2499_v0 }
 0x273   : > { %2458 = vmatpush.msra.mxu0 %v2416_v10  ;;  %2481 = vmatpush.msra.mxu1 %v2417_v53 }
 0x274   : > { %2541 = vmatpush.msrb.mxu3 %v2496_v48  ;;  %2564 = vmatpush.msrb.mxu2 %v2497_v49 }
 0x275   : > { %2459 = vmatpush.msra.mxu0 %v2414_v27  ;;  %2482 = vmatpush.msra.mxu1 %v2415_v21  ;;  %v2658_v21 = vld [vmem:[%s5480_s8] sm:$0x3] }
 0x2d7   : > { %v2154_v16 = vpop.f32.mrf.mxu0 }
 0x2d9   : > { %v2177_v17 = vpop.f32.mrf.mxu1 }
 0x2da   : > { %v2178_v30 = vadd.f32 %v2177_v17, %v2154_v16 }
 0x2dd   : > { %v2221_v55 = vpop.f32.mrf.mxu2 }
 0x2df   : > { %v2244_v24 = vpop.f32.mrf.mxu3  ;;  %v2157_v15 = vpop.f32.mrf.mxu0 }
 0x2e0   : > { %v2245_v11 = vadd.f32 %v2244_v24, %v2221_v55 }
 0x2e1   : > { %v2180_v50 = vpop.f32.mrf.mxu1 }
 0x2e2   : > { %v2250_v26 = vmax.f32 %v2178_v30, %v2245_v11  ;;  %v2181_v56 = vadd.f32 %v2180_v50, %v2157_v15  ;;  %v2660_v30 = vperm.slane %v2658_v21, 0 }
 0x2e4   : > { %2253 = vst.msk [vmem:[#allocation2] sm:$0xff] %vm2252_vm4, %v2250_v26 }
 0x2e5   : > { %v2224_v31 = vpop.f32.mrf.mxu2 }
 0x2e7   : > { %v2247_v51 = vpop.f32.mrf.mxu3 }
 0x2e8   : > { %v2248_v25 = vadd.f32 %v2247_v51, %v2224_v31 }
 0x2ea   : > { %v2251_v14 = vmax.f32 %v2181_v56, %v2248_v25  ;;  %v2661_v56 = vperm.slane %v2658_v21, 1  ;;  %v2856_v21 = vld [vmem:[%s5484_s12 + $0x38] sm:$0xff] }
 0x2eb   : > { %v2256_v54 = vld [vmem:[#allocation2] sm:$0xff] }
 0x2ec   : > { %2255 = vst.msk [vmem:[#allocation2 + $0x8] sm:$0x3f] %vm2254_vm5, %v2251_v14  ;;  %3406 = vmatmul.msk.f32.vlgmr.msra.gmra.mxu3 %vm2252_vm4, %v2256_v54  ;;  %3408 = vmatmul.msk.f32.vlgmr.msra.gmra.mxu2 %vm2252_vm4, %v2256_v54 }
 0x2f3   : > { %v2282_v62 = vld [vmem:[#allocation2 + $0x1] sm:$0xff]  ;;  %v2283_v18 = vld [vmem:[#allocation2 + $0x9] sm:$0x3]  ;;  %v2495_v40 = vld [vmem:[#allocation2 + $0xb] sm:$0x3] }
 0x2f4   : > { %v2257_v28 = vld [vmem:[#allocation2 + $0x8] sm:$0x3]  ;;  %3402 = vmatmul.msk.f32.vlgmr.msrb.gmra.mxu0 %vm2252_vm4, %v2282_v62  ;;  %3404 = vmatmul.msk.f32.vlgmr.msrb.gmra.mxu1 %vm2252_vm4, %v2282_v62  ;;  %v2413_v19 = vld [vmem:[#allocation2 + $0xa] sm:$0x3]  ;;  %v2577_v13 = vld [vmem:[#allocation2 + $0xc] sm:$0x3] }
 0x2f5   : > { %3407 = vmatmul.msk.f32.gmra.mxu3 %vm2252_vm4, %v2257_v28  ;;  %3409 = vmatmul.msk.f32.gmra.mxu2 %vm2252_vm4, %v2257_v28  ;;  %v2494_v63 = vld [vmem:[#allocation2 + $0x3] sm:$0xff] }
 0x2f6   : > { %2612 = vmatpush.msrb.mxu0 %v2600_v57  ;;  %2635 = vmatpush.msrb.mxu1 %v2601_v29  ;;  %v2412_v1 = vld [vmem:[#allocation2 + $0x2] sm:$0xff] }
 0x2f7   : > { %v2576_v58 = vld [vmem:[#allocation2 + $0x4] sm:$0xff] }
 0x2f8   : > { %2613 = vmatpush.msrb.mxu0 %v2598_v32  ;;  %2636 = vmatpush.msrb.mxu1 %v2599_v33 }
 0x2fa   : > { %2614 = vmatpush.msrb.mxu0 %v2596_v5  ;;  %2637 = vmatpush.msrb.mxu1 %v2597_v59 }
 0x2fc   : > { %3403 = vmatmul.msk.f32.gmra.mxu0 %vm2252_vm4, %v2283_v18  ;;  %3405 = vmatmul.msk.f32.gmra.mxu1 %vm2252_vm4, %v2283_v18 }
 0x2fd   : > { %3414 = vmatmul.msk.f32.vlgmr.msrb.gmra.mxu3 %vm2252_vm4, %v2494_v63  ;;  %3416 = vmatmul.msk.f32.vlgmr.msrb.gmra.mxu2 %vm2252_vm4, %v2494_v63 }
 0x2fe   : > { %2615 = vmatpush.msrb.mxu0 %v2594_v46  ;;  %2638 = vmatpush.msrb.mxu1 %v2595_v22 }
 0x300   : > { %2616 = vmatpush.msrb.mxu0 %v2592_v23  ;;  %2639 = vmatpush.msrb.mxu1 %v2593_v61 }
 0x302   : > { %2617 = vmatpush.msrb.mxu0 %v2590_v35  ;;  %2640 = vmatpush.msrb.mxu1 %v2591_v39 }
 0x304   : > { %3410 = vmatmul.msk.f32.vlgmr.msra.gmra.mxu0 %vm2252_vm4, %v2412_v1  ;;  %3412 = vmatmul.msk.f32.vlgmr.msra.gmra.mxu1 %vm2252_vm4, %v2412_v1 }
 0x305   : > { %3415 = vmatmul.msk.f32.gmra.mxu3 %vm2252_vm4, %v2495_v40  ;;  %3417 = vmatmul.msk.f32.gmra.mxu2 %vm2252_vm4, %v2495_v40 }
 0x306   : > { %2618 = vmatpush.msrb.mxu0 %v2588_v2  ;;  %2641 = vmatpush.msrb.mxu1 %v2589_v3 }
 0x308   : > { %2619 = vmatpush.msrb.mxu0 %v2586_v12  ;;  %2642 = vmatpush.msrb.mxu1 %v2587_v34  ;;  %v2801_v34 = vld [vmem:[%s5483_s11 + $0x78] sm:$0xff] }
 0x30a   : > { %2620 = vmatpush.msrb.mxu0 %v2584_v38  ;;  %2643 = vmatpush.msrb.mxu1 %v2585_v4  ;;  %v2800_v38 = vld [vmem:[%s5483_s11 + $0x70] sm:$0xff] }
 0x30c   : > { %3411 = vmatmul.msk.f32.gmra.mxu0 %vm2252_vm4, %v2413_v19  ;;  %3413 = vmatmul.msk.f32.gmra.mxu1 %vm2252_vm4, %v2413_v19 }
 0x30d   : > { %2621 = vmatpush.msrb.mxu0 %v2582_v6  ;;  %2644 = vmatpush.msrb.mxu1 %v2583_v41  ;;  %v2799_v6 = vld [vmem:[%s5483_s11 + $0x68] sm:$0xff] }
 0x30f   : > { %2622 = vmatpush.msrb.mxu0 %v2580_v36  ;;  %2645 = vmatpush.msrb.mxu1 %v2581_v20 }
 0x311   : > { %2623 = vmatpush.msrb.mxu0 %v2578_v37  ;;  %2646 = vmatpush.msrb.mxu1 %v2579_v43 }
 0x313   : > { %2809 = vmatpush.msra.mxu0 %v2801_v34  ;;  %v2924_v34 = vld [vmem:[%s5485_s13 + $0x58] sm:$0xff] }
 0x314   : > { %3418 = vmatmul.msk.f32.vlgmr.msrb.gmra.mxu0 %vm2252_vm4, %v2576_v58  ;;  %3420 = vmatmul.msk.f32.vlgmr.msrb.gmra.mxu1 %vm2252_vm4, %v2576_v58 }
 0x315   : > { %2810 = vmatpush.msra.mxu0 %v2800_v38  ;;  %v2963_v38 = vld [vmem:[%s5485_s13 + $0xe0] sm:$0xff] }
 0x317   : > { %2811 = vmatpush.msra.mxu0 %v2799_v6  ;;  %v3040_v6 = vld [vmem:[%s5485_s13 + $0x1e8] sm:$0xff] }
 0x31c   : > { %3419 = vmatmul.msk.f32.gmra.mxu0 %vm2252_vm4, %v2577_v13  ;;  %3421 = vmatmul.msk.f32.gmra.mxu1 %vm2252_vm4, %v2577_v13  ;;  %v2688_v13 = vld [vmem:[%s5481_s9] sm:$0x1f] }
 0x36f   : > { %v2383_v42 = vpop.f32.mrf.mxu3  ;;  %v2406_v47 = vpop.f32.mrf.mxu2 }
 0x371   : > { %v2331_v7 = vpop.f32.mrf.mxu0  ;;  %v2354_v44 = vpop.f32.mrf.mxu1 }
 0x372   : > { %v2384_v16 = vadd.f32 %v2383_v42, %v2331_v7  ;;  %v2407_v48 = vadd.f32 %v2406_v47, %v2354_v44  ;;  %v2740_v7 = vld [vmem:[%s5482_s10] sm:$0x1f]  ;;  %v2864_v42 = vld [vmem:[%s5484_s12 + $0x78] sm:$0xff] }
 0x378   : > { %v2386_v9 = vpop.f32.mrf.mxu3  ;;  %v2409_v0 = vpop.f32.mrf.mxu2 }
 0x379   : > { %v2334_v8 = vpop.f32.mrf.mxu0  ;;  %v2357_v52 = vpop.f32.mrf.mxu1 }
 0x37a   : > { %v2387_v15 = vadd.f32 %v2386_v9, %v2334_v8  ;;  %v2410_v50 = vadd.f32 %v2409_v0, %v2357_v52  ;;  %v2863_v8 = vld [vmem:[%s5484_s12 + $0x70] sm:$0xff]  ;;  %v2860_v9 = vld [vmem:[%s5484_s12 + $0x58] sm:$0xff] }
 0x37b   : > { %v2859_v0 = vld [vmem:[%s5484_s12 + $0x50] sm:$0xff] }
 0x380   : > { %v2543_v17 = vpop.f32.mrf.mxu3  ;;  %v2566_v27 = vpop.f32.mrf.mxu2 }
 0x381   : > { %v2461_v60 = vpop.f32.mrf.mxu0  ;;  %v2484_v45 = vpop.f32.mrf.mxu1 }
 0x382   : > { %v2490_v49 = vadd.f32 %v2461_v60, %v2384_v16  ;;  %v2491_v55 = vadd.f32 %v2484_v45, %v2407_v48  ;;  %v2862_v60 = vld [vmem:[%s5484_s12 + $0x68] sm:$0xff]  ;;  %v2861_v45 = vld [vmem:[%s5484_s12 + $0x60] sm:$0xff]  ;;  %v2796_v16 = vld [vmem:[%s5483_s11 + $0x50] sm:$0xff] }
 0x383   : > { %v2858_v48 = vld [vmem:[%s5484_s12 + $0x48] sm:$0xff] }
 0x384   : > { %v2572_v24 = vadd.f32 %v2543_v17, %v2490_v49  ;;  %v2573_v51 = vadd.f32 %v2566_v27, %v2491_v55  ;;  %v2795_v49 = vld [vmem:[%s5483_s11 + $0x48] sm:$0xff]  ;;  %v2857_v17 = vld [vmem:[%s5484_s12 + $0x40] sm:$0xff]  ;;  %v2793_v55 = vld [vmem:[%s5483_s11 + $0x38] sm:$0xff] }
 0x385   : > { %v2794_v27 = vld [vmem:[%s5483_s11 + $0x40] sm:$0xff] }
 0x388   : > { %v2546_v62 = vpop.f32.mrf.mxu3  ;;  %v2569_v28 = vpop.f32.mrf.mxu2 }
 0x389   : > { %v2464_v10 = vpop.f32.mrf.mxu0  ;;  %v2487_v53 = vpop.f32.mrf.mxu1 }
 0x38a   : > { %v2492_v25 = vadd.f32 %v2464_v10, %v2387_v15  ;;  %v2493_v14 = vadd.f32 %v2487_v53, %v2410_v50  ;;  %v2798_v10 = vld [vmem:[%s5483_s11 + $0x60] sm:$0xff]  ;;  %v2797_v53 = vld [vmem:[%s5483_s11 + $0x58] sm:$0xff] }
 0x38b   : > { %2812 = vmatpush.msra.mxu0 %v2798_v10  ;;  %v2853_v15 = vld [vmem:[%s5484_s12 + $0x20] sm:$0xff]  ;;  %v2919_v10 = vld [vmem:[%s5485_s13 + $0x30] sm:$0xff] }
 0x38c   : > { %v2574_v33 = vadd.f32 %v2546_v62, %v2492_v25  ;;  %v2575_v5 = vadd.f32 %v2569_v28, %v2493_v14  ;;  %v2790_v50 = vld [vmem:[%s5483_s11 + $0x20] sm:$0xff]  ;;  %v2788_v25 = vld [vmem:[%s5483_s11 + $0x10] sm:$0xff]  ;;  %v2850_v14 = vld [vmem:[%s5484_s12 + $0x8] sm:$0xff] }
 0x38d   : > { %2813 = vmatpush.msra.mxu0 %v2797_v53  ;;  %v2786_v62 = vld [vmem:[%s5483_s11] sm:$0xff]  ;;  %v2868_v28 = vld [vmem:[%s5484_s12 + $0x98] sm:$0xff]  ;;  %v3036_v53 = vld [vmem:[%s5485_s13 + $0x1c8] sm:$0xff] }
 0x38f   : > { %2814 = vmatpush.msra.mxu0 %v2796_v16  ;;  %v2958_v16 = vld [vmem:[%s5485_s13 + $0xb8] sm:$0xff] }
 0x391   : > { %v2625_v11 = vpop.f32.mrf.mxu0  ;;  %v2648_v26 = vpop.f32.mrf.mxu1  ;;  %2815 = vmatpush.msra.mxu0 %v2795_v49  ;;  %v2918_v49 = vld [vmem:[%s5485_s13 + $0x28] sm:$0xff] }
 0x392   : > { %v2654_v31 = vadd.f32 %v2625_v11, %v2572_v24  ;;  %v2655_v57 = vadd.f32 %v2648_v26, %v2573_v51  ;;  %v2855_v24 = vld [vmem:[%s5484_s12 + $0x30] sm:$0xff]  ;;  %v2854_v11 = vld [vmem:[%s5484_s12 + $0x28] sm:$0xff]  ;;  %v2789_v51 = vld [vmem:[%s5483_s11 + $0x18] sm:$0xff] }
 0x393   : > { %2816 = vmatpush.msra.mxu0 %v2794_v27  ;;  %v2791_v26 = vld [vmem:[%s5483_s11 + $0x28] sm:$0xff] }
 0x394   : > { %v2664_v54 = vadd.f32 %v2660_v30, %v2654_v31  ;;  %v2665_v32 = vadd.f32 %v2661_v56, %v2655_v57  ;;  %v2852_v31 = vld [vmem:[%s5484_s12 + $0x18] sm:$0xff]  ;;  %v2849_v57 = vld [vmem:[%s5484_s12] sm:$0xff] }
 0x395   : > { %2817 = vmatpush.msra.mxu0 %v2793_v55  ;;  %v2916_v55 = vld [vmem:[%s5485_s13 + $0x18] sm:$0xff] }
 0x396   : > { %v2668_v29 = vsub.f32 0.0, %v2664_v54  ;;  %v2669_v23 = vsub.f32 0.0, %v2665_v32  ;;  %v2787_v54 = vld [vmem:[%s5483_s11 + $0x8] sm:$0xff]  ;;  %v2805_v32 = vld [vmem:[%s5483_s11 + $0x98] sm:$0xff] }
 0x397   : > { %2841 = vmatpush.msra.mxu1 %v2805_v32  ;;  %v2956_v32 = vld [vmem:[%s5485_s13 + $0xa8] sm:$0xff] }
 0x398   : > { %v2672_v63 = vmul.f32 1.442695, %v2668_v29  ;;  %v2674_v2 = vmul.f32 1.442695, %v2669_v23  ;;  %v2867_v29 = vld [vmem:[%s5484_s12 + $0x90] sm:$0xff]  ;;  %v2926_v23 = vld [vmem:[%s5485_s13 + $0x68] sm:$0xff] }
 0x399   : > { %v2628_v59 = vpop.f32.mrf.mxu0  ;;  %v2651_v18 = vpop.f32.mrf.mxu1 }
 0x39a   : > { %v2656_v46 = vadd.f32 %v2628_v59, %v2574_v33  ;;  %v2657_v22 = vadd.f32 %v2651_v18, %v2575_v5  ;;  %3509 = vpow2.f32 %v2672_v63  ;;  %v2804_v33 = vld [vmem:[%s5483_s11 + $0x90] sm:$0xff]  ;;  %v2866_v5 = vld [vmem:[%s5484_s12 + $0x88] sm:$0xff]  ;;  %v2865_v59 = vld [vmem:[%s5484_s12 + $0x80] sm:$0xff] }
 0x39b   : > { %2842 = vmatpush.msra.mxu1 %v2804_v33  ;;  %v2803_v18 = vld [vmem:[%s5483_s11 + $0x88] sm:$0xff]  ;;  %v2927_v63 = vld [vmem:[%s5485_s13 + $0x70] sm:$0xff] }
 0x39c   : > { %v2666_v61 = vadd.f32 %v2660_v30, %v2656_v46  ;;  %v2667_v35 = vadd.f32 %v2661_v56, %v2657_v22  ;;  %v2792_v30 = vld [vmem:[%s5483_s11 + $0x30] sm:$0xff]  ;;  %v2802_v46 = vld [vmem:[%s5483_s11 + $0x80] sm:$0xff]  ;;  %v2928_v22 = vld [vmem:[%s5485_s13 + $0x78] sm:$0xff] }
 0x39d   : > { %2818 = vmatpush.msra.mxu0 %v2792_v30  ;;  %v2851_v56 = vld [vmem:[%s5484_s12 + $0x10] sm:$0xff]  ;;  %2843 = vmatpush.msra.mxu1 %v2803_v18  ;;  %v2914_v30 = vld [vmem:[%s5485_s13 + $0x8] sm:$0xff]  ;;  %v3073_v18 = vld [vmem:[%s5485_s13 + $0x240] sm:$0xff] }
 0x39e   : > { %v2670_v39 = vsub.f32 0.0, %v2666_v61  ;;  %v2671_v1 = vsub.f32 0.0, %v2667_v35  ;;  %v2966_v61 = vld [vmem:[%s5485_s13 + $0xf8] sm:$0xff]  ;;  %v2965_v35 = vld [vmem:[%s5485_s13 + $0xf0] sm:$0xff]  ;;  %v3074_v33 = vld [vmem:[%s5485_s13 + $0x248] sm:$0xff] }
 0x39f   : > { %2819 = vmatpush.msra.mxu0 %v2791_v26  ;;  %2844 = vmatpush.msra.mxu1 %v2802_v46  ;;  %v3032_v46 = vld [vmem:[%s5485_s13 + $0x1a8] sm:$0xff] }
 0x3a0   : > { %v2676_v3 = vmul.f32 1.442695, %v2670_v39  ;;  %v2678_v40 = vmul.f32 1.442695, %v2671_v1  ;;  %v3510_v12 = vpop.eup %3509  ;;  %v3004_v39 = vld [vmem:[%s5485_s13 + $0x178] sm:$0xff]  ;;  %v2925_v1 = vld [vmem:[%s5485_s13 + $0x60] sm:$0xff] }
 0x3a1   : > { %v2680_v41 = vadd.f32 1.0, %v3510_v12  ;;  %2820 = vmatpush.msra.mxu0 %v2790_v50  ;;  %2929 = vmatpush.msrb.mxu1 %v2928_v22  ;;  %v3041_v12 = vld [vmem:[%s5485_s13 + $0x1f0] sm:$0xff]  ;;  %v3080_v50 = vld [vmem:[%s5485_s13 + $0x278] sm:$0xff] }
 0x3a2   : > { %3511 = vpow2.f32 %v2676_v3  ;;  %v2964_v3 = vld [vmem:[%s5485_s13 + $0xe8] sm:$0xff]  ;;  %v2954_v22 = vld [vmem:[%s5485_s13 + $0x98] sm:$0xff] }
 0x3a3   : > { %3513 = vpow2.f32 %v2674_v2  ;;  %2821 = vmatpush.msra.mxu0 %v2789_v51  ;;  %2930 = vmatpush.msrb.mxu1 %v2927_v63  ;;  %v3042_v2 = vld [vmem:[%s5485_s13 + $0x1f8] sm:$0xff]  ;;  %v3078_v51 = vld [vmem:[%s5485_s13 + $0x268] sm:$0xff] }
 0x3a4   : > { %3515 = vpow2.f32 %v2678_v40  ;;  %v3003_v40 = vld [vmem:[%s5485_s13 + $0x170] sm:$0xff]  ;;  %v3072_v63 = vld [vmem:[%s5485_s13 + $0x238] sm:$0xff] }
 0x3a5   : > { %2822 = vmatpush.msra.mxu0 %v2788_v25  ;;  %2931 = vmatpush.msrb.mxu1 %v2926_v23  ;;  %v3076_v25 = vld [vmem:[%s5485_s13 + $0x258] sm:$0xff]  ;;  %v2993_v23 = vld [vmem:[%s5485_s13 + $0x120] sm:$0xff] }
 0x3a7   : > { %2823 = vmatpush.msra.mxu0 %v2787_v54  ;;  %2932 = vmatpush.msrb.mxu1 %v2925_v1  ;;  %v3034_v54 = vld [vmem:[%s5485_s13 + $0x1b8] sm:$0xff] }
 0x3a8   : > { %v3512_v4 = vpop.eup %3511  ;;  %v2992_v1 = vld [vmem:[%s5485_s13 + $0x118] sm:$0xff] }
 0x3a9   : > { %v2682_v19 = vadd.f32 1.0, %v3512_v4  ;;  %v3514_v36 = vpop.eup %3513  ;;  %2824 = vmatpush.msra.mxu0 %v2786_v62  ;;  %v3002_v4 = vld [vmem:[%s5485_s13 + $0x168] sm:$0xff]  ;;  %2933 = vmatpush.msrb.mxu1 %v2924_v34  ;;  %v3075_v62 = vld [vmem:[%s5485_s13 + $0x250] sm:$0xff] }
 0x3aa   : > { %v3516_v20 = vpop.eup %3515  ;;  %v2681_v43 = vadd.f32 1.0, %v3514_v36  ;;  %v2962_v36 = vld [vmem:[%s5485_s13 + $0xd8] sm:$0xff]  ;;  %v3070_v34 = vld [vmem:[%s5485_s13 + $0x228] sm:$0xff] }
 0x3ab   : > { %3517 = vrcp.f32 %v2682_v19  ;;  %v2683_v37 = vadd.f32 1.0, %v3516_v20  ;;  %3005 = vmatpush.msrb.mxu0 %v3004_v39  ;;  %v2923_v19 = vld [vmem:[%s5485_s13 + $0x50] sm:$0xff]  ;;  %v3039_v20 = vld [vmem:[%s5485_s13 + $0x1e0] sm:$0xff] }
 0x3ac   : > { %3519 = vrcp.f32 %v2680_v41  ;;  %v3001_v41 = vld [vmem:[%s5485_s13 + $0x160] sm:$0xff]  ;;  %2934 = vmatpush.msrb.mxu1 %v2923_v19  ;;  %v3071_v39 = vld [vmem:[%s5485_s13 + $0x230] sm:$0xff] }
 0x3ad   : > { %3521 = vrcp.f32 %v2683_v37  ;;  %3006 = vmatpush.msrb.mxu0 %v3003_v40  ;;  %v3000_v37 = vld [vmem:[%s5485_s13 + $0x158] sm:$0xff]  ;;  %v3029_v40 = vld [vmem:[%s5485_s13 + $0x190] sm:$0xff]  ;;  %v2989_v19 = vld [vmem:[%s5485_s13 + $0x100] sm:$0xff] }
 0x3ae   : > { %3523 = vrcp.f32 %v2681_v43  ;;  %v2922_v43 = vld [vmem:[%s5485_s13 + $0x48] sm:$0xff] }
 0x3af   : > { %3007 = vmatpush.msrb.mxu0 %v3002_v4  ;;  %2935 = vmatpush.msrb.mxu1 %v2922_v43  ;;  %v3069_v4 = vld [vmem:[%s5485_s13 + $0x220] sm:$0xff]  ;;  %v3066_v43 = vld [vmem:[%s5485_s13 + $0x208] sm:$0xff] }
 0x3b1   : > { %v3518_v58 = vpop.eup %3517  ;;  %3008 = vmatpush.msrb.mxu0 %v3001_v41  ;;  %v3028_v41 = vld [vmem:[%s5485_s13 + $0x188] sm:$0xff] }
 0x3b2   : > { %3422 = vmatpush.msk.msra.mxu3 %vm2693_vm6, %v3518_v58  ;;  %3426 = vmatpush.msk.msra.mxu2 %vm2693_vm6, %v3518_v58  ;;  %v3520_v44 = vpop.eup %3519  ;;  %v2961_v58 = vld [vmem:[%s5485_s13 + $0xd0] sm:$0xff] }
 0x3b3   : > { %v3522_v47 = vpop.eup %3521  ;;  %3009 = vmatpush.msrb.mxu0 %v3000_v37  ;;  %v3067_v37 = vld [vmem:[%s5485_s13 + $0x210] sm:$0xff] }
 0x3b4   : > { %2715 = vmatpush.msra.mxu3 %v3520_v44  ;;  %2759 = vmatpush.msra.mxu2 %v3520_v44  ;;  %v3524_v52 = vpop.eup %3523 }
 0x3b5   : > { %3423 = vmatmul.msk.f32.vlgmr.msra.gmra.mxu3 %vm2689_vm7, %v2688_v13  ;;  %3427 = vmatmul.msk.f32.vlgmr.msra.gmra.mxu2 %vm2689_vm7, %v2740_v7 }
 0x3b6   : > { %3424 = vmatpush.msk.msrb.mxu3 %vm2693_vm6, %v3522_v47  ;;  %2869 = vmatpush.msrb.mxu2 %v2864_v42  ;;  %v2921_v42 = vld [vmem:[%s5485_s13 + $0x40] sm:$0xff] }
 0x3b7   : > { %2936 = vmatpush.msrb.mxu1 %v2921_v42 }
 0x3b8   : > { %2735 = vmatpush.msrb.mxu3 %v3524_v52  ;;  %2870 = vmatpush.msrb.mxu2 %v2863_v8  ;;  %v2960_v8 = vld [vmem:[%s5485_s13 + $0xc8] sm:$0xff] }
 0x3ba   : > { %3428 = vmatpush.msk.msra.mxu3 %vm2693_vm6, %v3522_v47  ;;  %2871 = vmatpush.msrb.mxu2 %v2862_v60  ;;  %v3038_v47 = vld [vmem:[%s5485_s13 + $0x1d8] sm:$0xff] }
 0x3bb   : > { %v2920_v60 = vld [vmem:[%s5485_s13 + $0x38] sm:$0xff] }
 0x3bc   : > { %2779 = vmatpush.msra.mxu3 %v3524_v52  ;;  %2872 = vmatpush.msrb.mxu2 %v2861_v45  ;;  %v2999_v52 = vld [vmem:[%s5485_s13 + $0x150] sm:$0xff] }
 0x3bd   : > { %3425 = vmatmul.msk.f32.vlgmr.msrb.gmra.mxu3 %vm2689_vm7, %v2688_v13  ;;  %v3037_v45 = vld [vmem:[%s5485_s13 + $0x1d0] sm:$0xff]  ;;  %3010 = vmatpush.msrb.mxu0 %v2999_v52 }
 0x3be   : > { %2873 = vmatpush.msrb.mxu2 %v2860_v9  ;;  %2901 = vmatpush.msrb.mxu3 %v2868_v28  ;;  %v2959_v9 = vld [vmem:[%s5485_s13 + $0xc0] sm:$0xff]  ;;  %v2995_v28 = vld [vmem:[%s5485_s13 + $0x130] sm:$0xff] }
 0x3bf   : > { %2937 = vmatpush.msrb.mxu1 %v2920_v60 }
 0x3c0   : > { %2874 = vmatpush.msrb.mxu2 %v2859_v0  ;;  %2902 = vmatpush.msrb.mxu3 %v2867_v29  ;;  %v2998_v0 = vld [vmem:[%s5485_s13 + $0x148] sm:$0xff]  ;;  %v3033_v29 = vld [vmem:[%s5485_s13 + $0x1b0] sm:$0xff] }
 0x3c1   : > { %3011 = vmatpush.msrb.mxu0 %v2998_v0  ;;  %2938 = vmatpush.msrb.mxu1 %v2919_v10 }
 0x3c2   : > { %2875 = vmatpush.msrb.mxu2 %v2858_v48  ;;  %2903 = vmatpush.msrb.mxu3 %v2866_v5  ;;  %v2997_v48 = vld [vmem:[%s5485_s13 + $0x140] sm:$0xff]  ;;  %v2994_v5 = vld [vmem:[%s5485_s13 + $0x128] sm:$0xff] }
 0x3c3   : > { %3012 = vmatpush.msrb.mxu0 %v2997_v48  ;;  %2939 = vmatpush.msrb.mxu1 %v2918_v49  ;;  %v3119_v48 = vld [vmem:[%s5487_s15 + $0x60] sm:$0xff]  ;;  %v3118_v49 = vld [vmem:[%s5487_s15 + $0x58] sm:$0xff] }
 0x3c4   : > { %2876 = vmatpush.msrb.mxu2 %v2857_v17  ;;  %2904 = vmatpush.msrb.mxu3 %v2865_v59  ;;  %v3035_v17 = vld [vmem:[%s5485_s13 + $0x1c0] sm:$0xff] }
 0x3c5   : > { %3429 = vmatmul.msk.f32.vlgmr.msra.gmra.mxu3 %vm2689_vm7, %v2740_v7  ;;  %v2955_v59 = vld [vmem:[%s5485_s13 + $0xa0] sm:$0xff] }
 0x3c6   : > { %2877 = vmatpush.msrb.mxu2 %v2856_v21  ;;  %2967 = vmatpush.msra.mxu3 %v2966_v61  ;;  %v2917_v21 = vld [vmem:[%s5485_s13 + $0x20] sm:$0xff] }
 0x3c7   : > { %2940 = vmatpush.msrb.mxu1 %v2917_v21  ;;  %v3031_v61 = vld [vmem:[%s5485_s13 + $0x1a0] sm:$0xff] }
 0x3c8   : > { %2878 = vmatpush.msrb.mxu2 %v2855_v24  ;;  %2968 = vmatpush.msra.mxu3 %v2965_v35  ;;  %v2915_v24 = vld [vmem:[%s5485_s13 + $0x10] sm:$0xff]  ;;  %v3115_v21 = vld [vmem:[%s5487_s15 + $0x40] sm:$0xff] }
 0x3c9   : > { %2941 = vmatpush.msrb.mxu1 %v2916_v55  ;;  %v2953_v35 = vld [vmem:[%s5485_s13 + $0x90] sm:$0xff]  ;;  %v3114_v55 = vld [vmem:[%s5487_s15 + $0x38] sm:$0xff] }
 0x3ca   : > { %2879 = vmatpush.msrb.mxu2 %v2854_v11  ;;  %2969 = vmatpush.msra.mxu3 %v2964_v3  ;;  %v2991_v3 = vld [vmem:[%s5485_s13 + $0x110] sm:$0xff] }
 0x3cb   : > { %2942 = vmatpush.msrb.mxu1 %v2915_v24  ;;  %v3113_v24 = vld [vmem:[%s5487_s15 + $0x30] sm:$0xff] }
 0x3cc   : > { %2880 = vmatpush.msrb.mxu2 %v2853_v15  ;;  %2970 = vmatpush.msra.mxu3 %v2963_v38  ;;  %v2913_v15 = vld [vmem:[%s5485_s13] sm:$0xff] }
 0x3cd   : > { %2943 = vmatpush.msrb.mxu1 %v2914_v30  ;;  %v2951_v38 = vld [vmem:[%s5485_s13 + $0x80] sm:$0xff]  ;;  %v3112_v30 = vld [vmem:[%s5487_s15 + $0x28] sm:$0xff] }
 0x3ce   : > { %2881 = vmatpush.msrb.mxu2 %v2852_v31  ;;  %2971 = vmatpush.msra.mxu3 %v2962_v36  ;;  %v3079_v31 = vld [vmem:[%s5485_s13 + $0x270] sm:$0xff]  ;;  %v3027_v36 = vld [vmem:[%s5485_s13 + $0x180] sm:$0xff] }
 0x3cf   : > { %2944 = vmatpush.msrb.mxu1 %v2913_v15  ;;  %v3109_v15 = vld [vmem:[%s5487_s15 + $0x10] sm:$0xff] }
 0x3d0   : > { %2882 = vmatpush.msrb.mxu2 %v2851_v56  ;;  %2972 = vmatpush.msra.mxu3 %v2961_v58  ;;  %v3077_v56 = vld [vmem:[%s5485_s13 + $0x260] sm:$0xff] }
 0x3d1   : > { %v3065_v58 = vld [vmem:[%s5485_s13 + $0x200] sm:$0xff] }
 0x3d2   : > { %2883 = vmatpush.msrb.mxu2 %v2850_v14  ;;  %2973 = vmatpush.msra.mxu3 %v2960_v8  ;;  %v2996_v14 = vld [vmem:[%s5485_s13 + $0x138] sm:$0xff] }
 0x3d3   : > { %3013 = vmatpush.msrb.mxu0 %v2996_v14 }
 0x3d4   : > { %2884 = vmatpush.msrb.mxu2 %v2849_v57  ;;  %2974 = vmatpush.msra.mxu3 %v2959_v9  ;;  %v2957_v57 = vld [vmem:[%s5485_s13 + $0xb0] sm:$0xff] }
 0x3d5   : > { %3014 = vmatpush.msrb.mxu0 %v2995_v28 }
 0x3d6   : > { %3043 = vmatpush.msra.mxu2 %v3042_v2  ;;  %2975 = vmatpush.msra.mxu3 %v2958_v16  ;;  %v3030_v2 = vld [vmem:[%s5485_s13 + $0x198] sm:$0xff]  ;;  %v3120_v16 = vld [vmem:[%s5487_s15 + $0x68] sm:$0xff] }
 0x3d7   : > { %3015 = vmatpush.msrb.mxu0 %v2994_v5 }
 0x3d8   : > { %3044 = vmatpush.msra.mxu2 %v3041_v12  ;;  %2976 = vmatpush.msra.mxu3 %v2957_v57  ;;  %v2952_v12 = vld [vmem:[%s5485_s13 + $0x88] sm:$0xff] }
 0x3d9   : > { %3016 = vmatpush.msrb.mxu0 %v2993_v23  ;;  %v3161_v23 = vld [vmem:[%s5489_s17 + $0x48] sm:$0xff] }
 0x3da   : > { %3045 = vmatpush.msra.mxu2 %v3040_v6  ;;  %2977 = vmatpush.msra.mxu3 %v2956_v32  ;;  %v2990_v6 = vld [vmem:[%s5485_s13 + $0x108] sm:$0xff] }
 0x3db   : > { %3017 = vmatpush.msrb.mxu0 %v2992_v1  ;;  %v3157_v1 = vld [vmem:[%s5489_s17 + $0x28] sm:$0xff] }
 0x3dc   : > { %3046 = vmatpush.msra.mxu2 %v3039_v20  ;;  %2978 = vmatpush.msra.mxu3 %v2955_v59  ;;  %v3068_v20 = vld [vmem:[%s5485_s13 + $0x218] sm:$0xff] }
 0x3dd   : > { %3018 = vmatpush.msrb.mxu0 %v2991_v3  ;;  %v3155_v3 = vld [vmem:[%s5489_s17 + $0x18] sm:$0xff] }
 0x3de   : > { %3047 = vmatpush.msra.mxu2 %v3038_v47  ;;  %2979 = vmatpush.msra.mxu3 %v2954_v22 }
 0x3df   : > { %3019 = vmatpush.msrb.mxu0 %v2990_v6 }
 0x3e0   : > { %3048 = vmatpush.msra.mxu2 %v3037_v45  ;;  %2980 = vmatpush.msra.mxu3 %v2953_v35  ;;  %v3159_v35 = vld [vmem:[%s5489_s17 + $0x38] sm:$0xff] }
 0x3e1   : > { %3020 = vmatpush.msrb.mxu0 %v2989_v19 }
 0x3e2   : > { %3049 = vmatpush.msra.mxu2 %v3036_v53  ;;  %2981 = vmatpush.msra.mxu3 %v2952_v12  ;;  %v3121_v53 = vld [vmem:[%s5487_s15 + $0x70] sm:$0xff]  ;;  %v3153_v12 = vld [vmem:[%s5489_s17 + $0x8] sm:$0xff] }
 0x3e4   : > { %3050 = vmatpush.msra.mxu2 %v3035_v17  ;;  %2982 = vmatpush.msra.mxu3 %v2951_v38  ;;  %v3117_v17 = vld [vmem:[%s5487_s15 + $0x50] sm:$0xff]  ;;  %v3122_v38 = vld [vmem:[%s5488_s16] sm:$0x1] }
 0x3e6   : > { %3051 = vmatpush.msra.mxu2 %v3034_v54 }
 0x3e8   : > { %3052 = vmatpush.msra.mxu2 %v3033_v29 }
 0x3ea   : > { %3053 = vmatpush.msra.mxu2 %v3032_v46 }
 0x3ec   : > { %3054 = vmatpush.msra.mxu2 %v3031_v61  ;;  %v3160_v61 = vld [vmem:[%s5489_s17 + $0x40] sm:$0xff] }
 0x3ee   : > { %3055 = vmatpush.msra.mxu2 %v3030_v2  ;;  %v3156_v2 = vld [vmem:[%s5489_s17 + $0x20] sm:$0xff] }
 0x3f0   : > { %3056 = vmatpush.msra.mxu2 %v3029_v40  ;;  %v3154_v40 = vld [vmem:[%s5489_s17 + $0x10] sm:$0xff] }
 0x3f2   : > { %3057 = vmatpush.msra.mxu2 %v3028_v41 }
 0x3f4   : > { %3058 = vmatpush.msra.mxu2 %v3027_v36 }
 0x438   : > { %v2717_v13 = vpop.f32.mrf.mxu3  ;;  %v2761_v7 = vpop.f32.mrf.mxu2 }
 0x439   : > { %v2784_v44 = vmax.f32 %v2717_v13, %v2761_v7 }
 0x43b   : > { %2885 = vmatmul.f32.vlgmr.msrb.gmra.mxu2 %v2784_v44  ;;  %2825 = vmatmul.f32.vlgmr.msra.gmra.mxu0 %v2784_v44 }
 0x440   : > { %v2737_v27 = vpop.f32.mrf.mxu3 }
 0x448   : > { %v2781_v11 = vpop.f32.mrf.mxu3 }
 0x449   : > { %v2785_v26 = vmax.f32 %v2737_v27, %v2781_v11  ;;  %v3116_v27 = vld [vmem:[%s5487_s15 + $0x48] sm:$0xff]  ;;  %v3111_v11 = vld [vmem:[%s5487_s15 + $0x20] sm:$0xff] }
 0x44b   : > { %3431 = vmatmul.msk.f32.vlgmr.msrb.gmra.mxu3 %vm624_vm0, %v2785_v26  ;;  %3430 = vmatmul.msk.f32.vlgmr.msra.gmra.mxu1 %vm624_vm0, %v2785_v26  ;;  %v3110_v26 = vld [vmem:[%s5487_s15 + $0x18] sm:$0xff] }
 0x44c   : > { %3081 = vmatpush.msra.mxu1 %v3080_v50  ;;  %3128 = vmatpush.msrb.mxu3 %v3121_v53  ;;  %v3108_v50 = vld [vmem:[%s5487_s15 + $0x8] sm:$0xff] }
 0x44e   : > { %3082 = vmatpush.msra.mxu1 %v3079_v31  ;;  %3129 = vmatpush.msrb.mxu3 %v3120_v16  ;;  %v2911_v31 = vld [vmem:[%s5486_s14] sm:$0x1] }
 0x450   : > { %3083 = vmatpush.msra.mxu1 %v3078_v51  ;;  %3130 = vmatpush.msrb.mxu3 %v3119_v48 }
 0x452   : > { %3084 = vmatpush.msra.mxu1 %v3077_v56  ;;  %3131 = vmatpush.msrb.mxu3 %v3118_v49  ;;  %v3107_v56 = vld [vmem:[%s5487_s15] sm:$0xff] }
 0x454   : > { %3085 = vmatpush.msra.mxu1 %v3076_v25  ;;  %3132 = vmatpush.msrb.mxu3 %v3117_v17 }
 0x456   : > { %3086 = vmatpush.msra.mxu1 %v3075_v62  ;;  %3133 = vmatpush.msrb.mxu3 %v3116_v27 }
 0x458   : > { %3087 = vmatpush.msra.mxu1 %v3074_v33  ;;  %3134 = vmatpush.msrb.mxu3 %v3115_v21 }
 0x45a   : > { %3088 = vmatpush.msra.mxu1 %v3073_v18  ;;  %3135 = vmatpush.msrb.mxu3 %v3114_v55 }
 0x45c   : > { %3089 = vmatpush.msra.mxu1 %v3072_v63  ;;  %3136 = vmatpush.msrb.mxu3 %v3113_v24  ;;  %v3162_v63 = vld [vmem:[%s5489_s17 + $0x50] sm:$0xf] }
 0x45d   : > { %3433 = vmatpush.msk.msra.mxu0 %vm1998_vm1, %v3162_v63 }
 0x45e   : > { %3090 = vmatpush.msra.mxu1 %v3071_v39  ;;  %3137 = vmatpush.msrb.mxu3 %v3112_v30  ;;  %v3158_v39 = vld [vmem:[%s5489_s17 + $0x30] sm:$0xff] }
 0x45f   : > { %3177 = vmatpush.msra.mxu0 %v3161_v23 }
 0x460   : > { %3091 = vmatpush.msra.mxu1 %v3070_v34  ;;  %3138 = vmatpush.msrb.mxu3 %v3111_v11  ;;  %v3152_v34 = vld [vmem:[%s5489_s17] sm:$0xff] }
 0x461   : > { %3178 = vmatpush.msra.mxu0 %v3160_v61 }
 0x462   : > { %3092 = vmatpush.msra.mxu1 %v3069_v4  ;;  %3139 = vmatpush.msrb.mxu3 %v3110_v26 }
 0x463   : > { %3179 = vmatpush.msra.mxu0 %v3159_v35 }
 0x464   : > { %3093 = vmatpush.msra.mxu1 %v3068_v20  ;;  %3140 = vmatpush.msrb.mxu3 %v3109_v15 }
 0x465   : > { %3180 = vmatpush.msra.mxu0 %v3158_v39 }
 0x466   : > { %3094 = vmatpush.msra.mxu1 %v3067_v37  ;;  %3141 = vmatpush.msrb.mxu3 %v3108_v50 }
 0x467   : > { %3181 = vmatpush.msra.mxu0 %v3157_v1 }
 0x468   : > { %3095 = vmatpush.msra.mxu1 %v3066_v43  ;;  %3142 = vmatpush.msrb.mxu3 %v3107_v56  ;;  %v3163_v43 = vld [vmem:[%s5490_s18] sm:$0x1] }
 0x469   : > { %3182 = vmatpush.msra.mxu0 %v3156_v2 }
 0x46a   : > { %3096 = vmatpush.msra.mxu1 %v3065_v58 }
 0x46b   : > { %3183 = vmatpush.msra.mxu0 %v3155_v3 }
 0x46d   : > { %3184 = vmatpush.msra.mxu0 %v3154_v40 }
 0x46f   : > { %3185 = vmatpush.msra.mxu0 %v3153_v12 }
 0x471   : > { %3186 = vmatpush.msra.mxu0 %v3152_v34 }
 0x4b8   : > { %v2826_v7 = vpop.f32.mrf.mxu0 }
 0x4be   : > { %v2886_v44 = vpop.f32.mrf.mxu2 }
 0x4c8   : > { %v2846_v13 = vpop.f32.mrf.mxu1 }
 0x4c9   : > { %v2847_v47 = vadd.f32 %v2846_v13, %v2826_v7 }
 0x4ce   : > { %v2906_v42 = vpop.f32.mrf.mxu3 }
 0x4cf   : > { %v2907_v8 = vadd.f32 %v2906_v42, %v2886_v44 }
 0x4d1   : > { %v2909_v52 = vmax.f32 %v2847_v47, %v2907_v8 }
 0x4d3   : > { %2910 = vst [vmem:[#allocation3] sm:$0x1f] %v2909_v52 }
 0x4da   : > { %v2912_v60 = vld [vmem:[#allocation3] sm:$0x1]  ;;  %v2950_v45 = vld [vmem:[#allocation3 + $0x1] sm:$0x1]  ;;  %v2988_v9 = vld [vmem:[#allocation3 + $0x2] sm:$0x1] }
 0x4db   : > { %2945 = vmatmul.f32.vlgmr.msrb.gmra.mxu1 %v2912_v60  ;;  %2983 = vmatmul.f32.vlgmr.msra.gmra.mxu3 %v2950_v45  ;;  %v3026_v0 = vld [vmem:[#allocation3 + $0x3] sm:$0x1]  ;;  %v3064_v10 = vld [vmem:[#allocation3 + $0x4] sm:$0x1] }
 0x4dc   : > { %3021 = vmatmul.f32.vlgmr.msrb.gmra.mxu0 %v2988_v9  ;;  %3059 = vmatmul.f32.vlgmr.msra.gmra.mxu2 %v3026_v0 }
 0x4e3   : > { %3097 = vmatmul.f32.vlgmr.msra.gmra.mxu1 %v3064_v10 }
 0x558   : > { %v2946_v51 = vpop.f32.mrf.mxu1 }
 0x559   : > { %v2949_v25 = vadd.f32 %v2946_v51, %v2911_v31  ;;  %v3022_v57 = vpop.f32.mrf.mxu0 }
 0x55e   : > { %v2984_v14 = vpop.f32.mrf.mxu3 }
 0x55f   : > { %v2987_v54 = vadd.f32 %v2984_v14, %v2949_v25  ;;  %v3060_v28 = vpop.f32.mrf.mxu2 }
 0x560   : > { %v3098_v32 = vpop.f32.mrf.mxu1 }
 0x561   : > { %v3025_v62 = vadd.f32 %v3022_v57, %v2987_v54 }
 0x563   : > { %v3063_v29 = vadd.f32 %v3060_v28, %v3025_v62 }
 0x565   : > { %v3101_v33 = vadd.f32 %v3098_v32, %v3063_v29 }
 0x567   : > { %v3102_v5 = vsub.f32 0.0, %v3101_v33 }
 0x569   : > { %v3103_v59 = vmul.f32 1.442695, %v3102_v5 }
 0x56b   : > { %3525 = vpow2.f32 %v3103_v59 }
 0x571   : > { %v3526_v18 = vpop.eup %3525 }
 0x572   : > { %v3105_v46 = vadd.f32 1.0, %v3526_v18 }
 0x574   : > { %3527 = vrcp.f32 %v3105_v46 }
 0x57a   : > { %v3528_v22 = vpop.eup %3527 }
 0x57b   : > { %3432 = vmatmul.msk.f32.vlgmr.msrb.gmra.mxu3 %vm3123_vm8, %v3528_v22 }
 0x5fe   : > { %v3144_v4 = vpop.f32.mrf.mxu3 }
 0x5ff   : > { %v3145_v6 = vadd.f32 %v3144_v4, %v3122_v38 }
 0x601   : > { %v3147_v41 = vsub.f32 0.0, %v3145_v6 }
 0x603   : > { %v3148_v19 = vmul.f32 1.442695, %v3147_v41 }
 0x605   : > { %3529 = vpow2.f32 %v3148_v19 }
 0x60b   : > { %v3530_v36 = vpop.eup %3529 }
 0x60c   : > { %v3150_v20 = vadd.f32 1.0, %v3530_v36 }
 0x60e   : > { %3531 = vrcp.f32 %v3150_v20 }
 0x614   : > { %v3532_v37 = vpop.eup %3531 }
 0x615   : > { %3434 = vmatmul.msk.f32.vlgmr.msra.gmra.mxu0 %vm3164_vm9, %v3532_v37 }
 0x692   : > { %v3188_v58 = vpop.f32.mrf.mxu0 }
 0x693   : > { %v3189_v13 = vadd.f32 %v3188_v58, %v3163_v43 }
 0x695   : > { %3192 = vst.msk [vmem:[%s594_s27] sm:$0x1] %vm3191_vm10, %v3189_v13 }
 0x696   : > { %3560 = shalt.err (!%p3557_p3)
}
 0x697   : > { %3438 = dma.vmem_to_hbm [thread:$0]  (%p3735_p5), %s3205_s21, 16, %s3207_s28, %s3194_s25  }
 0x698 PF: > { %s5540_s23 = sld [smem:[#allocation9_spill]] }
 0x699   : > { %s5541_s2 = sld [smem:[#allocation7_spill]] }
 0x69e   : > { %p3444_p4 = scmp.ge.s32.totalorder %s5540_s23, 2 }
 0x69f   : > { %s3218_s6 = sand.u32 1, %s5541_s2  }
 0x6a0   : > { %p3441_p7 = pnand %p3444_p4, %p3739_p6  ;;  %s3219_s1 = scalar_lea.sflag [#allocation5], %s3218_s6 }
 0x6a2   : > { %p3442_p8 = pneg %p3441_p7 }
 0x6a4   : > { %3578 = dma.done.wait (%p3442_p8), %s3219_s1, 16  }
 0x6a5   : > { %3580 = vsyncadd (%p3442_p8), %s3219_s1, 4294967280  ;;  %s5543_s21 = sld [smem:[#allocation10_spill]]  ;;  %s5546_s0 = smov %s3587_s30 }
 0x6a6   : > { %s5544_s4 = sld [smem:[#allocation8_spill]] }
 0x6a7   : > { %s5545_s20 = sld [smem:[#allocation11_spill]] }
 0x6ab   : > { %p29_p9 = scmp.ge.s32.totalorder %s5543_s21, 4  }
 0x6ac   : > { %s5547_s30 = smov %s5544_s4 }
 0x6ad   :  { %31 = sbr.rel (!%p29_p9) target bundleno = 11 (0xb), region = 131 }
 0x6b2   :  { %3224 = vsyncpa [#allocation5], 1 }
 0x6b3   :  { %3226 = vsyncpa [#allocation5 + $0x1], 1 }

</bundles_post_ra>
